<compile_context>
chip_gen: v7x
topology: tpu7x:2x2x1
jax: 0.10.0
libtpu: 0.0.40
codegen_flags: <defaults>
</compile_context>

<pallas_src>
import functools

import jax
import jax.numpy as jnp
from jax.experimental import pallas as pl
from jax.experimental.pallas import tpu as pltpu


def make_inv_freq(demb: int) -> jnp.ndarray:
    # Matches: inv_freq = 1 / 10000 ** (arange(0, demb, 2) / demb)
    return 1.0 / (10000.0 ** (jnp.arange(0.0, demb, 2.0, dtype=jnp.float32) / demb))


def _sinpos_kernel(pos_ref, freq_ref, out_ref, *, sin_first: bool, half: int):
    # pos_ref:  (TL, 1)  float32   (relative positions, column vector)
    # freq_ref: (1,  H)  float32   (inverse frequencies, row vector), H = demb // 2
    # out_ref:  (TL, 2H) out_dtype (lane-dense [sin | cos] or [cos | sin] slab)
    pos = pos_ref[...]                       # (TL, 1)
    freq = freq_ref[...]                     # (1, H)
    phase = pos * freq                       # outer product via broadcast: (TL, H), f32
    s = jnp.sin(phase)
    c = jnp.cos(phase)
    first, second = (s, c) if sin_first else (c, s)
    # Two static half-slab stores instead of a lane-axis concat: no (TL, 2H) temporary,
    # lane-aligned unmasked stores when half % 128 == 0.
    out_ref[:, :half] = first.astype(out_ref.dtype)
    out_ref[:, half:] = second.astype(out_ref.dtype)


def _reference_2d(pos_seq, demb, sin_first=True):
    inv_freq = make_inv_freq(demb)
    sinusoid_inp = jnp.outer(pos_seq.astype(jnp.float32), inv_freq)
    if sin_first:
        return jnp.concatenate([jnp.sin(sinusoid_inp), jnp.cos(sinusoid_inp)], axis=-1)
    return jnp.concatenate([jnp.cos(sinusoid_inp), jnp.sin(sinusoid_inp)], axis=-1)


def _round_up(x: int, m: int) -> int:
    return ((x + m - 1) // m) * m


_SUBLANE_PACK = {4: 8, 2: 16, 1: 32}


def _choose_tile(L: int, demb: int, out_dtype, tile_cap: int, vmem_budget_bytes: int):
    """Balanced tile size over L, bounded by a VMEM budget and a row cap."""
    itemsize = jnp.dtype(out_dtype).itemsize
    sub = _SUBLANE_PACK.get(itemsize, 8)
    H = demb // 2
    # Bytes/row inside the kernel: double-buffered output block + f32 temporaries
    # (phase, sin, cos) generated by the body.
    bytes_per_row = demb * 2 * itemsize + 3 * H * 4
    tl_vmem = max(sub, (vmem_budget_bytes // max(bytes_per_row, 1)) // sub * sub)
    tl_cap = max(sub, min(int(tile_cap), tl_vmem) // sub * sub)

    l_pad = _round_up(max(L, 1), sub)
    # Keep >= 2 tiles whenever there are enough rows -> both TCs busy on v7x.
    min_tiles = 2 if l_pad >= 2 * sub else 1
    n_tiles = max(min_tiles, pl.cdiv(L, tl_cap))
    tl = _round_up(pl.cdiv(L, n_tiles), sub)
    return tl, itemsize


def sinusoidal_positional_embedding(
    pos_seq,
    demb: int,
    sin_first: bool = True,
    bsz=None,
    *,
    out_dtype=jnp.float32,
    tile_l: int = 2048,
    vmem_budget_bytes: int = 16 * 1024 * 1024,
    use_pallas=None,
):
    """Forward pass of SinusoidalPositionalEmbedding.

    pos_seq: (L,) float array of (possibly negative) relative positions.
    Returns (L, 1, demb) or (L, bsz, demb) in `out_dtype`.
    """
    assert demb % 2 == 0, "demb must be even"
    L = int(pos_seq.shape[0])
    H = demb // 2

    # Tiny problems (plain XLA fuses outer-product + sin/cos into the consumer and
    # beats the custom-call/grid overhead) and lane-misaligned H (half-slab stores
    # would be masked) dispatch to the fused pure-JAX path.
    if use_pallas is None:
        use_pallas = ((L * demb) >= (8 * 1024)) and (H % 128 == 0)

    if not use_pallas:
        pos_emb2d = _reference_2d(pos_seq, demb, sin_first).astype(out_dtype)
    else:
        inv_freq = make_inv_freq(demb)
        pos2d = pos_seq.astype(jnp.float32).reshape(L, 1)
        freq2d = inv_freq.reshape(1, H)

        tl, out_itemsize = _choose_tile(L, demb, out_dtype, tile_l, vmem_budget_bytes)
        grid = (pl.cdiv(L, tl),)

        cost = pl.CostEstimate(
            flops=L * H,                    # one multiply per (L, H) phase element
            transcendentals=L * demb,       # one sin or cos per output element
            bytes_accessed=L * demb * out_itemsize + 4 * L + 4 * H,
        )

        # Approximate VMEM need; only override the default scoped limit if needed.
        vmem_need = (2 * tl * demb * out_itemsize          # double-buffered output
                     + 2 * (tl * 4 + H * 4)                # pos + inv_freq blocks
                     + 4 * tl * H * 4                      # f32 temporaries w/ slack
                     + (1 << 20))
        params = dict(dimension_semantics=("parallel",))
        if vmem_need > (32 << 20):
            params["vmem_limit_bytes"] = min(vmem_need, 48 << 20)

        kernel = functools.partial(_sinpos_kernel, sin_first=sin_first, half=H)

        pos_emb2d = pl.pallas_call(
            kernel,
            out_shape=jax.ShapeDtypeStruct((L, demb), out_dtype),
            grid=grid,
            in_specs=[
                pl.BlockSpec((tl, 1), lambda i: (i, 0)),   # pos column tile
                pl.BlockSpec((1, H), lambda i: (0, 0)),    # inv_freq (resident)
            ],
            out_specs=pl.BlockSpec((tl, demb), lambda i: (i, 0)),
            compiler_params=pltpu.CompilerParams(**params),
            cost_estimate=cost,
        )(pos2d, freq2d)

    pos_emb = pos_emb2d[:, None, :]  # (L, 1, demb)
    if bsz is not None:
        # Lazy view (fuses under jit); equivalent in value to pos_emb.repeat(1, bsz, 1).
        pos_emb = jnp.broadcast_to(pos_emb, (L, bsz, demb))
    return pos_emb


def _reference(pos_seq, demb, sin_first=True, bsz=None):
    pos_emb = _reference_2d(pos_seq, demb, sin_first)[:, None, :]
    if bsz is not None:
        pos_emb = jnp.broadcast_to(pos_emb, (pos_seq.shape[0], bsz, demb))
    return pos_emb


if __name__ == "__main__":
    key = jax.random.PRNGKey(0)

    # --- Case 1: moderate shape, exercises the Pallas kernel (H = 128, lane-aligned),
    #     balanced 2-tile grid with a partial trailing block (f32 output). ---
    L1, demb1, bsz1 = 520, 256, 2
    pos_seq1 = jax.random.randint(key, (L1,), -L1, L1).astype(jnp.float32)
    out1 = jax.block_until_ready(
        sinusoidal_positional_embedding(
            pos_seq1, demb1, sin_first=True, bsz=bsz1, use_pallas=True))
    ref1 = _reference(pos_seq1, demb1, sin_first=True, bsz=bsz1)
    assert out1.shape == (L1, bsz1, demb1), out1.shape
    assert jnp.allclose(out1, ref1, atol=1e-4, rtol=1e-4), "mismatch vs reference (case 1)"

    # --- Case 2: cos-first, no batch, bf16 output (kernel path, 16-row sublane tiles). ---
    out2 = jax.block_until_ready(
        sinusoidal_positional_embedding(
            pos_seq1, demb1, sin_first=False, bsz=None,
            out_dtype=jnp.bfloat16, use_pallas=True))
    ref2 = _reference(pos_seq1, demb1, sin_first=False, bsz=None)
    assert out2.shape == (L1, 1, demb1), out2.shape
    assert jnp.allclose(out2.astype(jnp.float32), ref2, atol=2e-2, rtol=2e-2), \
        "mismatch vs reference (case 2, bf16)"

    # --- Case 3: tiny shape from the original harness (auto-dispatches to the fused
    #     pure-JAX path; Pallas overhead + masked stores would dominate here). ---
    L3, demb3, bsz3 = 8, 32, 2
    pos_seq3 = jax.random.randint(jax.random.PRNGKey(1), (L3,), -L3, L3).astype(jnp.float32)
    out3 = jax.block_until_ready(
        sinusoidal_positional_embedding(pos_seq3, demb3, sin_first=True, bsz=bsz3))
    ref3 = _reference(pos_seq3, demb3, sin_first=True, bsz=bsz3)
    assert out3.shape == (L3, bsz3, demb3), out3.shape
    assert jnp.allclose(out3, ref3, atol=1e-5, rtol=1e-5), "mismatch vs reference (case 3)"

    print("KERNEL_OK")
</pallas_src>

<mosaic_0001>
module attributes {stable_mosaic.version = 11 : i64} {
  func.func @_sinpos_kernel(%arg0: i32, %arg1: memref<264x1xf32, #tpu.memory_space<vmem>>, %arg2: memref<1x128xf32, #tpu.memory_space<vmem>>, %arg3: memref<264x256xf32, #tpu.memory_space<vmem>>) attributes {dimension_semantics = [#tpu.dimension_semantics<parallel>], iteration_bounds = array<i64: 2>, scalar_prefetch = 0 : i64, scratch_operands = 0 : i64, tpu.core_type = #tpu.core_type<tc>, window_params = [{transform_indices = @transform_0, window_bounds = array<i64: 264, 1>}, {pipeline_mode = #tpu.pipeline_mode<synchronous>, transform_indices = @transform_1, window_bounds = array<i64: 1, 128>}, {transform_indices = @transform_2, window_bounds = array<i64: 264, 256>}]} {
    %c0 = arith.constant 0 : index
    %c0_0 = arith.constant 0 : index
    %0 = vector.load %arg1[%c0, %c0_0] : memref<264x1xf32, #tpu.memory_space<vmem>>, vector<264x1xf32>
    %c0_1 = arith.constant 0 : index
    %c0_2 = arith.constant 0 : index
    %1 = vector.load %arg2[%c0_1, %c0_2] : memref<1x128xf32, #tpu.memory_space<vmem>>, vector<1x128xf32>
    %2 = vector.broadcast %0 : vector<264x1xf32> to vector<264x128xf32>
    %3 = vector.broadcast %1 : vector<1x128xf32> to vector<264x128xf32>
    %4 = arith.mulf %2, %3 : vector<264x128xf32>
    %5 = math.sin %4 : vector<264x128xf32>
    %6 = math.cos %4 : vector<264x128xf32>
    %c0_3 = arith.constant 0 : index
    %c0_4 = arith.constant 0 : index
    %7 = vector.load %arg3[%c0_3, %c0_4] : memref<264x256xf32, #tpu.memory_space<vmem>>, vector<264x128xf32>
    tpu.vector_store %arg3[%c0_3, %c0_4], %5 {strides = array<i32>} : memref<264x256xf32, #tpu.memory_space<vmem>>, vector<264x128xf32>,
    %c0_5 = arith.constant 0 : index
    %c128 = arith.constant 128 : index
    %8 = vector.load %arg3[%c0_5, %c128] : memref<264x256xf32, #tpu.memory_space<vmem>>, vector<264x128xf32>
    tpu.vector_store %arg3[%c0_5, %c128], %6 {strides = array<i32>} : memref<264x256xf32, #tpu.memory_space<vmem>>, vector<264x128xf32>,
    return
  }
  func.func @transform_0(%arg0: i32) -> (i32, i32) {
    %c0_i32 = arith.constant 0 : i32
    %c0_i32_0 = arith.constant 0 : i32
    return %arg0, %c0_i32 : i32, i32
  }
  func.func @transform_1(%arg0: i32) -> (i32, i32) {
    %c0_i32 = arith.constant 0 : i32
    %c0_i32_0 = arith.constant 0 : i32
    %c0_i32_1 = arith.constant 0 : i32
    return %c0_i32, %c0_i32_0 : i32, i32
  }
  func.func @transform_2(%arg0: i32) -> (i32, i32) {
    %c0_i32 = arith.constant 0 : i32
    %c0_i32_0 = arith.constant 0 : i32
    return %arg0, %c0_i32 : i32, i32
  }
}

</mosaic_0001>

<bundles_post_ra>
// kernel: tpu_custom_call.1
= control target key start
LH: loop header
LB: loop body
LE: loop exit
PB: predicated region body
PF: predicated region fallthrough
CT: control target
= control target key end

     0   :  { %7 = vsyncpa [#allocation3], 0  ;;  %s11561_s0 = inlined_call_operand.vmem [shape: f32[520,1], index: 0, kind: input, shape index: {}]   ;;  %s11562_s1 = inlined_call_operand.vmem [shape: f32[1,128], index: 1, kind: input, shape index: {}]   ;;  %s11563_s2 = inlined_call_operand.hbm [shape: f32[520,256], index: 2, kind: output, shape index: {}]  }
   0x1   :  { %9 = vsyncpa [#allocation3 + $0x1], 0  ;;  %s8080_s9 = smov 0   ;;  %s8082_s10 = smov 0  }
   0x2   :  { %s8084_s11 = smov 0   ;;  %s8086_s12 = smov 0  }
   0x3 LB: > { %s8101_s13 = sadd.s32 4294967295, %s8053_s12   ;;  %s7389_s14 = sadd.s32 4294967294, %s8053_s12   ;;  %s8053_s12 = sphi %s8086_s12, %s11633_s12   ;;  %s8049_s11 = sphi %s8084_s11, %s11632_s11   ;;  %s8045_s10 = sphi %s8082_s10, %s11631_s10   ;;  %s8041_s9 = sphi %s8080_s9, %s11630_s9  }
   0x4   : > { %s8105_s15 = sadd.s32 1, %s8053_s12   ;;  %s69_s16 = sadd.s32 1, %s8049_s11 }
   0x5   : > { %s66_s17 = ssub.s32 %s8053_s12, %s8105_s15  ;;  %p79_p0 = scmp.ne.s32.totalorder %s8049_s11, %s8045_s10 }
   0x6   : > { %p67_p1 = scmp.eq.s32.totalorder %s66_s17, 0  ;;  %p80_p2 = scmp.eq.s32.totalorder %s8101_s13, 1 }
   0x7   : > { %p85_p3 = scmp.ne.s32.totalorder %s8045_s10, %s8041_s9  ;;  %p86_p4 = scmp.eq.s32.totalorder %s7389_s14, 1 }
   0x8   : > { %s8116_s18 = scalar_select %p67_p1, %s8049_s11, %s69_s16  }
   0x9   : > { %p8118_p5 = por %p80_p2, %p79_p0  ;;  %p8122_p6 = por %p86_p4, %p85_p3 }
   0xa   : > { %p7392_p7 = scmp.ge.s32.totalorder %s8053_s12, 1  ;;  %p124_p8 = scmp.lt.s32.totalorder %s8053_s12, 3 }
   0xc   : > { %p125_p9 = pnand %p7392_p7, %p124_p8 }
   0xd   : > { %s8129_s21 = smul.u32 (!%p125_p9), 33, %s8101_s13  ;;  %v8055_v0 = vmov (!%p125_p9), 0   ;;  %s147_s27 = sand.u32 (!%p125_p9), 1, %s8045_s10   ;;  %v8175_v34 = vld [vmem:[%s11562_s1] ss:$0 sm:$0xff] (!%p125_p9) }
   0xe   : > { %128 = sbr.rel (%p125_p9) target bundleno = 1099 (0x44b), region = 28  ;;  %7853 = vset.pattern.permute.xlu1 (!%p125_p9), %v8055_v0  ;;  %7852 = vset.pattern.permute.xlu0 (!%p125_p9), %v8055_v0  ;;  %s11500_s24 = scalar_lea.sflag (!%p125_p9), [#allocation3], %s147_s27 }
   0xf   : > { %p155_p10 = scmp.lt.s32.totalorder (!%p125_p9), %s8129_s21, 64  ;;  %s8425_s30 = smul.u32 (!%p125_p9), 528, %s147_s27 }
  0x11   : > { %s8473_s3 = scalar_lea.vmem (!%p125_p9), [#allocation2], %s8425_s30 }
  0x15   : > { %s156_s22 = scalar_select %p155_p10, %s8129_s21, 64 }
  0x16   : > { %s7314_s25 = ssub.s32 (%p8118_p5), 65, %s8129_s21 }
  0x17   : > { %s7393_s23 = sshll.u32 %s156_s22, 3  ;;  %p7315_p11 = scmp.lt.s32.totalorder (%p8118_p5), %s7314_s25, 33 }
  0x18   : > { %s8136_s26 = scalar_lea.vmem %s11561_s0, %s7393_s23 }
  0x19   : > { %v172_v1 = vld [vmem:[%s8136_s26 + $0x10] sm:$0xff]  ;;  %v170_v2 = vld [vmem:[%s8136_s26] sm:$0xff]  ;;  %v173_v3 = vld [vmem:[%s8136_s26 + $0x18] sm:$0xff] }
  0x1a   : > { %216 = vperm.xlu1 %7853, %v172_v1   ;;  %206 = vperm.xlu0 %7852, %v170_v2   ;;  %v171_v4 = vld [vmem:[%s8136_s26 + $0x8] sm:$0xff]  ;;  %v174_v6 = vld [vmem:[%s8136_s26 + $0x20] sm:$0xff]  ;;  %v177_v7 = vld [vmem:[%s8136_s26 + $0x38] sm:$0xff] }
  0x1b   : > { %v175_v5 = vld [vmem:[%s8136_s26 + $0x28] sm:$0xff]  ;;  %v176_v8 = vld [vmem:[%s8136_s26 + $0x30] sm:$0xff]  ;;  %v178_v10 = vld [vmem:[%s8136_s26 + $0x40] sm:$0xff] }
  0x1c   : > { %v179_v9 = vld [vmem:[%s8136_s26 + $0x48] sm:$0xff]  ;;  %v181_v11 = vld [vmem:[%s8136_s26 + $0x58] sm:$0xff]  ;;  %v180_v12 = vld [vmem:[%s8136_s26 + $0x50] sm:$0xff] }
  0x1d   : > { %v183_v13 = vld [vmem:[%s8136_s26 + $0x68] sm:$0xff]  ;;  %v182_v14 = vld [vmem:[%s8136_s26 + $0x60] sm:$0xff]  ;;  %v185_v15 = vld [vmem:[%s8136_s26 + $0x78] sm:$0xff] }
  0x1e   : > { %221 = vperm.xlu1 %7853, %v173_v3   ;;  %211 = vperm.xlu0 %7852, %v171_v4   ;;  %v184_v16 = vld [vmem:[%s8136_s26 + $0x70] sm:$0xff]  ;;  %v187_v17 = vld [vmem:[%s8136_s26 + $0x88] sm:$0xff]  ;;  %v186_v18 = vld [vmem:[%s8136_s26 + $0x80] sm:$0xff] }
  0x1f   : > { %v189_v19 = vld [vmem:[%s8136_s26 + $0x98] sm:$0xff]  ;;  %v188_v20 = vld [vmem:[%s8136_s26 + $0x90] sm:$0xff]  ;;  %v191_v21 = vld [vmem:[%s8136_s26 + $0xa8] sm:$0xff] }
  0x20   : > { %v190_v22 = vld [vmem:[%s8136_s26 + $0xa0] sm:$0xff]  ;;  %v193_v23 = vld [vmem:[%s8136_s26 + $0xb8] sm:$0xff]  ;;  %v192_v24 = vld [vmem:[%s8136_s26 + $0xb0] sm:$0xff] }
  0x21   : > { %v195_v25 = vld [vmem:[%s8136_s26 + $0xc8] sm:$0xff]  ;;  %v194_v26 = vld [vmem:[%s8136_s26 + $0xc0] sm:$0xff]  ;;  %v197_v27 = vld [vmem:[%s8136_s26 + $0xd8] sm:$0xff] }
  0x22   : > { %231 = vperm.xlu1 %7853, %v175_v5   ;;  %226 = vperm.xlu0 %7852, %v174_v6   ;;  %v196_v28 = vld [vmem:[%s8136_s26 + $0xd0] sm:$0xff]  ;;  %v199_v29 = vld [vmem:[%s8136_s26 + $0xe8] sm:$0xff]  ;;  %v198_v30 = vld [vmem:[%s8136_s26 + $0xe0] sm:$0xff]  ;;  %v8056_v5 = vmov 683565275  }
  0x23   : > { %v201_v31 = vld [vmem:[%s8136_s26 + $0xf8] sm:$0xff]  ;;  %v200_v32 = vld [vmem:[%s8136_s26 + $0xf0] sm:$0xff]  ;;  %v202_v33 = vld [vmem:[%s8136_s26 + $0x100] sm:$0xff] }
  0x26   : > { %241 = vperm.xlu1 %7853, %v177_v7   ;;  %236 = vperm.xlu0 %7852, %v176_v8   ;;  %v8057_v7 = vmov 2475754826  }
  0x2a   : > { %251 = vperm.xlu1 %7853, %v179_v9   ;;  %246 = vperm.xlu0 %7852, %v178_v10   ;;  %v8058_v9 = vmov 2131351028  }
  0x2e   : > { %261 = vperm.xlu1 %7853, %v181_v11   ;;  %256 = vperm.xlu0 %7852, %v180_v12   ;;  %v8059_v11 = vmov 2102212464  }
  0x32   : > { %271 = vperm.xlu1 %7853, %v183_v13   ;;  %266 = vperm.xlu0 %7852, %v182_v14   ;;  %v8060_v13 = vmov 920167782  }
  0x36   : > { %281 = vperm.xlu1 %7853, %v185_v15   ;;  %276 = vperm.xlu0 %7852, %v184_v16  }
  0x3a   : > { %291 = vperm.xlu1 %7853, %v187_v17   ;;  %286 = vperm.xlu0 %7852, %v186_v18  }
  0x3e   : > { %301 = vperm.xlu1 %7853, %v189_v19   ;;  %296 = vperm.xlu0 %7852, %v188_v20  }
  0x42   : > { %311 = vperm.xlu1 %7853, %v191_v21   ;;  %306 = vperm.xlu0 %7852, %v190_v22   ;;  %v8061_v22 = vmov 1326507024  }
  0x46   : > { %321 = vperm.xlu1 %7853, %v193_v23   ;;  %316 = vperm.xlu0 %7852, %v192_v24  }
  0x4a   : > { %331 = vperm.xlu1 %7853, %v195_v25   ;;  %326 = vperm.xlu0 %7852, %v194_v26  }
  0x4e   : > { %341 = vperm.xlu1 %7853, %v197_v27   ;;  %336 = vperm.xlu0 %7852, %v196_v28  }
  0x52   : > { %351 = vperm.xlu1 %7853, %v199_v29   ;;  %346 = vperm.xlu0 %7852, %v198_v30  }
  0x56   : > { %361 = vperm.xlu1 %7853, %v201_v31   ;;  %356 = vperm.xlu0 %7852, %v200_v32  }
  0x5a   : > { %366 = vperm.xlu0 %7852, %v202_v33  }
  0x99   : > { %v217_v35 = vpop.permute.xlu1 %216  ;;  %v207_v36 = vpop.permute.xlu0 %206 }
  0x9a   : > { %v8178_v37 = vmul.f32 %v8175_v34, %v217_v35  ;;  %v8181_v38 = vmul.f32 %v8175_v34, %v207_v36 }
  0x9c   : > { %v616_v39 = vand.u32 2147483647, %v8178_v37  ;;  %v619_v40 = vand.u32 2139095040, %v8178_v37  ;;  %v408_v41 = vand.u32 2147483647, %v8181_v38  ;;  %v411_v42 = vand.u32 2139095040, %v8181_v38 }
  0x9d   : > { %v222_v43 = vpop.permute.xlu1 %221  ;;  %v212_v57 = vpop.permute.xlu0 %211  ;;  %vm618_vm14 = vcmp.lt.s32.totalorder %v8178_v37, 0 }
  0x9e   : > { %v620_v44 = vshrl.u32 %v619_v40, 23  ;;  %v8188_v45 = vmul.f32 %v8175_v34, %v222_v43  ;;  %v623_v46 = vand.u32 8388607, %v616_v39  ;;  %v412_v47 = vshrl.u32 %v411_v42, 23 }
  0x9f   : > { %v415_v48 = vand.u32 8388607, %v408_v41  ;;  %v8197_v63 = vmul.f32 %v8175_v34, %v212_v57  ;;  %vm8276_vm13 = vcmp.le.f32.partialorder %v616_v39, 0.7853982 }
  0xa0   : > { %v7403_v49 = vadd.s32 4294967169, %v620_v44  ;;  %v7395_v50 = vadd.s32 4294967169, %v412_v47  ;;  %v723_v51 = vand.u32 2139095040, %v8188_v45  ;;  %v624_v53 = vor.u32 8388608, %v623_v46 }
  0xa1   : > { %v416_v54 = vor.u32 8388608, %v415_v48  ;;  %v720_v62 = vand.u32 2147483647, %v8188_v45 }
  0xa2   : > { %v626_v52 = vadd.s32 1, %v7403_v49  ;;  %v418_v55 = vadd.s32 1, %v7395_v50  ;;  %v724_v56 = vshrl.u32 %v723_v51, 23  ;;  %v8199_v1 = vshll.u32 %v624_v53, 8 }
  0xa3   : > { %v8201_v3 = vshll.u32 %v416_v54, 8 }
  0xa4   : > { %vm627_vm0 = vcmp.gt.s32.totalorder %v626_v52, 0  ;;  %vm419_vm1 = vcmp.gt.s32.totalorder %v418_v55, 0  ;;  %v7407_v59 = vadd.s32 4294967169, %v724_v56 }
  0xa5   : > { %v628_v58 = vsel %vm627_vm0, %v626_v52, 0  ;;  %v420_v61 = vsel %vm419_vm1, %v418_v55, 0  ;;  %vm410_vm0 = vcmp.lt.s32.totalorder %v8181_v38, 0 }
  0xa6   : > { %v630_v60 = vand.u32 31, %v628_v58  ;;  %v629_v0 = vshrl.u32 %v628_v58, 5  ;;  %v422_v2 = vand.u32 31, %v420_v61  ;;  %v8208_v15 = vshrl.u32 %v420_v61, 5 }
  0xa7   : > { %v8210_v16 = vadd.s32 1, %v7407_v59 }
  0xa8   : > { %v631_v4 = vsub.s32 32, %v630_v60  ;;  %v633_v6 = vshll.u32 %v8056_v5, %v630_v60  ;;  %v636_v8 = vshll.u32 %v8057_v7, %v630_v60  ;;  %v639_v10 = vshll.u32 %v8058_v9, %v630_v60 }
  0xa9   : > { %v642_v12 = vshll.u32 %v8059_v11, %v630_v60  ;;  %v645_v14 = vshll.u32 %v8060_v13, %v630_v60  ;;  %vm648_vm2 = vcmp.lt.s32.totalorder %v629_v0, 1  ;;  %vm649_vm3 = vcmp.lt.s32.totalorder %v629_v0, 2 }
  0xaa   : > { %v632_v17 = vshrl.u32 %v8056_v5, %v631_v4  ;;  %v634_v18 = vshrl.u32 %v8057_v7, %v631_v4  ;;  %v637_v19 = vshrl.u32 %v8058_v9, %v631_v4  ;;  %v640_v20 = vshrl.u32 %v8059_v11, %v631_v4 }
  0xab   : > { %v643_v21 = vshrl.u32 %v8060_v13, %v631_v4  ;;  %v646_v23 = vshrl.u32 %v8061_v22, %v631_v4  ;;  %v423_v27 = vsub.s32 32, %v422_v2  ;;  %vm650_vm4 = vcmp.lt.s32.totalorder %v629_v0, 3 }
  0xac   : > { %v635_v24 = vor.u32 %v634_v18, %v633_v6  ;;  %v638_v25 = vor.u32 %v637_v19, %v636_v8  ;;  %v641_v26 = vor.u32 %v640_v20, %v639_v10  ;;  %vm651_vm5 = vcmp.lt.s32.totalorder %v629_v0, 4 }
  0xad   : > { %v644_v28 = vor.u32 %v643_v21, %v642_v12  ;;  %v647_v29 = vor.u32 %v646_v23, %v645_v14  ;;  %v425_v42 = vshll.u32 %v8056_v5, %v422_v2  ;;  %v426_v46 = vshrl.u32 %v8057_v7, %v423_v27 }
  0xae   : > { %v652_v30 = vsel %vm648_vm2, %v632_v17, %v635_v24  ;;  %v653_v31 = vsel %vm651_vm5, %v641_v26, 2102212464  ;;  %v656_v32 = vsel %vm648_vm2, %v635_v24, %v638_v25  ;;  %v660_v33 = vsel %vm648_vm2, %v638_v25, %v641_v26 }
  0xaf   : > { %v654_v35 = vsel %vm650_vm4, %v638_v25, %v653_v31  ;;  %v657_v36 = vsel %vm651_vm5, %v644_v28, 920167782  ;;  %v661_v40 = vsel %vm651_vm5, %v647_v29, 1326507024  ;;  %v428_v47 = vshll.u32 %v8057_v7, %v422_v2 }
  0xb0   : > { %v658_v43 = vsel %vm650_vm4, %v641_v26, %v657_v36  ;;  %v662_v44 = vsel %vm650_vm4, %v644_v28, %v661_v40  ;;  %v655_v48 = vsel %vm649_vm3, %v652_v30, %v654_v35  ;;  %v429_v51 = vshrl.u32 %v8058_v9, %v423_v27 }
  0xb1   : > { %v659_v49 = vsel %vm649_vm3, %v656_v32, %v658_v43  ;;  %v663_v50 = vsel %vm649_vm3, %v660_v33, %v662_v44  ;;  %v427_v56 = vor.u32 %v426_v46, %v425_v42  ;;  %v431_v58 = vshll.u32 %v8058_v9, %v422_v2 }
  0xb2   : > { %v8226_v52 = vmul.u32.u64.low %v8199_v1, %v663_v50  ;;  %v8227_v53 = vmul.u32.u64.high %v8199_v1, %v663_v50, %v8226_v52  ;;  %v8230_v54 = vmul.u32.u64.low %v8199_v1, %v659_v49  ;;  %v8231_v55 = vmul.u32.u64.high %v8199_v1, %v659_v49, %v8230_v54 }
  0xb3   : > { %v430_v57 = vor.u32 %v429_v51, %v428_v47  ;;  %v432_v59 = vshrl.u32 %v8059_v11, %v423_v27  ;;  %v424_v60 = vshrl.u32 %v8056_v5, %v423_v27  ;;  %v434_v61 = vshll.u32 %v8059_v11, %v422_v2 }
  0xb4   : > { %v435_v0 = vshrl.u32 %v8060_v13, %v423_v27  ;;  %v438_v4 = vshrl.u32 %v8061_v22, %v423_v27  ;;  %v671_v6 = vmul.u32 %v8199_v1, %v655_v48  ;;  %v437_v10 = vshll.u32 %v8060_v13, %v422_v2 }
  0xb5   : > { %v433_v8 = vor.u32 %v432_v59, %v431_v58  ;;  %vm440_vm6 = vcmp.lt.s32.totalorder %v8208_v15, 1  ;;  %vm673_vm7 = vc.u32 %v8227_v53, %v8230_v54  ;;  %v674_v12 = vadd.s32 1, %v8231_v55 }
  0xb6   : > { %v436_v14 = vor.u32 %v435_v0, %v434_v61  ;;  %vm441_vm8 = vcmp.lt.s32.totalorder %v8208_v15, 2  ;;  %v439_v17 = vor.u32 %v438_v4, %v437_v10  ;;  %vm442_vm9 = vcmp.lt.s32.totalorder %v8208_v15, 3 }
  0xb7   : > { %vm443_vm10 = vcmp.lt.s32.totalorder %v8208_v15, 4  ;;  %v448_v18 = vsel %vm440_vm6, %v427_v56, %v430_v57  ;;  %v675_v1 = vsel %vm673_vm7, %v674_v12, %v8231_v55  ;;  %v452_v20 = vsel %vm440_vm6, %v430_v57, %v433_v8 }
  0xb8   : > { %v445_v19 = vsel %vm443_vm10, %v433_v8, 2102212464  ;;  %v449_v2 = vsel %vm443_vm10, %v436_v14, 920167782  ;;  %v676_v21 = vadd.s32 %v675_v1, %v671_v6  ;;  %v444_v23 = vsel %vm440_vm6, %v424_v60, %v427_v56 }
  0xb9   : > { %v450_v24 = vsel %vm442_vm9, %v433_v8, %v449_v2  ;;  %v453_v25 = vsel %vm443_vm10, %v439_v17, 1326507024  ;;  %v446_v26 = vsel %vm442_vm9, %v430_v57, %v445_v19  ;;  %vm731_vm11 = vcmp.gt.s32.totalorder %v8210_v16, 0 }
  0xba   : > { %v451_v27 = vsel %vm441_vm8, %v448_v18, %v450_v24  ;;  %v454_v28 = vsel %vm442_vm9, %v436_v14, %v453_v25  ;;  %v677_v29 = vadd.s32 536870912, %v676_v21  ;;  %v447_v40 = vsel %vm441_vm8, %v444_v23, %v446_v26 }
  0xbb   : > { %v455_v30 = vsel %vm441_vm8, %v452_v20, %v454_v28  ;;  %v8256_v31 = vmul.u32.u64.low %v8201_v3, %v451_v27  ;;  %v8257_v32 = vmul.u32.u64.high %v8201_v3, %v451_v27, %v8256_v31  ;;  %v727_v42 = vand.u32 8388607, %v720_v62 }
  0xbc   : > { %v8260_v33 = vmul.u32.u64.low %v8201_v3, %v455_v30  ;;  %v8261_v35 = vmul.u32.u64.high %v8201_v3, %v455_v30, %v8260_v33  ;;  %v678_v36 = vshrl.u32 %v677_v29, 30  ;;  %v732_v43 = vsel %vm731_vm11, %v8210_v16, 0 }
  0xbd   : > { %v466_v46 = vadd.s32 1, %v8257_v32  ;;  %v515_v47 = vand.u32 2139095040, %v8197_v63  ;;  %v463_v48 = vmul.u32 %v8201_v3, %v447_v40  ;;  %v734_v51 = vand.u32 31, %v732_v43 }
  0xbe   : > { %v679_v44 = vshll.u32 %v678_v36, 30  ;;  %vm465_vm12 = vc.u32 %v8261_v35, %v8256_v31  ;;  %v728_v52 = vor.u32 8388608, %v727_v42  ;;  %v702_v57 = vsub.s32 4, %v678_v36 }
  0xbf   : > { %v467_v50 = vsel %vm465_vm12, %v466_v46, %v8257_v32  ;;  %v516_v56 = vshrl.u32 %v515_v47, 23  ;;  %v512_v16 = vand.u32 2147483647, %v8197_v63  ;;  %v735_v60 = vsub.s32 32, %v734_v51 }
  0xc0   : > { %v680_v49 = vsub.s32 %v676_v21, %v679_v44  ;;  %v468_v15 = vadd.s32 %v467_v50, %v463_v48  ;;  %v8283_v0 = vshll.u32 %v728_v52, 8  ;;  %v672_v4 = vadd.s32 %v8230_v54, %v8227_v53 }
  0xc1   : > { %v8287_v8 = vshrl.u32 %v732_v43, 5  ;;  %v8289_v10 = vadd.s32 4294967169, %v516_v56  ;;  %v703_v39 = vsel %vm618_vm14, %v702_v57, %v678_v36  ;;  %v8294_v12 = vadd.s32 %v8256_v31, %v8261_v35 }
  0xc2   : > { %v682_v55 = vsub.s32 0, %v680_v49  ;;  %v469_v58 = vadd.s32 536870912, %v468_v15  ;;  %v8299_v17 = vand.u32 8388607, %v512_v16  ;;  %v737_v53 = vshll.u32 %v8056_v5, %v734_v51 }
  0xc3   : > { %v738_v54 = vshrl.u32 %v8057_v7, %v735_v60  ;;  %v740_v1 = vshll.u32 %v8057_v7, %v734_v51  ;;  %v741_v2 = vshrl.u32 %v8058_v9, %v735_v60  ;;  %v744_v20 = vshrl.u32 %v8059_v11, %v735_v60 }
  0xc4   : > { %v7404_v59 = vmin.u32 %v682_v55, %v680_v49  ;;  %v8281_v61 = vshrl.u32 %v469_v58, 30  ;;  %v747_v21 = vshrl.u32 %v8060_v13, %v735_v60  ;;  %v8311_v23 = vsel %vm8276_vm13, 0, %v703_v39 }
  0xc5   : > { %v736_v24 = vshrl.u32 %v8056_v5, %v735_v60  ;;  %v750_v25 = vshrl.u32 %v8061_v22, %v735_v60  ;;  %v743_v28 = vshll.u32 %v8058_v9, %v734_v51  ;;  %v746_v29 = vshll.u32 %v8059_v11, %v734_v51 }
  0xc6   : > { %v684_v6 = vclz %v7404_v59  ;;  %v471_v14 = vshll.u32 %v8281_v61, 30  ;;  %v739_v32 = vor.u32 %v738_v54, %v737_v53  ;;  %v749_v33 = vshll.u32 %v8060_v13, %v734_v51 }
  0xc7   : > { %v742_v36 = vor.u32 %v741_v2, %v740_v1  ;;  %v745_v40 = vor.u32 %v744_v20, %v743_v28  ;;  %v748_v42 = vor.u32 %v747_v21, %v746_v29  ;;  %v494_v50 = vsub.s32 4, %v8281_v61 }
  0xc8   : > { %v7405_v18 = vadd.s32 4294967294, %v684_v6  ;;  %v8304_v19 = vsub.s32 %v468_v15, %v471_v14  ;;  %v751_v47 = vor.u32 %v750_v25, %v749_v33  ;;  %vm752_vm1 = vcmp.lt.s32.totalorder %v8287_v8, 1 }
  0xc9   : > { %vm753_vm2 = vcmp.lt.s32.totalorder %v8287_v8, 2  ;;  %vm754_vm3 = vcmp.lt.s32.totalorder %v8287_v8, 3  ;;  %vm755_vm4 = vcmp.lt.s32.totalorder %v8287_v8, 4  ;;  %v764_v56 = vsel %vm752_vm1, %v742_v36, %v745_v40 }
  0xca   : > { %vm7406_vm15 = vcmp.lt.s32.totalorder %v7405_v18, 0  ;;  %v474_v27 = vsub.s32 0, %v8304_v19  ;;  %v761_v55 = vsel %vm755_vm4, %v748_v42, 920167782  ;;  %vm8332_vm5 = vcmp.le.f32.partialorder %v408_v41, 0.7853982 }
  0xcb   : > { %v687_v26 = vsel %vm7406_vm15, 0, %v7405_v18  ;;  %v757_v59 = vsel %vm755_vm4, %v745_v40, 2102212464  ;;  %v762_v60 = vsel %vm754_vm3, %v745_v40, %v761_v55  ;;  %v756_v39 = vsel %vm752_vm1, %v736_v24, %v739_v32 }
  0xcc   : > { %v688_v30 = vsub.s32 32, %v687_v26  ;;  %v692_v31 = vsub.s32 4294967266, %v687_v26  ;;  %v7396_v35 = vmin.u32 %v474_v27, %v8304_v19  ;;  %v689_v43 = vshll.u32 %v680_v49, %v687_v26 }
  0xcd   : > { %v760_v49 = vsel %vm752_vm1, %v739_v32, %v742_v36  ;;  %v758_v20 = vsel %vm754_vm3, %v742_v36, %v757_v59  ;;  %v522_v21 = vadd.s32 1, %v8289_v10  ;;  %v232_v32 = vpop.permute.xlu1 %231  ;;  %v495_v10 = vsel %vm410_vm0, %v494_v50, %v8281_v61 }
  0xce   : > { %v690_v44 = vshrl.u32 %v672_v4, %v688_v30  ;;  %v693_v46 = vadd.s32 127, %v692_v31  ;;  %v476_v48 = vclz %v7396_v35  ;;  %v765_v4 = vsel %vm755_vm4, %v751_v47, 1326507024 }
  0xcf   : > { %v766_v14 = vsel %vm754_vm3, %v748_v42, %v765_v4  ;;  %v763_v41 = vsel %vm753_vm2, %v760_v49, %v762_v60  ;;  %v709_v35 = vadd.s32 3, %v8311_v23  ;;  %vm523_vm7 = vcmp.gt.s32.totalorder %v522_v21, 0 }
  0xd0   : > { %v691_v15 = vor.u32 %v690_v44, %v689_v43  ;;  %v694_v51 = vshll.u32 %v693_v46, 23  ;;  %v7397_v52 = vadd.s32 4294967294, %v476_v48  ;;  %v767_v54 = vsel %vm753_vm2, %v764_v56, %v766_v14 }
  0xd1   : > { %v8351_v26 = vmul.u32.u64.low %v8283_v0, %v767_v54  ;;  %v8352_v27 = vmul.u32.u64.high %v8283_v0, %v767_v54, %v8351_v26  ;;  %v8356_v30 = vmul.u32.u64.low %v8283_v0, %v763_v41  ;;  %v8357_v31 = vmul.u32.u64.high %v8283_v0, %v763_v41, %v8356_v30 }
  0xd2   : > { %v695_v57 = vor.u32 4788187, %v694_v51  ;;  %v698_v6 = vcvt.s32.f32 %v691_v15  ;;  %vm7398_vm6 = vcmp.lt.s32.totalorder %v7397_v52, 0  ;;  %v524_v40 = vsel %vm523_vm7, %v522_v21, 0 }
  0xd3   : > { %v479_v53 = vsel %vm7398_vm6, 0, %v7397_v52  ;;  %v8369_v43 = vand.u32 3, %v8311_v23  ;;  %vm777_vm8 = vc.u32 %v8352_v27, %v8356_v30  ;;  %v8374_v44 = vmul.f32 %v8175_v34, %v232_v32 }
  0xd4   : > { %v696_v18 = vand.u32 2147483647, %v695_v57  ;;  %v480_v1 = vsub.s32 32, %v479_v53  ;;  %v484_v2 = vsub.s32 4294967266, %v479_v53  ;;  %v481_v24 = vshll.u32 %v8304_v19, %v479_v53 }
  0xd5   : > { %v497_v8 = vsel %vm8332_vm5, 0, %v495_v10  ;;  %v778_v47 = vadd.s32 1, %v8357_v31  ;;  %v8382_v48 = vand.u32 3, %v709_v35  ;;  %v526_v50 = vand.u32 31, %v524_v40 }
  0xd6   : > { %v699_v25 = vmul.f32 %v698_v6, %v696_v18  ;;  %v482_v28 = vshrl.u32 %v8294_v12, %v480_v1  ;;  %v485_v29 = vadd.s32 127, %v484_v2  ;;  %v759_v12 = vsel %vm753_vm2, %v756_v39, %v758_v20 }
  0xd7   : > { %v775_v23 = vmul.u32 %v8283_v0, %v759_v12  ;;  %v779_v52 = vsel %vm777_vm8, %v778_v47, %v8357_v31  ;;  %v501_v49 = vadd.s32 3, %v497_v8  ;;  %v520_v55 = vor.u32 8388608, %v8299_v17 }
  0xd8   : > { %v700_v33 = vxor.u32 2147483648, %v699_v25  ;;  %v483_v19 = vor.u32 %v482_v28, %v481_v24  ;;  %v486_v36 = vshll.u32 %v485_v29, 23  ;;  %v527_v56 = vsub.s32 32, %v526_v50 }
  0xd9   : > { %v780_v3 = vadd.s32 %v779_v52, %v775_v23  ;;  %v8387_v59 = vand.u32 3, %v497_v8  ;;  %v8389_v60 = vshrl.u32 %v524_v40, 5  ;;  %v529_v4 = vshll.u32 %v8056_v5, %v526_v50 }
  0xda   : > { %v701_v42 = vsel %vm618_vm14, %v700_v33, %v699_v25  ;;  %v487_v46 = vor.u32 4788187, %v486_v36  ;;  %v490_v51 = vcvt.s32.f32 %v483_v19  ;;  %vm715_vm9 = vcmp.eq.s32.totalorder %v8382_v48, 2 }
  0xdb   : > { %v704_v61 = vsel %vm8276_vm13, %v8178_v37, %v701_v42  ;;  %vm4144_vm10 = vcmp.eq.s32.totalorder %v8369_v43, 2  ;;  %v781_v0 = vadd.s32 536870912, %v780_v3  ;;  %v530_v6 = vshrl.u32 %v8057_v7, %v527_v56 }
  0xdc   : > { %7854 = vcosq.f32 %v704_v61  ;;  %v488_v15 = vand.u32 2147483647, %v487_v46  ;;  %v533_v39 = vshrl.u32 %v8058_v9, %v527_v56  ;;  %v535_v14 = vshll.u32 %v8058_v9, %v526_v50 }
  0xdd   : > { %7856 = vsinq.f32 %v704_v61  ;;  %vm712_vm11 = vcmp.eq.s32.totalorder %v8382_v48, 0  ;;  %vm4141_vm12 = vcmp.eq.s32.totalorder %v8369_v43, 0  ;;  %v536_v18 = vshrl.u32 %v8059_v11, %v527_v56 }
  0xde   : > { %v491_v57 = vmul.f32 %v490_v51, %v488_v15  ;;  %v538_v53 = vshll.u32 %v8059_v11, %v526_v50  ;;  %v539_v41 = vshrl.u32 %v8060_v13, %v527_v56  ;;  %vm711_vm13 = vcmp.lt.s32.totalorder %v8382_v48, 2 }
  0xdf   : > { %vm4140_vm14 = vcmp.lt.s32.totalorder %v8369_v43, 2  ;;  %v8404_v54 = vand.u32 3, %v501_v49  ;;  %v8406_v1 = vshrl.u32 %v781_v0, 30  ;;  %v532_v2 = vshll.u32 %v8057_v7, %v526_v50 }
  0xe0   : > { %v492_v17 = vxor.u32 2147483648, %v491_v57  ;;  %v8409_v20 = vshll.u32 %v520_v55, 8  ;;  %vm708_vm15 = vweird.f32 %v8178_v37  ;;  %v531_v25 = vor.u32 %v530_v6, %v529_v4 }
  0xe1   : > { %v537_v24 = vor.u32 %v536_v18, %v535_v14  ;;  %v540_v26 = vor.u32 %v539_v41, %v538_v53  ;;  %v783_v29 = vshll.u32 %v8406_v1, 30  ;;  %v534_v31 = vor.u32 %v533_v39, %v532_v2 }
  0xe2   : > { %v493_v21 = vsel %vm410_vm0, %v492_v17, %v491_v57  ;;  %vm547_vm1 = vcmp.lt.s32.totalorder %v8389_v60, 4  ;;  %v542_v32 = vshrl.u32 %v8061_v22, %v527_v56  ;;  %vm544_vm2 = vcmp.lt.s32.totalorder %v8389_v60, 1 }
  0xe3   : > { %v496_v28 = vsel %vm8332_vm5, %v8181_v38, %v493_v21  ;;  %v553_v33 = vsel %vm547_vm1, %v540_v26, 920167782  ;;  %v8427_v58 = vsub.s32 %v780_v3, %v783_v29  ;;  %vm545_vm0 = vcmp.lt.s32.totalorder %v8389_v60, 2 }
  0xe4   : > { %7858 = vcosq.f32 %v496_v28  ;;  %vm546_vm3 = vcmp.lt.s32.totalorder %v8389_v60, 3  ;;  %v528_v36 = vshrl.u32 %v8056_v5, %v527_v56  ;;  %v541_v12 = vshll.u32 %v8060_v13, %v526_v50 }
  0xe5   : > { %7860 = vsinq.f32 %v496_v28  ;;  %v549_v40 = vsel %vm547_vm1, %v537_v24, 2102212464  ;;  %vm722_vm4 = vcmp.lt.s32.totalorder %v8188_v45, 0  ;;  %v786_v61 = vsub.s32 0, %v8427_v58 }
  0xe6   : > { %v7855_v35 = vpop.eup %7854  ;;  %v552_v46 = vsel %vm544_vm2, %v531_v25, %v534_v31  ;;  %v554_v8 = vsel %vm546_vm3, %v537_v24, %v553_v33  ;;  %vm3938_vm5 = vcmp.eq.s32.totalorder %v8387_v59, 2  ;;  %v543_v50 = vor.u32 %v542_v32, %v541_v12 }
  0xe7   : > { %v7857_v10 = vpop.eup %7856  ;;  %v716_v19 = vxor.u32 2147483648, %v7855_v35  ;;  %v548_v15 = vsel %vm544_vm2, %v528_v36, %v531_v25  ;;  %vm3935_vm6 = vcmp.eq.s32.totalorder %v8387_v59, 0  ;;  %v7408_v49 = vmin.u32 %v786_v61, %v8427_v58 }
  0xe8   : > { %v713_v42 = vxor.u32 2147483648, %v7857_v10  ;;  %v550_v3 = vsel %vm546_vm3, %v534_v31, %v549_v40  ;;  %vm503_vm7 = vcmp.lt.s32.totalorder %v8404_v54, 2  ;;  %vm3934_vm8 = vcmp.lt.s32.totalorder %v8387_v59, 2 }
  0xe9   : > { %v717_v47 = vsel %vm715_vm9, %v716_v19, %v7857_v10  ;;  %v4146_v23 = vsel %vm4144_vm10, %v716_v19, %v7857_v10  ;;  %v555_v57 = vsel %vm545_vm0, %v552_v46, %v554_v8  ;;  %v931_v4 = vand.u32 2139095040, %v8374_v44 }
  0xea   : > { %v714_v51 = vsel %vm712_vm11, %v7855_v35, %v713_v42  ;;  %v4143_v52 = vsel %vm4141_vm12, %v7855_v35, %v713_v42  ;;  %vm500_vm9 = vweird.f32 %v8181_v38  ;;  %v788_v48 = vclz %v7408_v49 }
  0xeb   : > { %v718_v55 = vsel %vm711_vm13, %v714_v51, %v717_v47  ;;  %v4147_v56 = vsel %vm4140_vm14, %v4143_v52, %v4146_v23  ;;  %v556_v43 = vsel %vm544_vm2, %v534_v31, %v537_v24  ;;  %vm504_vm10 = vcmp.eq.s32.totalorder %v8404_v54, 0 }
  0xec   : > { %v719_v0 = vsel %vm708_vm15, nan, %v718_v55  ;;  %v4148_v6 = vsel %vm708_vm15, nan, %v4147_v56  ;;  %v806_v39 = vsub.s32 4, %v8406_v1  ;;  %v551_v37 = vsel %vm545_vm0, %v548_v15, %v550_v3 }
  0xed   : > { %7241 = vst [vmem:[%s8473_s3 + $0x20] sm:$0xff] %v719_v0  ;;  %7274 = vst [vmem:[%s8473_s3 + $0x28] sm:$0xff] %v4148_v6  ;;  %v557_v14 = vsel %vm547_vm1, %v543_v50, 1326507024  ;;  %v7409_v17 = vadd.s32 4294967294, %v788_v48  ;;  %v8486_v53 = vmul.u32.u64.low %v8409_v20, %v555_v57  ;;  %v8487_v41 = vmul.u32.u64.high %v8409_v20, %v555_v57, %v8486_v53 }
  0xee   : > { %v558_v18 = vsel %vm546_vm3, %v540_v26, %v557_v14  ;;  %v7859_v2 = vpop.eup %7858  ;;  %vm507_vm11 = vcmp.eq.s32.totalorder %v8404_v54, 2  ;;  %v776_v21 = vadd.s32 %v8356_v30, %v8352_v27  ;;  %v932_v24 = vshrl.u32 %v931_v4, 23  ;;  %v227_v4 = vpop.permute.xlu0 %226 }
  0xef   : > { %v559_v25 = vsel %vm545_vm0, %v556_v43, %v558_v18  ;;  %v7861_v28 = vpop.eup %7860  ;;  %v508_v29 = vxor.u32 2147483648, %v7859_v2  ;;  %vm7410_vm12 = vcmp.lt.s32.totalorder %v7409_v17, 0  ;;  %v807_v35 = vsel %vm722_vm4, %v806_v39, %v8406_v1 }
  0xf0   : > { %v8496_v26 = vmul.u32.u64.low %v8409_v20, %v559_v25  ;;  %v8497_v31 = vmul.u32.u64.high %v8409_v20, %v559_v25, %v8496_v26  ;;  %v505_v32 = vxor.u32 2147483648, %v7861_v28  ;;  %v791_v33 = vsel %vm7410_vm12, 0, %v7409_v17 }
  0xf1   : > { %v567_v10 = vmul.u32 %v8409_v20, %v551_v37  ;;  %v509_v27 = vsel %vm507_vm11, %v508_v29, %v7861_v28  ;;  %v3940_v30 = vsel %vm3938_vm5, %v508_v29, %v7861_v28  ;;  %v792_v60 = vsub.s32 32, %v791_v33 }
  0xf2   : > { %v7415_v19 = vadd.s32 4294967169, %v932_v24  ;;  %v506_v36 = vsel %vm504_vm10, %v7859_v2, %v505_v32  ;;  %v3937_v12 = vsel %vm3935_vm6, %v7859_v2, %v505_v32  ;;  %v796_v40 = vsub.s32 4294967266, %v791_v33 }
  0xf3   : > { %v570_v42 = vadd.s32 1, %v8487_v41  ;;  %v510_v1 = vsel %vm503_vm7, %v506_v36, %v509_v27  ;;  %v3941_v20 = vsel %vm3934_vm8, %v3937_v12, %v3940_v30  ;;  %v793_v61 = vshll.u32 %v8427_v58, %v791_v33 }
  0xf4   : > { %v794_v46 = vshrl.u32 %v776_v21, %v792_v60  ;;  %v511_v8 = vsel %vm500_vm9, nan, %v510_v1  ;;  %v3942_v47 = vsel %vm500_vm9, nan, %v3941_v20  ;;  %v797_v23 = vadd.s32 127, %v796_v40 }
  0xf5   : > { %vm569_vm13 = vc.u32 %v8497_v31, %v8486_v53  ;;  %7239 = vst [vmem:[%s8473_s3] sm:$0xff] %v511_v8  ;;  %7272 = vst [vmem:[%s8473_s3 + $0x8] sm:$0xff] %v3942_v47  ;;  %vm8525_vm14 = vcmp.le.f32.partialorder %v720_v62, 0.7853982  ;;  %v928_v58 = vand.u32 2147483647, %v8374_v44  ;;  %v938_v50 = vadd.s32 1, %v7415_v19 }
  0xf6   : > { %v571_v54 = vsel %vm569_vm13, %v570_v42, %v8487_v41  ;;  %v795_v15 = vor.u32 %v794_v46, %v793_v61  ;;  %v798_v38 = vshll.u32 %v797_v23, 23  ;;  %v809_v51 = vsel %vm8525_vm14, 0, %v807_v35 }
  0xf7   : > { %v572_v52 = vadd.s32 %v571_v54, %v567_v10  ;;  %vm939_vm15 = vcmp.gt.s32.totalorder %v938_v50, 0  ;;  %v813_v56 = vadd.s32 3, %v809_v51  ;;  %v935_v62 = vand.u32 8388607, %v928_v58 }
  0xf8   : > { %v799_v49 = vor.u32 4788187, %v798_v38  ;;  %v940_v55 = vsel %vm939_vm15, %v938_v50, 0  ;;  %v802_v6 = vcvt.s32.f32 %v795_v15  ;;  %v8535_v37 = vand.u32 3, %v809_v51 }
  0xf9   : > { %v573_v3 = vadd.s32 536870912, %v572_v52  ;;  %v942_v57 = vand.u32 31, %v940_v55  ;;  %vm514_vm1 = vcmp.lt.s32.totalorder %v8197_v63, 0  ;;  %v8539_v17 = vmul.f32 %v8175_v34, %v227_v4 }
  0xfa   : > { %v800_v0 = vand.u32 2147483647, %v799_v49  ;;  %v8541_v18 = vand.u32 3, %v813_v56  ;;  %v936_v41 = vor.u32 8388608, %v935_v62  ;;  %v941_v2 = vshrl.u32 %v940_v55, 5 }
  0xfb   : > { %v574_v48 = vshrl.u32 %v573_v3, 30  ;;  %v943_v43 = vsub.s32 32, %v942_v57  ;;  %v945_v26 = vshll.u32 %v8056_v5, %v942_v57  ;;  %v948_v32 = vshll.u32 %v8057_v7, %v942_v57 }
  0xfc   : > { %v803_v39 = vmul.f32 %v802_v6, %v800_v0  ;;  %v951_v33 = vshll.u32 %v8058_v9, %v942_v57  ;;  %vm8556_vm2 = vcmp.le.f32.partialorder %v512_v16, 0.7853982  ;;  %v954_v19 = vshll.u32 %v8059_v11, %v942_v57 }
  0xfd   : > { %v575_v14 = vshll.u32 %v574_v48, 30  ;;  %v946_v21 = vshrl.u32 %v8057_v7, %v943_v43  ;;  %v949_v28 = vshrl.u32 %v8058_v9, %v943_v43  ;;  %v952_v29 = vshrl.u32 %v8059_v11, %v943_v43 }
  0xfe   : > { %v804_v25 = vxor.u32 2147483648, %v803_v39  ;;  %v955_v35 = vshrl.u32 %v8060_v13, %v943_v43  ;;  %v598_v60 = vsub.s32 4, %v574_v48  ;;  %v957_v40 = vshll.u32 %v8060_v13, %v942_v57 }
  0xff   : > { %v8544_v24 = vsub.s32 %v572_v52, %v575_v14  ;;  %v947_v12 = vor.u32 %v946_v21, %v945_v26  ;;  %v958_v42 = vshrl.u32 %v8061_v22, %v943_v43  ;;  %v950_v1 = vor.u32 %v949_v28, %v948_v32 }
 0x100   : > { %v805_v10 = vsel %vm722_vm4, %v804_v25, %v803_v39  ;;  %v953_v20 = vor.u32 %v952_v29, %v951_v33  ;;  %v568_v61 = vadd.s32 %v8486_v53, %v8497_v31  ;;  %v956_v46 = vor.u32 %v955_v35, %v954_v19 }
 0x101   : > { %v578_v30 = vsub.s32 0, %v8544_v24  ;;  %v808_v36 = vsel %vm8525_vm14, %v8188_v45, %v805_v10  ;;  %v959_v8 = vor.u32 %v958_v42, %v957_v40  ;;  %v944_v23 = vshrl.u32 %v8056_v5, %v943_v43 }
 0x102   : > { %7862 = vcosq.f32 %v808_v36  ;;  %v8571_v59 = vshll.u32 %v936_v41, 8  ;;  %v827_v54 = vand.u32 2139095040, %v8539_v17  ;;  %v599_v50 = vsel %vm514_vm1, %v598_v60, %v574_v48 }
 0x103   : > { %v7400_v16 = vmin.u32 %v578_v30, %v8544_v24  ;;  %7864 = vsinq.f32 %v808_v36  ;;  %vm960_vm0 = vcmp.lt.s32.totalorder %v941_v2, 1  ;;  %vm962_vm3 = vcmp.lt.s32.totalorder %v941_v2, 3 }
 0x104   : > { %vm963_vm4 = vcmp.lt.s32.totalorder %v941_v2, 4  ;;  %vm819_vm5 = vcmp.eq.s32.totalorder %v8541_v18, 2  ;;  %v964_v38 = vsel %vm960_vm0, %v944_v23, %v947_v12  ;;  %v968_v31 = vsel %vm960_vm0, %v947_v12, %v950_v1 }
 0x105   : > { %v580_v47 = vclz %v7400_v16  ;;  %v965_v53 = vsel %vm963_vm4, %v953_v20, 2102212464  ;;  %vm816_vm6 = vcmp.eq.s32.totalorder %v8541_v18, 0  ;;  %vm4244_vm7 = vcmp.eq.s32.totalorder %v8535_v37, 0 }
 0x106   : > { %v966_v51 = vsel %vm962_vm3, %v950_v1, %v965_v53  ;;  %v969_v52 = vsel %vm963_vm4, %v956_v46, 920167782  ;;  %v972_v49 = vsel %vm960_vm0, %v950_v1, %v953_v20  ;;  %v973_v3 = vsel %vm963_vm4, %v959_v8, 1326507024 }
 0x107   : > { %v7401_v15 = vadd.s32 4294967294, %v580_v47  ;;  %vm815_vm8 = vcmp.lt.s32.totalorder %v8541_v18, 2  ;;  %vm4243_vm9 = vcmp.lt.s32.totalorder %v8535_v37, 2  ;;  %vm961_vm11 = vcmp.lt.s32.totalorder %v941_v2, 2 }
 0x108   : > { %v970_v55 = vsel %vm962_vm3, %v953_v20, %v969_v52  ;;  %v974_v56 = vsel %vm962_vm3, %v956_v46, %v973_v3  ;;  %vm812_vm12 = vweird.f32 %v8188_v45  ;;  %v601_v57 = vsel %vm8556_vm2, 0, %v599_v50 }
 0x109   : > { %vm7402_vm10 = vcmp.lt.s32.totalorder %v7401_v15, 0  ;;  %v971_v4 = vsel %vm961_vm11, %v968_v31, %v970_v55  ;;  %v975_v0 = vsel %vm961_vm11, %v972_v49, %v974_v56  ;;  %v967_v43 = vsel %vm961_vm11, %v964_v38, %v966_v51 }
 0x10a   : > { %v583_v62 = vsel %vm7402_vm10, 0, %v7401_v15  ;;  %v828_v39 = vshrl.u32 %v827_v54, 23  ;;  %v8588_v14 = vmul.u32.u64.low %v8571_v59, %v975_v0  ;;  %v8589_v41 = vmul.u32.u64.high %v8571_v59, %v975_v0, %v8588_v14  ;;  %v242_v15 = vpop.permute.xlu1 %241 }
 0x10b   : > { %v584_v6 = vsub.s32 32, %v583_v62  ;;  %v588_v48 = vsub.s32 4294967266, %v583_v62  ;;  %v8592_v21 = vmul.u32.u64.low %v8571_v59, %v971_v4  ;;  %v8593_v2 = vmul.u32.u64.high %v8571_v59, %v971_v4, %v8592_v21 }
 0x10c   : > { %v7863_v25 = vpop.eup %7862  ;;  %v585_v28 = vshll.u32 %v8544_v24, %v583_v62  ;;  %v7411_v32 = vadd.s32 4294967169, %v828_v39  ;;  %vm4247_vm13 = vcmp.eq.s32.totalorder %v8535_v37, 2  ;;  %v605_v10 = vadd.s32 3, %v601_v57 }
 0x10d   : > { %v586_v29 = vshrl.u32 %v568_v61, %v584_v6  ;;  %v589_v26 = vadd.s32 127, %v588_v48  ;;  %v7865_v33 = vpop.eup %7864  ;;  %v820_v35 = vxor.u32 2147483648, %v7863_v25  ;;  %v824_v30 = vand.u32 2147483647, %v8539_v17 }
 0x10e   : > { %v817_v60 = vxor.u32 2147483648, %v7865_v33  ;;  %v834_v12 = vadd.s32 1, %v7411_v32  ;;  %v983_v24 = vmul.u32 %v8571_v59, %v967_v43  ;;  %vm985_vm14 = vc.u32 %v8589_v41, %v8592_v21 }
 0x10f   : > { %v587_v19 = vor.u32 %v586_v29, %v585_v28  ;;  %v590_v36 = vshll.u32 %v589_v26, 23  ;;  %v821_v40 = vsel %vm819_vm5, %v820_v35, %v7865_v33  ;;  %v4249_v42 = vsel %vm4247_vm13, %v820_v35, %v7865_v33 }
 0x110   : > { %v818_v16 = vsel %vm816_vm6, %v7863_v25, %v817_v60  ;;  %v4246_v1 = vsel %vm4244_vm7, %v7863_v25, %v817_v60  ;;  %v986_v47 = vadd.s32 1, %v8593_v2  ;;  %vm835_vm15 = vcmp.gt.s32.totalorder %v834_v12, 0 }
 0x111   : > { %v591_v20 = vor.u32 4788187, %v590_v36  ;;  %v594_v61 = vcvt.s32.f32 %v587_v19  ;;  %v822_v46 = vsel %vm815_vm8, %v818_v16, %v821_v40  ;;  %v4250_v8 = vsel %vm4243_vm9, %v4246_v1, %v4249_v42 }
 0x112   : > { %v823_v23 = vsel %vm812_vm12, nan, %v822_v46  ;;  %v4251_v59 = vsel %vm812_vm12, nan, %v4250_v8  ;;  %v836_v50 = vsel %vm835_vm15, %v834_v12, 0  ;;  %v987_v37 = vsel %vm985_vm14, %v986_v47, %v8593_v2 }
 0x113   : > { %v592_v54 = vand.u32 2147483647, %v591_v20  ;;  %7242 = vst [vmem:[%s8473_s3 + $0x30] sm:$0xff] %v823_v23  ;;  %7275 = vst [vmem:[%s8473_s3 + $0x38] sm:$0xff] %v4251_v59  ;;  %v838_v18 = vand.u32 31, %v836_v50  ;;  %v988_v53 = vadd.s32 %v987_v37, %v983_v24  ;;  %v8626_v45 = vmul.f32 %v8175_v34, %v242_v15 }
 0x114   : > { %v831_v31 = vand.u32 8388607, %v824_v30  ;;  %v8628_v49 = vand.u32 3, %v605_v10  ;;  %v8630_v3 = vand.u32 3, %v601_v57  ;;  %v8632_v56 = vshrl.u32 %v836_v50, 5 }
 0x115   : > { %v595_v38 = vmul.f32 %v594_v61, %v592_v54  ;;  %v839_v51 = vsub.s32 32, %v838_v18  ;;  %v989_v55 = vadd.s32 536870912, %v988_v53  ;;  %v841_v39 = vshll.u32 %v8056_v5, %v838_v18 }
 0x116   : > { %v850_v14 = vshll.u32 %v8059_v11, %v838_v18  ;;  %v853_v2 = vshll.u32 %v8060_v13, %v838_v18  ;;  %v844_v28 = vshll.u32 %v8057_v7, %v838_v18  ;;  %v847_v29 = vshll.u32 %v8058_v9, %v838_v18 }
 0x117   : > { %v596_v52 = vxor.u32 2147483648, %v595_v38  ;;  %v842_v62 = vshrl.u32 %v8057_v7, %v839_v51  ;;  %v845_v4 = vshrl.u32 %v8058_v9, %v839_v51  ;;  %v848_v0 = vshrl.u32 %v8059_v11, %v839_v51 }
 0x118   : > { %v8639_v48 = vshrl.u32 %v989_v55, 30  ;;  %v851_v34 = vshrl.u32 %v8060_v13, %v839_v51  ;;  %v854_v43 = vshrl.u32 %v8061_v22, %v839_v51  ;;  %v1139_v33 = vand.u32 2139095040, %v8626_v45 }
 0x119   : > { %v597_v6 = vsel %vm514_vm1, %v596_v52, %v595_v38  ;;  %v843_v35 = vor.u32 %v842_v62, %v841_v39  ;;  %v846_v10 = vor.u32 %v845_v4, %v844_v28  ;;  %v849_v60 = vor.u32 %v848_v0, %v847_v29 }
 0x11a   : > { %v600_v57 = vsel %vm8556_vm2, %v8197_v63, %v597_v6  ;;  %v991_v25 = vshll.u32 %v8639_v48, 30  ;;  %v852_v26 = vor.u32 %v851_v34, %v850_v14  ;;  %v855_v32 = vor.u32 %v854_v43, %v853_v2 }
 0x11b   : > { %7866 = vcosq.f32 %v600_v57  ;;  %vm4041_vm1 = vcmp.eq.s32.totalorder %v8630_v3, 2  ;;  %v832_v36 = vor.u32 8388608, %v831_v31  ;;  %vm859_vm2 = vcmp.lt.s32.totalorder %v8632_v56, 4 }
 0x11c   : > { %7868 = vsinq.f32 %v600_v57  ;;  %v8653_v27 = vsub.s32 %v988_v53, %v991_v25  ;;  %vm4038_vm0 = vcmp.eq.s32.totalorder %v8630_v3, 0  ;;  %vm930_vm3 = vcmp.lt.s32.totalorder %v8374_v44, 0 }
 0x11d   : > { %vm856_vm4 = vcmp.lt.s32.totalorder %v8632_v56, 1  ;;  %v865_v12 = vsel %vm859_vm2, %v852_v26, 920167782  ;;  %v869_v40 = vsel %vm859_vm2, %v855_v32, 1326507024  ;;  %v1140_v42 = vshrl.u32 %v1139_v33, 23 }
 0x11e   : > { %v994_v19 = vsub.s32 0, %v8653_v27  ;;  %vm607_vm5 = vcmp.lt.s32.totalorder %v8628_v49, 2  ;;  %vm4037_vm6 = vcmp.lt.s32.totalorder %v8630_v3, 2  ;;  %vm858_vm7 = vcmp.lt.s32.totalorder %v8632_v56, 3 }
 0x11f   : > { %v864_v16 = vsel %vm856_vm4, %v843_v35, %v846_v10  ;;  %v868_v1 = vsel %vm856_vm4, %v846_v10, %v849_v60  ;;  %vm604_vm8 = vweird.f32 %v8197_v63  ;;  %vm608_vm9 = vcmp.eq.s32.totalorder %v8628_v49, 0 }
 0x120   : > { %v7416_v24 = vmin.u32 %v994_v19, %v8653_v27  ;;  %vm611_vm10 = vcmp.eq.s32.totalorder %v8628_v49, 2  ;;  %v866_v20 = vsel %vm858_vm7, %v849_v60, %v865_v12  ;;  %v870_v61 = vsel %vm858_vm7, %v852_v26, %v869_v40  ;;  %v237_v19 = vpop.permute.xlu0 %236 }
 0x121   : > { %v840_v8 = vshrl.u32 %v8056_v5, %v839_v51  ;;  %vm857_vm11 = vcmp.lt.s32.totalorder %v8632_v56, 2  ;;  %v872_v47 = vshll.u32 %v832_v36, 8  ;;  %v861_v23 = vsel %vm859_vm2, %v849_v60, 2102212464 }
 0x122   : > { %v996_v46 = vclz %v7416_v24  ;;  %v867_v59 = vsel %vm857_vm11, %v864_v16, %v866_v20  ;;  %v871_v54 = vsel %vm857_vm11, %v868_v1, %v870_v61  ;;  %v7423_v50 = vadd.s32 4294967169, %v1140_v42 }
 0x123   : > { %v1014_v18 = vsub.s32 4, %v8639_v48  ;;  %v8689_v38 = vmul.u32.u64.low %v872_v47, %v871_v54  ;;  %v8690_v53 = vmul.u32.u64.high %v872_v47, %v871_v54, %v8689_v38  ;;  %v984_v52 = vadd.s32 %v8592_v21, %v8589_v41 }
 0x124   : > { %v7417_v37 = vadd.s32 4294967294, %v996_v46  ;;  %v8694_v55 = vmul.u32.u64.low %v872_v47, %v867_v59  ;;  %v8695_v62 = vmul.u32.u64.high %v872_v47, %v867_v59, %v8694_v55  ;;  %v860_v0 = vsel %vm856_vm4, %v840_v8, %v843_v35 }
 0x125   : > { %v7867_v15 = vpop.eup %7866  ;;  %v862_v6 = vsel %vm858_vm7, %v846_v10, %v861_v23  ;;  %v1146_v21 = vadd.s32 1, %v7423_v50  ;;  %v1015_v2 = vsel %vm930_vm3, %v1014_v18, %v8639_v48  ;;  %vm8731_vm15 = vcmp.le.f32.partialorder %v928_v58, 0.7853982  ;;  %v8742_v58 = vld [vmem:[%s11562_s1] ss:$0 sm:$0xff] }
 0x126   : > { %v7869_v31 = vpop.eup %7868  ;;  %v612_v51 = vxor.u32 2147483648, %v7867_v15  ;;  %vm7418_vm12 = vcmp.lt.s32.totalorder %v7417_v37, 0  ;;  %v863_v26 = vsel %vm857_vm11, %v860_v0, %v862_v6  ;;  %vm881_vm13 = vc.u32 %v8690_v53, %v8694_v55 }
 0x127   : > { %v609_v4 = vxor.u32 2147483648, %v7869_v31  ;;  %v999_v41 = vsel %vm7418_vm12, 0, %v7417_v37  ;;  %v882_v48 = vadd.s32 1, %v8695_v62  ;;  %vm1147_vm14 = vcmp.gt.s32.totalorder %v1146_v21, 0 }
 0x128   : > { %v613_v34 = vsel %vm611_vm10, %v612_v51, %v7869_v31  ;;  %v4043_v43 = vsel %vm4041_vm1, %v612_v51, %v7869_v31  ;;  %v1000_v14 = vsub.s32 32, %v999_v41  ;;  %v1004_v29 = vsub.s32 4294967266, %v999_v41 }
 0x129   : > { %v610_v57 = vsel %vm608_vm9, %v7867_v15, %v609_v4  ;;  %v4040_v39 = vsel %vm4038_vm0, %v7867_v15, %v609_v4  ;;  %v1001_v49 = vshll.u32 %v8653_v27, %v999_v41  ;;  %v879_v63 = vmul.u32 %v872_v47, %v863_v26 }
 0x12a   : > { %v614_v25 = vsel %vm607_vm5, %v610_v57, %v613_v34  ;;  %v4044_v28 = vsel %vm4037_vm6, %v4040_v39, %v4043_v43  ;;  %v1002_v35 = vshrl.u32 %v984_v52, %v1000_v14  ;;  %v1005_v3 = vadd.s32 127, %v1004_v29 }
 0x12b   : > { %v615_v32 = vsel %vm604_vm8, nan, %v614_v25  ;;  %v4045_v33 = vsel %vm604_vm8, nan, %v4044_v28  ;;  %v1136_v10 = vand.u32 2147483647, %v8626_v45  ;;  %v1148_v60 = vsel %vm1147_vm14, %v1146_v21, 0 }
 0x12c   : > { %7240 = vst [vmem:[%s8473_s3 + $0x10] sm:$0xff] %v615_v32  ;;  %7273 = vst [vmem:[%s8473_s3 + $0x18] sm:$0xff] %v4045_v33  ;;  %v1003_v36 = vor.u32 %v1002_v35, %v1001_v49  ;;  %v1006_v12 = vshll.u32 %v1005_v3, 23  ;;  %v883_v40 = vsel %vm881_vm13, %v882_v48, %v8695_v62  ;;  %v1150_v27 = vand.u32 31, %v1148_v60 }
 0x12d   : > { %v1017_v42 = vsel %vm8731_vm15, 0, %v1015_v2  ;;  %v884_v24 = vadd.s32 %v883_v40, %v879_v63  ;;  %v8745_v20 = vmul.f32 %v8742_v58, %v237_v19  ;;  %v1143_v23 = vand.u32 8388607, %v1136_v10 }
 0x12e   : > { %v1007_v16 = vor.u32 4788187, %v1006_v12  ;;  %v1151_v1 = vsub.s32 32, %v1150_v27  ;;  %v1010_v8 = vcvt.s32.f32 %v1003_v36  ;;  %v1021_v47 = vadd.s32 3, %v1017_v42 }
 0x12f   : > { %v885_v61 = vadd.s32 536870912, %v884_v24  ;;  %v1162_v38 = vshll.u32 %v8059_v11, %v1150_v27  ;;  %v1035_v31 = vand.u32 2139095040, %v8745_v20  ;;  %v8758_v52 = vshrl.u32 %v1148_v60, 5 }
 0x130   : > { %v1008_v46 = vand.u32 2147483647, %v1007_v16  ;;  %v1154_v54 = vshrl.u32 %v8057_v7, %v1151_v1  ;;  %v1157_v50 = vshrl.u32 %v8058_v9, %v1151_v1  ;;  %v1163_v15 = vshrl.u32 %v8060_v13, %v1151_v1 }
 0x131   : > { %v8749_v59 = vshrl.u32 %v885_v61, 30  ;;  %v1160_v18 = vshrl.u32 %v8059_v11, %v1151_v1  ;;  %v1153_v62 = vshll.u32 %v8056_v5, %v1150_v27  ;;  %v1156_v4 = vshll.u32 %v8057_v7, %v1150_v27 }
 0x132   : > { %v1011_v37 = vmul.f32 %v1010_v8, %v1008_v46  ;;  %v1159_v6 = vshll.u32 %v8058_v9, %v1150_v27  ;;  %v1164_v34 = vor.u32 %v1163_v15, %v1162_v38  ;;  %v1166_v43 = vshrl.u32 %v8061_v22, %v1151_v1 }
 0x133   : > { %v887_v51 = vshll.u32 %v8749_v59, 30  ;;  %v8764_v41 = vand.u32 3, %v1017_v42  ;;  %v1155_v57 = vor.u32 %v1154_v54, %v1153_v62  ;;  %v1158_v39 = vor.u32 %v1157_v50, %v1156_v4 }
 0x134   : > { %v1012_v0 = vxor.u32 2147483648, %v1011_v37  ;;  %v1144_v2 = vor.u32 8388608, %v1143_v23  ;;  %v1161_v25 = vor.u32 %v1160_v18, %v1159_v6  ;;  %v1165_v28 = vshll.u32 %v8060_v13, %v1150_v27 }
 0x135   : > { %v8766_v21 = vsub.s32 %v884_v24, %v887_v51  ;;  %vm1171_vm1 = vcmp.lt.s32.totalorder %v8758_v52, 4  ;;  %v1036_v32 = vshrl.u32 %v1035_v31, 23  ;;  %vm826_vm2 = vcmp.lt.s32.totalorder %v8539_v17, 0 }
 0x136   : > { %v1013_v14 = vsel %vm930_vm3, %v1012_v0, %v1011_v37  ;;  %v1167_v33 = vor.u32 %v1166_v43, %v1165_v28  ;;  %vm1168_vm0 = vcmp.lt.s32.totalorder %v8758_v52, 1  ;;  %v1177_v35 = vsel %vm1171_vm1, %v1164_v34, 920167782 }
 0x137   : > { %v1016_v29 = vsel %vm8731_vm15, %v8374_v44, %v1013_v14  ;;  %v890_v26 = vsub.s32 0, %v8766_v21  ;;  %vm1170_vm3 = vcmp.lt.s32.totalorder %v8758_v52, 3  ;;  %v1176_v3 = vsel %vm1168_vm0, %v1155_v57, %v1158_v39 }
 0x138   : > { %7870 = vcosq.f32 %v1016_v29  ;;  %v1022_v48 = vand.u32 3, %v1021_v47  ;;  %v1152_v56 = vshrl.u32 %v8056_v5, %v1151_v1  ;;  %v1178_v63 = vsel %vm1170_vm3, %v1161_v25, %v1177_v35 }
 0x139   : > { %7872 = vsinq.f32 %v1016_v29  ;;  %v7412_v49 = vmin.u32 %v890_v26, %v8766_v21  ;;  %v8787_v60 = vshll.u32 %v1144_v2, 8  ;;  %vm8791_vm4 = vcmp.le.f32.partialorder %v824_v30, 0.7853982 }
 0x13a   : > { %v910_v12 = vsub.s32 4, %v8749_v59  ;;  %vm1169_vm5 = vcmp.lt.s32.totalorder %v8758_v52, 2  ;;  %v1180_v40 = vsel %vm1168_vm0, %v1158_v39, %v1161_v25  ;;  %vm4453_vm6 = vcmp.eq.s32.totalorder %v8764_v41, 2 }
 0x13b   : > { %v892_v36 = vclz %v7412_v49  ;;  %v1173_v27 = vsel %vm1171_vm1, %v1161_v25, 2102212464  ;;  %v1179_v42 = vsel %vm1169_vm5, %v1176_v3, %v1178_v63  ;;  %v1181_v30 = vsel %vm1171_vm1, %v1167_v33, 1326507024 }
 0x13c   : > { %v7419_v24 = vadd.s32 4294967169, %v1036_v32  ;;  %vm4450_vm7 = vcmp.eq.s32.totalorder %v8764_v41, 0  ;;  %v1182_v1 = vsel %vm1170_vm3, %v1164_v34, %v1181_v30  ;;  %vm1023_vm8 = vcmp.lt.s32.totalorder %v1022_v48, 2 }
 0x13d   : > { %v7413_v16 = vadd.s32 4294967294, %v892_v36  ;;  %v8810_v61 = vmul.u32.u64.low %v8787_v60, %v1179_v42  ;;  %v8811_v46 = vmul.u32.u64.high %v8787_v60, %v1179_v42, %v8810_v61  ;;  %vm4449_vm9 = vcmp.lt.s32.totalorder %v8764_v41, 2 }
 0x13e   : > { %v1172_v8 = vsel %vm1168_vm0, %v1152_v56, %v1155_v57  ;;  %v1183_v47 = vsel %vm1169_vm5, %v1180_v40, %v1182_v1  ;;  %v1042_v23 = vadd.s32 1, %v7419_v24  ;;  %vm1020_vm10 = vweird.f32 %v8374_v44 }
 0x13f   : > { %vm7414_vm11 = vcmp.lt.s32.totalorder %v7413_v16, 0  ;;  %v1174_v54 = vsel %vm1170_vm3, %v1158_v39, %v1173_v27  ;;  %v8823_v50 = vmul.u32.u64.low %v8787_v60, %v1183_v47  ;;  %v8824_v15 = vmul.u32.u64.high %v8787_v60, %v1183_v47, %v8823_v50 }
 0x140   : > { %vm1024_vm12 = vcmp.eq.s32.totalorder %v1022_v48, 0  ;;  %vm1027_vm13 = vcmp.eq.s32.totalorder %v1022_v48, 2  ;;  %v895_v37 = vsel %vm7414_vm11, 0, %v7413_v16  ;;  %vm1043_vm14 = vcmp.gt.s32.totalorder %v1042_v23, 0 }
 0x141   : > { %v880_v18 = vadd.s32 %v8694_v55, %v8690_v53  ;;  %v896_v38 = vsub.s32 32, %v895_v37  ;;  %v900_v31 = vsub.s32 4294967266, %v895_v37  ;;  %v911_v51 = vsel %vm826_vm2, %v910_v12, %v8749_v59 }
 0x142   : > { %v7871_v62 = vpop.eup %7870  ;;  %v1175_v4 = vsel %vm1169_vm5, %v1172_v8, %v1174_v54  ;;  %v1194_v0 = vadd.s32 1, %v8811_v46  ;;  %v1032_v6 = vand.u32 2147483647, %v8745_v20  ;;  %v1044_v34 = vsel %vm1043_vm14, %v1042_v23, 0 }
 0x143   : > { %v7873_v43 = vpop.eup %7872  ;;  %v1028_v57 = vxor.u32 2147483648, %v7871_v62  ;;  %v897_v39 = vshll.u32 %v8766_v21, %v895_v37  ;;  %v898_v53 = vshrl.u32 %v880_v18, %v896_v38  ;;  %v901_v55 = vadd.s32 127, %v900_v31 }
 0x144   : > { %v1025_v14 = vxor.u32 2147483648, %v7873_v43  ;;  %v913_v2 = vsel %vm8791_vm4, 0, %v911_v51  ;;  %vm1193_vm15 = vc.u32 %v8824_v15, %v8810_v61  ;;  %v1046_v59 = vand.u32 31, %v1044_v34 }
 0x145   : > { %v1029_v52 = vsel %vm1027_vm13, %v1028_v57, %v7873_v43  ;;  %v4455_v25 = vsel %vm4453_vm6, %v1028_v57, %v7873_v43  ;;  %v899_v28 = vor.u32 %v898_v53, %v897_v39  ;;  %v902_v29 = vshll.u32 %v901_v55, 23 }
 0x146   : > { %v1026_v21 = vsel %vm1024_vm12, %v7871_v62, %v1025_v14  ;;  %v4452_v26 = vsel %vm4450_vm7, %v7871_v62, %v1025_v14  ;;  %v1191_v32 = vmul.u32 %v8787_v60, %v1175_v4  ;;  %v1195_v33 = vsel %vm1193_vm15, %v1194_v0, %v8811_v46  ;;  %v252_v62 = vpop.permute.xlu1 %251 }
 0x147   : > { %v1030_v35 = vsel %vm1023_vm8, %v1026_v21, %v1029_v52  ;;  %v4456_v49 = vsel %vm4449_vm9, %v4452_v26, %v4455_v25  ;;  %v903_v3 = vor.u32 4788187, %v902_v29  ;;  %v1047_v56 = vsub.s32 32, %v1046_v59 }
 0x148   : > { %v1031_v63 = vsel %vm1020_vm10, nan, %v1030_v35  ;;  %v4457_v36 = vsel %vm1020_vm10, nan, %v4456_v49  ;;  %v1196_v12 = vadd.s32 %v1195_v33, %v1191_v32  ;;  %v906_v60 = vcvt.s32.f32 %v899_v28 }
 0x149   : > { %7244 = vst [vmem:[%s8473_s3 + $0x50] sm:$0xff] %v1031_v63  ;;  %7277 = vst [vmem:[%s8473_s3 + $0x58] sm:$0xff] %v4457_v36  ;;  %v904_v40 = vand.u32 2147483647, %v903_v3  ;;  %v917_v27 = vadd.s32 3, %v913_v2  ;;  %v8857_v42 = vand.u32 3, %v913_v2  ;;  %v1056_v16 = vshrl.u32 %v8059_v11, %v1047_v56 }
 0x14a   : > { %v1197_v48 = vadd.s32 536870912, %v1196_v12  ;;  %v1039_v41 = vand.u32 8388607, %v1032_v6  ;;  %v1045_v24 = vshrl.u32 %v1044_v34, 5  ;;  %v1059_v1 = vshrl.u32 %v8060_v13, %v1047_v56 }
 0x14b   : > { %v907_v30 = vmul.f32 %v906_v60, %v904_v40  ;;  %v1050_v46 = vshrl.u32 %v8057_v7, %v1047_v56  ;;  %v1053_v8 = vshrl.u32 %v8058_v9, %v1047_v56  ;;  %v1055_v47 = vshll.u32 %v8058_v9, %v1046_v59 }
 0x14c   : > { %v1198_v44 = vshrl.u32 %v1197_v48, 30  ;;  %v1058_v54 = vshll.u32 %v8059_v11, %v1046_v59  ;;  %v1061_v50 = vshll.u32 %v8060_v13, %v1046_v59  ;;  %v1062_v37 = vshrl.u32 %v8061_v22, %v1047_v56 }
 0x14d   : > { %v908_v23 = vxor.u32 2147483648, %v907_v30  ;;  %v8869_v18 = vand.u32 3, %v917_v27  ;;  %v1049_v31 = vshll.u32 %v8056_v5, %v1046_v59  ;;  %v1052_v51 = vshll.u32 %v8057_v7, %v1046_v59 }
 0x14e   : > { %v1199_v38 = vshll.u32 %v1198_v44, 30  ;;  %vm1138_vm1 = vcmp.lt.s32.totalorder %v8626_v45, 0  ;;  %v1057_v0 = vor.u32 %v1056_v16, %v1055_v47  ;;  %v1060_v34 = vor.u32 %v1059_v1, %v1058_v54 }
 0x14f   : > { %v909_v4 = vsel %vm826_vm2, %v908_v23, %v907_v30  ;;  %v1063_v43 = vor.u32 %v1062_v37, %v1061_v50  ;;  %v1051_v53 = vor.u32 %v1050_v46, %v1049_v31  ;;  %v1054_v55 = vor.u32 %v1053_v8, %v1052_v51 }
 0x150   : > { %v912_v57 = vsel %vm8791_vm4, %v8539_v17, %v909_v4  ;;  %v8879_v39 = vsub.s32 %v1196_v12, %v1199_v38  ;;  %v1040_v14 = vor.u32 8388608, %v1039_v41  ;;  %vm1064_vm0 = vcmp.lt.s32.totalorder %v1045_v24, 1 }
 0x151   : > { %7874 = vcosq.f32 %v912_v57  ;;  %v8882_v2 = vmul.f32 %v8742_v58, %v252_v62  ;;  %vm8886_vm2 = vcmp.le.f32.partialorder %v1136_v10, 0.7853982  ;;  %v1222_v52 = vsub.s32 4, %v1198_v44 }
 0x152   : > { %7876 = vsinq.f32 %v912_v57  ;;  %v1202_v19 = vsub.s32 0, %v8879_v39  ;;  %vm1067_vm3 = vcmp.lt.s32.totalorder %v1045_v24, 4  ;;  %v1048_v25 = vshrl.u32 %v8056_v5, %v1047_v56 }
 0x153   : > { %v1069_v28 = vsel %vm1067_vm3, %v1057_v0, 2102212464  ;;  %v1073_v29 = vsel %vm1067_vm3, %v1060_v34, 920167782  ;;  %v1077_v21 = vsel %vm1067_vm3, %v1063_v43, 1326507024  ;;  %v1072_v32 = vsel %vm1064_vm0, %v1051_v53, %v1054_v55 }
 0x154   : > { %v7424_v26 = vmin.u32 %v1202_v19, %v8879_v39  ;;  %vm1066_vm4 = vcmp.lt.s32.totalorder %v1045_v24, 3  ;;  %v1076_v33 = vsel %vm1064_vm0, %v1054_v55, %v1057_v0  ;;  %vm4350_vm5 = vcmp.eq.s32.totalorder %v8857_v42, 2 }
 0x155   : > { %v1074_v10 = vsel %vm1066_vm4, %v1057_v0, %v1073_v29  ;;  %v1078_v35 = vsel %vm1066_vm4, %v1060_v34, %v1077_v21  ;;  %v1080_v49 = vshll.u32 %v1040_v14, 8  ;;  %vm4347_vm6 = vcmp.eq.s32.totalorder %v8857_v42, 0  ;;  %v247_v14 = vpop.permute.xlu0 %246 }
 0x156   : > { %v1204_v3 = vclz %v7424_v26  ;;  %vm1065_vm7 = vcmp.lt.s32.totalorder %v1045_v24, 2  ;;  %v1068_v56 = vsel %vm1064_vm0, %v1048_v25, %v1051_v53  ;;  %v1070_v63 = vsel %vm1066_vm4, %v1054_v55, %v1069_v28 }
 0x157   : > { %vm919_vm8 = vcmp.lt.s32.totalorder %v8869_v18, 2  ;;  %vm4346_vm9 = vcmp.lt.s32.totalorder %v8857_v42, 2  ;;  %v1075_v36 = vsel %vm1065_vm7, %v1072_v32, %v1074_v10  ;;  %v1079_v12 = vsel %vm1065_vm7, %v1076_v33, %v1078_v35 }
 0x158   : > { %v1347_v40 = vand.u32 2139095040, %v8882_v2  ;;  %vm916_vm10 = vweird.f32 %v8539_v17  ;;  %v7425_v60 = vadd.s32 4294967294, %v1204_v3  ;;  %v1223_v27 = vsel %vm1138_vm1, %v1222_v52, %v1198_v44 }
 0x159   : > { %v8904_v48 = vmul.u32.u64.low %v1080_v49, %v1079_v12  ;;  %v8905_v41 = vmul.u32.u64.high %v1080_v49, %v1079_v12, %v8904_v48  ;;  %v1071_v30 = vsel %vm1065_vm7, %v1068_v56, %v1070_v63  ;;  %vm920_vm11 = vcmp.eq.s32.totalorder %v8869_v18, 0 }
 0x15a   : > { %v8907_v24 = vmul.u32.u64.low %v1080_v49, %v1075_v36  ;;  %v8908_v16 = vmul.u32.u64.high %v1080_v49, %v1075_v36, %v8907_v24  ;;  %v1348_v1 = vshrl.u32 %v1347_v40, 23  ;;  %vm923_vm12 = vcmp.eq.s32.totalorder %v8869_v18, 2 }
 0x15b   : > { %vm7426_vm13 = vcmp.lt.s32.totalorder %v7425_v60, 0  ;;  %v1344_v46 = vand.u32 2147483647, %v8882_v2  ;;  %v7875_v8 = vpop.eup %7874  ;;  %v1192_v44 = vadd.s32 %v8810_v61, %v8824_v15  ;;  %v1225_v23 = vsel %vm8886_vm2, 0, %v1223_v27 }
 0x15c   : > { %v1207_v47 = vsel %vm7426_vm13, 0, %v7425_v60  ;;  %v7431_v54 = vadd.s32 4294967169, %v1348_v1  ;;  %v7877_v50 = vpop.eup %7876  ;;  %v924_v37 = vxor.u32 2147483648, %v7875_v8  ;;  %v1087_v51 = vmul.u32 %v1080_v49, %v1071_v30 }
 0x15d   : > { %v1208_v38 = vsub.s32 32, %v1207_v47  ;;  %v1212_v31 = vsub.s32 4294967266, %v1207_v47  ;;  %v921_v62 = vxor.u32 2147483648, %v7877_v50  ;;  %v1209_v4 = vshll.u32 %v8879_v39, %v1207_v47 }
 0x15e   : > { %vm1089_vm14 = vc.u32 %v8905_v41, %v8907_v24  ;;  %v1090_v0 = vadd.s32 1, %v8908_v16  ;;  %v925_v61 = vsel %vm923_vm12, %v924_v37, %v7877_v50  ;;  %v4352_v15 = vsel %vm4350_vm5, %v924_v37, %v7877_v50 }
 0x15f   : > { %v1210_v34 = vshrl.u32 %v1192_v44, %v1208_v38  ;;  %v1213_v43 = vadd.s32 127, %v1212_v31  ;;  %v922_v57 = vsel %vm920_vm11, %v7875_v8, %v921_v62  ;;  %v4349_v39 = vsel %vm4347_vm6, %v7875_v8, %v921_v62 }
 0x160   : > { %v1091_v53 = vsel %vm1089_vm14, %v1090_v0, %v8908_v16  ;;  %v1354_v55 = vadd.s32 1, %v7431_v54  ;;  %v926_v19 = vsel %vm919_vm8, %v922_v57, %v925_v61  ;;  %v4353_v52 = vsel %vm4346_vm9, %v4349_v39, %v4352_v15 }
 0x161   : > { %v1211_v25 = vor.u32 %v1210_v34, %v1209_v4  ;;  %v1214_v28 = vshll.u32 %v1213_v43, 23  ;;  %v927_v29 = vsel %vm916_vm10, nan, %v926_v19  ;;  %v4354_v21 = vsel %vm916_vm10, nan, %v4353_v52 }
 0x162   : > { %v1092_v26 = vadd.s32 %v1091_v53, %v1087_v51  ;;  %vm1355_vm15 = vcmp.gt.s32.totalorder %v1354_v55, 0  ;;  %7243 = vst [vmem:[%s8473_s3 + $0x40] sm:$0xff] %v927_v29  ;;  %7276 = vst [vmem:[%s8473_s3 + $0x48] sm:$0xff] %v4354_v21  ;;  %v8942_v18 = vmul.f32 %v8742_v58, %v247_v14  ;;  %v1229_v10 = vadd.s32 3, %v1225_v23 }
 0x163   : > { %v1215_v32 = vor.u32 4788187, %v1214_v28  ;;  %v1356_v33 = vsel %vm1355_vm15, %v1354_v55, 0  ;;  %v1351_v35 = vand.u32 8388607, %v1344_v46  ;;  %v1218_v56 = vcvt.s32.f32 %v1211_v25 }
 0x164   : > { %v1093_v42 = vadd.s32 536870912, %v1092_v26  ;;  %v1358_v49 = vand.u32 31, %v1356_v33  ;;  %v8948_v12 = vand.u32 3, %v1225_v23  ;;  %v8950_v40 = vand.u32 3, %v1229_v10 }
 0x165   : > { %v1216_v3 = vand.u32 2147483647, %v1215_v32  ;;  %v1352_v27 = vor.u32 8388608, %v1351_v35  ;;  %v1240_v48 = vand.u32 2147483647, %v8942_v18  ;;  %v1243_v8 = vand.u32 2139095040, %v8942_v18 }
 0x166   : > { %v8946_v63 = vshrl.u32 %v1093_v42, 30  ;;  %v1359_v17 = vsub.s32 32, %v1358_v49  ;;  %v8959_v47 = vshrl.u32 %v1356_v33, 5  ;;  %vm1034_vm0 = vcmp.lt.s32.totalorder %v8745_v20, 0 }
 0x167   : > { %v1219_v36 = vmul.f32 %v1218_v56, %v1216_v3  ;;  %v1361_v37 = vshll.u32 %v8056_v5, %v1358_v49  ;;  %v1364_v38 = vshll.u32 %v8057_v7, %v1358_v49  ;;  %v1367_v4 = vshll.u32 %v8058_v9, %v1358_v49 }
 0x168   : > { %v1095_v60 = vshll.u32 %v8946_v63, 30  ;;  %v1362_v16 = vshrl.u32 %v8057_v7, %v1359_v17  ;;  %v1365_v1 = vshrl.u32 %v8058_v9, %v1359_v17  ;;  %v1368_v23 = vshrl.u32 %v8059_v11, %v1359_v17 }
 0x169   : > { %v1220_v30 = vxor.u32 2147483648, %v1219_v36  ;;  %v1371_v54 = vshrl.u32 %v8060_v13, %v1359_v17  ;;  %v1374_v31 = vshrl.u32 %v8061_v22, %v1359_v17  ;;  %v1370_v0 = vshll.u32 %v8059_v11, %v1358_v49 }
 0x16a   : > { %v8957_v44 = vsub.s32 %v1092_v26, %v1095_v60  ;;  %v1363_v61 = vor.u32 %v1362_v16, %v1361_v37  ;;  %v1366_v15 = vor.u32 %v1365_v1, %v1364_v38  ;;  %v1373_v34 = vshll.u32 %v8060_v13, %v1358_v49 }
 0x16b   : > { %v1221_v50 = vsel %vm1138_vm1, %v1220_v30, %v1219_v36  ;;  %vm8978_vm1 = vcmp.le.f32.partialorder %v1032_v6, 0.7853982  ;;  %v1369_v57 = vor.u32 %v1368_v23, %v1367_v4  ;;  %v1372_v39 = vor.u32 %v1371_v54, %v1370_v0 }
 0x16c   : > { %v1224_v51 = vsel %vm8886_vm2, %v8626_v45, %v1221_v50  ;;  %v1098_v62 = vsub.s32 0, %v8957_v44  ;;  %v1088_v53 = vadd.s32 %v8907_v24, %v8905_v41  ;;  %v1375_v55 = vor.u32 %v1374_v31, %v1373_v34 }
 0x16d   : > { %7878 = vcosq.f32 %v1224_v51  ;;  %v8985_v14 = vshll.u32 %v1352_v27, 8  ;;  %v1244_v19 = vshrl.u32 %v1243_v8, 23  ;;  %v1118_v25 = vsub.s32 4, %v8946_v63 }
 0x16e   : > { %7880 = vsinq.f32 %v1224_v51  ;;  %v7420_v59 = vmin.u32 %v1098_v62, %v8957_v44  ;;  %vm1376_vm2 = vcmp.lt.s32.totalorder %v8959_v47, 1  ;;  %v8991_v6 = vand.u32 8388607, %v1240_v48 }
 0x16f   : > { %vm1235_vm3 = vcmp.eq.s32.totalorder %v8950_v40, 2  ;;  %vm4659_vm4 = vcmp.eq.s32.totalorder %v8948_v12, 2  ;;  %v1360_v28 = vshrl.u32 %v8056_v5, %v1359_v17  ;;  %vm1377_vm5 = vcmp.lt.s32.totalorder %v8959_v47, 2 }
 0x170   : > { %v1100_v52 = vclz %v7420_v59  ;;  %vm1379_vm6 = vcmp.lt.s32.totalorder %v8959_v47, 4  ;;  %v1384_v41 = vsel %vm1376_vm2, %v1363_v61, %v1366_v15  ;;  %vm1232_vm7 = vcmp.eq.s32.totalorder %v8950_v40, 0 }
 0x171   : > { %vm4656_vm8 = vcmp.eq.s32.totalorder %v8948_v12, 0  ;;  %vm1378_vm9 = vcmp.lt.s32.totalorder %v8959_v47, 3  ;;  %v1385_v29 = vsel %vm1379_vm6, %v1372_v39, 920167782  ;;  %v1388_v21 = vsel %vm1376_vm2, %v1366_v15, %v1369_v57 }
 0x172   : > { %v7421_v24 = vadd.s32 4294967294, %v1100_v52  ;;  %vm1231_vm10 = vcmp.lt.s32.totalorder %v8950_v40, 2  ;;  %vm4655_vm11 = vcmp.lt.s32.totalorder %v8948_v12, 2  ;;  %v1381_v26 = vsel %vm1379_vm6, %v1369_v57, 2102212464  ;;  %v262_v52 = vpop.permute.xlu1 %261 }
 0x173   : > { %v1386_v32 = vsel %vm1378_vm9, %v1369_v57, %v1385_v29  ;;  %v1389_v33 = vsel %vm1379_vm6, %v1375_v55, 1326507024  ;;  %v7427_v10 = vadd.s32 4294967169, %v1244_v19  ;;  %vm1228_vm12 = vweird.f32 %v8626_v45 }
 0x174   : > { %vm7422_vm13 = vcmp.lt.s32.totalorder %v7421_v24, 0  ;;  %v1119_v42 = vsel %vm1034_vm0, %v1118_v25, %v8946_v63  ;;  %v1387_v35 = vsel %vm1377_vm5, %v1384_v41, %v1386_v32  ;;  %v1390_v49 = vsel %vm1378_vm9, %v1372_v39, %v1389_v33 }
 0x175   : > { %v1103_v3 = vsel %vm7422_vm13, 0, %v7421_v24  ;;  %v1391_v56 = vsel %vm1377_vm5, %v1388_v21, %v1390_v49  ;;  %v9020_v17 = vmul.u32.u64.low %v8985_v14, %v1387_v35  ;;  %v9021_v36 = vmul.u32.u64.high %v8985_v14, %v1387_v35, %v9020_v17 }
 0x176   : > { %v1104_v60 = vsub.s32 32, %v1103_v3  ;;  %v1108_v27 = vsub.s32 4294967266, %v1103_v3  ;;  %v1380_v63 = vsel %vm1376_vm2, %v1360_v28, %v1363_v61  ;;  %v1382_v30 = vsel %vm1378_vm9, %v1366_v15, %v1381_v26 }
 0x177   : > { %v7879_v16 = vpop.eup %7878  ;;  %v1121_v1 = vsel %vm8978_vm1, 0, %v1119_v42  ;;  %v9031_v8 = vmul.u32.u64.low %v8985_v14, %v1391_v56  ;;  %v9032_v23 = vmul.u32.u64.high %v8985_v14, %v1391_v56, %v9031_v8  ;;  %v1250_v54 = vadd.s32 1, %v7427_v10 }
 0x178   : > { %v7881_v50 = vpop.eup %7880  ;;  %v1236_v37 = vxor.u32 2147483648, %v7879_v16  ;;  %v1105_v38 = vshll.u32 %v8957_v44, %v1103_v3  ;;  %v1106_v31 = vshrl.u32 %v1088_v53, %v1104_v60  ;;  %v1109_v51 = vadd.s32 127, %v1108_v27 }
 0x179   : > { %v1233_v62 = vxor.u32 2147483648, %v7881_v50  ;;  %v1383_v4 = vsel %vm1377_vm5, %v1380_v63, %v1382_v30  ;;  %v1402_v0 = vadd.s32 1, %v9021_v36  ;;  %vm1251_vm14 = vcmp.gt.s32.totalorder %v1250_v54, 0 }
 0x17a   : > { %v1237_v61 = vsel %vm1235_vm3, %v1236_v37, %v7881_v50  ;;  %v4661_v15 = vsel %vm4659_vm4, %v1236_v37, %v7881_v50  ;;  %v1107_v34 = vor.u32 %v1106_v31, %v1105_v38  ;;  %v1110_v59 = vshll.u32 %v1109_v51, 23 }
 0x17b   : > { %v1234_v44 = vsel %vm1232_vm7, %v7879_v16, %v1233_v62  ;;  %v4658_v47 = vsel %vm4656_vm8, %v7879_v16, %v1233_v62  ;;  %v1125_v57 = vadd.s32 3, %v1121_v1  ;;  %vm1401_vm15 = vc.u32 %v9032_v23, %v9020_v17 }
 0x17c   : > { %v1238_v39 = vsel %vm1231_vm10, %v1234_v44, %v1237_v61  ;;  %v4662_v53 = vsel %vm4655_vm11, %v4658_v47, %v4661_v15  ;;  %v1111_v55 = vor.u32 4788187, %v1110_v59  ;;  %v1399_v19 = vmul.u32 %v8985_v14, %v1383_v4 }
 0x17d   : > { %v1239_v25 = vsel %vm1228_vm12, nan, %v1238_v39  ;;  %v4663_v28 = vsel %vm1228_vm12, nan, %v4662_v53  ;;  %v1403_v41 = vsel %vm1401_vm15, %v1402_v0, %v9021_v36  ;;  %v1252_v24 = vsel %vm1251_vm14, %v1250_v54, 0 }
 0x17e   : > { %7246 = vst [vmem:[%s8473_s3 + $0x70] sm:$0xff] %v1239_v25  ;;  %7279 = vst [vmem:[%s8473_s3 + $0x78] sm:$0xff] %v4663_v28  ;;  %v1112_v40 = vand.u32 2147483647, %v1111_v55  ;;  %v1114_v29 = vcvt.s32.f32 %v1107_v34  ;;  %v1404_v12 = vadd.s32 %v1403_v41, %v1399_v19  ;;  %v1254_v21 = vand.u32 31, %v1252_v24 }
 0x17f   : > { %v9062_v26 = vmul.f32 %v8742_v58, %v262_v52  ;;  %v9064_v10 = vand.u32 3, %v1125_v57  ;;  %v9066_v45 = vand.u32 3, %v1121_v1  ;;  %v1248_v42 = vor.u32 8388608, %v8991_v6 }
 0x180   : > { %v1115_v14 = vmul.f32 %v1114_v29, %v1112_v40  ;;  %v1405_v32 = vadd.s32 536870912, %v1404_v12  ;;  %v1255_v33 = vsub.s32 32, %v1254_v21  ;;  %v9069_v3 = vshrl.u32 %v1252_v24, 5 }
 0x181   : > { %v1555_v63 = vand.u32 2139095040, %v9062_v26  ;;  %v1257_v6 = vshll.u32 %v8056_v5, %v1254_v21  ;;  %v1260_v1 = vshll.u32 %v8057_v7, %v1254_v21  ;;  %v1263_v54 = vshll.u32 %v8058_v9, %v1254_v21 }
 0x182   : > { %v1116_v35 = vxor.u32 2147483648, %v1115_v14  ;;  %v1406_v49 = vshrl.u32 %v1405_v32, 30  ;;  %v1258_v56 = vshrl.u32 %v8057_v7, %v1255_v33  ;;  %v1261_v36 = vshrl.u32 %v8058_v9, %v1255_v33 }
 0x183   : > { %v1264_v60 = vshrl.u32 %v8059_v11, %v1255_v33  ;;  %v1267_v27 = vshrl.u32 %v8060_v13, %v1255_v33  ;;  %v1266_v50 = vshll.u32 %v8059_v11, %v1254_v21  ;;  %v1270_v37 = vshrl.u32 %v8061_v22, %v1255_v33 }
 0x184   : > { %v1117_v30 = vsel %vm1034_vm0, %v1116_v35, %v1115_v14  ;;  %v1407_v16 = vshll.u32 %v1406_v49, 30  ;;  %v1259_v31 = vor.u32 %v1258_v56, %v1257_v6  ;;  %v1269_v51 = vshll.u32 %v8060_v13, %v1254_v21 }
 0x185   : > { %v1120_v8 = vsel %vm8978_vm1, %v8745_v20, %v1117_v30  ;;  %v1262_v62 = vor.u32 %v1261_v36, %v1260_v1  ;;  %v1265_v4 = vor.u32 %v1264_v60, %v1263_v54  ;;  %v1268_v0 = vor.u32 %v1267_v27, %v1266_v50 }
 0x186   : > { %7882 = vcosq.f32 %v1120_v8  ;;  %v9086_v38 = vsub.s32 %v1404_v12, %v1407_v16  ;;  %vm1346_vm0 = vcmp.lt.s32.totalorder %v8882_v2, 0  ;;  %v1256_v61 = vshrl.u32 %v8056_v5, %v1255_v33 }
 0x187   : > { %7884 = vsinq.f32 %v1120_v8  ;;  %v1271_v15 = vor.u32 %v1270_v37, %v1269_v51  ;;  %v9092_v34 = vshll.u32 %v1248_v42, 8  ;;  %v1552_v59 = vand.u32 2147483647, %v9062_v26 }
 0x188   : > { %v1410_v43 = vsub.s32 0, %v9086_v38  ;;  %vm1131_vm1 = vcmp.eq.s32.totalorder %v9064_v10, 2  ;;  %vm4556_vm2 = vcmp.eq.s32.totalorder %v9066_v45, 2  ;;  %v1430_v47 = vsub.s32 4, %v1406_v49 }
 0x189   : > { %vm1272_vm3 = vcmp.lt.s32.totalorder %v9069_v3, 1  ;;  %vm1275_vm4 = vcmp.lt.s32.totalorder %v9069_v3, 4  ;;  %vm1128_vm5 = vcmp.eq.s32.totalorder %v9064_v10, 0  ;;  %vm4553_vm6 = vcmp.eq.s32.totalorder %v9066_v45, 0 }
 0x18a   : > { %v7432_v44 = vmin.u32 %v1410_v43, %v9086_v38  ;;  %v1277_v57 = vsel %vm1275_vm4, %v1265_v4, 2102212464  ;;  %v1280_v39 = vsel %vm1272_vm3, %v1259_v31, %v1262_v62  ;;  %v1281_v53 = vsel %vm1275_vm4, %v1268_v0, 920167782 }
 0x18b   : > { %v1556_v55 = vshrl.u32 %v1555_v63, 23  ;;  %vm1127_vm7 = vcmp.lt.s32.totalorder %v9064_v10, 2  ;;  %vm4552_vm8 = vcmp.lt.s32.totalorder %v9066_v45, 2  ;;  %vm1273_vm9 = vcmp.lt.s32.totalorder %v9069_v3, 2 }
 0x18c   : > { %v1412_v19 = vclz %v7432_v44  ;;  %vm1274_vm10 = vcmp.lt.s32.totalorder %v9069_v3, 3  ;;  %v1284_v52 = vsel %vm1272_vm3, %v1262_v62, %v1265_v4  ;;  %vm1124_vm11 = vweird.f32 %v8745_v20 }
 0x18d   : > { %v1276_v25 = vsel %vm1272_vm3, %v1256_v61, %v1259_v31  ;;  %v1282_v28 = vsel %vm1274_vm10, %v1265_v4, %v1281_v53  ;;  %v1285_v41 = vsel %vm1275_vm4, %v1271_v15, 1326507024  ;;  %v7439_v24 = vadd.s32 4294967169, %v1556_v55  ;;  %v257_v53 = vpop.permute.xlu0 %256 }
 0x18e   : > { %v7433_v40 = vadd.s32 4294967294, %v1412_v19  ;;  %v1278_v29 = vsel %vm1274_vm10, %v1262_v62, %v1277_v57  ;;  %v1283_v12 = vsel %vm1273_vm9, %v1280_v39, %v1282_v28  ;;  %v1286_v21 = vsel %vm1274_vm10, %v1268_v0, %v1285_v41 }
 0x18f   : > { %v1400_v14 = vadd.s32 %v9020_v17, %v9032_v23  ;;  %v1287_v32 = vsel %vm1273_vm9, %v1284_v52, %v1286_v21  ;;  %v9120_v33 = vmul.u32.u64.low %v9092_v34, %v1283_v12  ;;  %v9121_v42 = vmul.u32.u64.high %v9092_v34, %v1283_v12, %v9120_v33 }
 0x190   : > { %v7883_v35 = vpop.eup %7882  ;;  %vm7434_vm12 = vcmp.lt.s32.totalorder %v7433_v40, 0  ;;  %v1431_v56 = vsel %vm1346_vm0, %v1430_v47, %v1406_v49  ;;  %v9127_v36 = vmul.u32.u64.low %v9092_v34, %v1287_v32  ;;  %v9128_v60 = vmul.u32.u64.high %v9092_v34, %v1287_v32, %v9127_v36 }
 0x191   : > { %v7885_v27 = vpop.eup %7884  ;;  %v1132_v63 = vxor.u32 2147483648, %v7883_v35  ;;  %v1415_v17 = vsel %vm7434_vm12, 0, %v7433_v40  ;;  %v1279_v23 = vsel %vm1273_vm9, %v1276_v25, %v1278_v29  ;;  %v1562_v30 = vadd.s32 1, %v7439_v24 }
 0x192   : > { %v1129_v16 = vxor.u32 2147483648, %v7885_v27  ;;  %v1416_v6 = vsub.s32 32, %v1415_v17  ;;  %v1417_v1 = vshll.u32 %v9086_v38, %v1415_v17  ;;  %v1420_v8 = vsub.s32 4294967266, %v1415_v17 }
 0x193   : > { %v1133_v54 = vsel %vm1131_vm1, %v1132_v63, %v7885_v27  ;;  %v4558_v49 = vsel %vm4556_vm2, %v1132_v63, %v7885_v27  ;;  %v1298_v50 = vadd.s32 1, %v9121_v42  ;;  %vm1563_vm13 = vcmp.gt.s32.totalorder %v1562_v30, 0 }
 0x194   : > { %v1130_v3 = vsel %vm1128_vm5, %v7883_v35, %v1129_v16  ;;  %v4555_v37 = vsel %vm4553_vm6, %v7883_v35, %v1129_v16  ;;  %v1418_v31 = vshrl.u32 %v1400_v14, %v1416_v6  ;;  %v1421_v38 = vadd.s32 127, %v1420_v8 }
 0x195   : > { %v1134_v51 = vsel %vm1127_vm7, %v1130_v3, %v1133_v54  ;;  %v4559_v62 = vsel %vm4552_vm8, %v4555_v37, %v4558_v49  ;;  %v1295_v4 = vmul.u32 %v9092_v34, %v1279_v23  ;;  %vm1297_vm14 = vc.u32 %v9128_v60, %v9120_v33 }
 0x196   : > { %v1135_v0 = vsel %vm1124_vm11, nan, %v1134_v51  ;;  %v4560_v43 = vsel %vm1124_vm11, nan, %v4559_v62  ;;  %v1419_v61 = vor.u32 %v1418_v31, %v1417_v1  ;;  %v1422_v15 = vshll.u32 %v1421_v38, 23 }
 0x197   : > { %7245 = vst [vmem:[%s8473_s3 + $0x60] sm:$0xff] %v1135_v0  ;;  %7278 = vst [vmem:[%s8473_s3 + $0x68] sm:$0xff] %v4560_v43  ;;  %vm9157_vm15 = vcmp.le.f32.partialorder %v1344_v46, 0.7853982  ;;  %v1299_v45 = vsel %vm1297_vm14, %v1298_v50, %v9121_v42  ;;  %v1564_v34 = vsel %vm1563_vm13, %v1562_v30, 0  ;;  %v9170_v29 = vmul.f32 %v8742_v58, %v257_v53 }
 0x198   : > { %v1423_v44 = vor.u32 4788187, %v1422_v15  ;;  %v1433_v47 = vsel %vm9157_vm15, 0, %v1431_v56  ;;  %v1300_v20 = vadd.s32 %v1299_v45, %v1295_v4  ;;  %v1559_v57 = vand.u32 8388607, %v1552_v59 }
 0x199   : > { %v1566_v39 = vand.u32 31, %v1564_v34  ;;  %v1426_v19 = vcvt.s32.f32 %v1419_v61  ;;  %v1437_v52 = vadd.s32 3, %v1433_v47  ;;  %v9167_v25 = vand.u32 3, %v1433_v47 }
 0x19a   : > { %v1424_v55 = vand.u32 2147483647, %v1423_v44  ;;  %v1301_v46 = vadd.s32 536870912, %v1300_v20  ;;  %v1560_v40 = vor.u32 8388608, %v1559_v57  ;;  %v1565_v12 = vshrl.u32 %v1564_v34, 5 }
 0x19b   : > { %v1567_v28 = vsub.s32 32, %v1566_v39  ;;  %v1569_v56 = vshll.u32 %v8056_v5, %v1566_v39  ;;  %vm1242_vm1 = vcmp.lt.s32.totalorder %v8942_v18, 0  ;;  %v1572_v27 = vshll.u32 %v8057_v7, %v1566_v39 }
 0x19c   : > { %v1427_v41 = vmul.f32 %v1426_v19, %v1424_v55  ;;  %v1302_v24 = vshrl.u32 %v1301_v46, 30  ;;  %v1575_v58 = vshll.u32 %v8058_v9, %v1566_v39  ;;  %v1578_v63 = vshll.u32 %v8059_v11, %v1566_v39 }
 0x19d   : > { %v1570_v21 = vshrl.u32 %v8057_v7, %v1567_v28  ;;  %v1573_v14 = vshrl.u32 %v8058_v9, %v1567_v28  ;;  %v1576_v32 = vshrl.u32 %v8059_v11, %v1567_v28  ;;  %v1579_v36 = vshrl.u32 %v8060_v13, %v1567_v28 }
 0x19e   : > { %v1428_v42 = vxor.u32 2147483648, %v1427_v41  ;;  %v1303_v35 = vshll.u32 %v1302_v24, 30  ;;  %v1582_v17 = vshrl.u32 %v8061_v22, %v1567_v28  ;;  %v1581_v6 = vshll.u32 %v8060_v13, %v1566_v39 }
 0x19f   : > { %v1571_v16 = vor.u32 %v1570_v21, %v1569_v56  ;;  %v1574_v8 = vor.u32 %v1573_v14, %v1572_v27  ;;  %v1577_v54 = vor.u32 %v1576_v32, %v1575_v58  ;;  %v1580_v49 = vor.u32 %v1579_v36, %v1578_v63 }
 0x1a0   : > { %v1429_v23 = vsel %vm1346_vm0, %v1428_v42, %v1427_v41  ;;  %v9184_v30 = vsub.s32 %v1300_v20, %v1303_v35  ;;  %v9190_v50 = vand.u32 3, %v1437_v52  ;;  %v9193_v37 = vshll.u32 %v1560_v40, 8 }
 0x1a1   : > { %v1432_v1 = vsel %vm9157_vm15, %v8882_v2, %v1429_v23  ;;  %v1583_v31 = vor.u32 %v1582_v17, %v1581_v6  ;;  %vm1584_vm0 = vcmp.lt.s32.totalorder %v1565_v12, 1  ;;  %v1451_v38 = vand.u32 2139095040, %v9170_v29 }
 0x1a2   : > { %7886 = vcosq.f32 %v1432_v1  ;;  %v1306_v3 = vsub.s32 0, %v9184_v30  ;;  %vm9198_vm2 = vcmp.le.f32.partialorder %v1240_v48, 0.7853982  ;;  %v1326_v4 = vsub.s32 4, %v1302_v24 }
 0x1a3   : > { %7888 = vsinq.f32 %v1432_v1  ;;  %v1568_v0 = vshrl.u32 %v8056_v5, %v1567_v28  ;;  %vm1587_vm3 = vcmp.lt.s32.totalorder %v1565_v12, 4  ;;  %vm1585_vm4 = vcmp.lt.s32.totalorder %v1565_v12, 2 }
 0x1a4   : > { %v7428_v62 = vmin.u32 %v1306_v3, %v9184_v30  ;;  %v1589_v43 = vsel %vm1587_vm3, %v1577_v54, 2102212464  ;;  %v1592_v61 = vsel %vm1584_vm0, %v1571_v16, %v1574_v8  ;;  %v1593_v15 = vsel %vm1587_vm3, %v1580_v49, 920167782 }
 0x1a5   : > { %vm4865_vm5 = vcmp.eq.s32.totalorder %v9167_v25, 2  ;;  %vm1586_vm6 = vcmp.lt.s32.totalorder %v1565_v12, 3  ;;  %v1588_v45 = vsel %vm1584_vm0, %v1568_v0, %v1571_v16  ;;  %v1596_v34 = vsel %vm1584_vm0, %v1574_v8, %v1577_v54 }
 0x1a6   : > { %v1308_v10 = vclz %v7428_v62  ;;  %vm4862_vm7 = vcmp.eq.s32.totalorder %v9167_v25, 0  ;;  %v1590_v48 = vsel %vm1586_vm6, %v1574_v8, %v1589_v43  ;;  %v1594_v44 = vsel %vm1586_vm6, %v1577_v54, %v1593_v15  ;;  %v272_v43 = vpop.permute.xlu1 %271 }
 0x1a7   : > { %v1597_v47 = vsel %vm1587_vm3, %v1583_v31, 1326507024  ;;  %v1452_v20 = vshrl.u32 %v1451_v38, 23  ;;  %vm1439_vm8 = vcmp.lt.s32.totalorder %v9190_v50, 2  ;;  %vm4861_vm9 = vcmp.lt.s32.totalorder %v9167_v25, 2 }
 0x1a8   : > { %v7429_v57 = vadd.s32 4294967294, %v1308_v10  ;;  %v1327_v39 = vsel %vm1242_vm1, %v1326_v4, %v1302_v24  ;;  %v1595_v53 = vsel %vm1585_vm4, %v1592_v61, %v1594_v44  ;;  %v1598_v55 = vsel %vm1586_vm6, %v1580_v49, %v1597_v47  ;;  %v9259_v44 = vld [vmem:[%s11562_s1] ss:$0 sm:$0xff] }
 0x1a9   : > { %vm1436_vm10 = vweird.f32 %v8882_v2  ;;  %v1591_v19 = vsel %vm1585_vm4, %v1588_v45, %v1590_v48  ;;  %v1599_v46 = vsel %vm1585_vm4, %v1596_v34, %v1598_v55  ;;  %v7435_v24 = vadd.s32 4294967169, %v1452_v20 }
 0x1aa   : > { %v9215_v52 = vmul.u32.u64.low %v9193_v37, %v1595_v53  ;;  %v9216_v28 = vmul.u32.u64.high %v9193_v37, %v1595_v53, %v9215_v52  ;;  %vm7430_vm11 = vcmp.lt.s32.totalorder %v7429_v57, 0  ;;  %vm1440_vm12 = vcmp.eq.s32.totalorder %v9190_v50, 0 }
 0x1ab   : > { %v9220_v41 = vmul.u32.u64.low %v9193_v37, %v1599_v46  ;;  %v9221_v40 = vmul.u32.u64.high %v9193_v37, %v1599_v46, %v9220_v41  ;;  %vm1443_vm13 = vcmp.eq.s32.totalorder %v9190_v50, 2  ;;  %v1296_v21 = vadd.s32 %v9120_v33, %v9128_v60 }
 0x1ac   : > { %v1311_v12 = vsel %vm7430_vm11, 0, %v7429_v57  ;;  %v7887_v14 = vpop.eup %7886  ;;  %v1448_v35 = vand.u32 2147483647, %v9170_v29  ;;  %v1458_v56 = vadd.s32 1, %v7435_v24  ;;  %v1329_v58 = vsel %vm9198_vm2, 0, %v1327_v39 }
 0x1ad   : > { %v1312_v32 = vsub.s32 32, %v1311_v12  ;;  %v1316_v42 = vsub.s32 4294967266, %v1311_v12  ;;  %v7889_v36 = vpop.eup %7888  ;;  %v1444_v27 = vxor.u32 2147483648, %v7887_v14  ;;  %v1607_v63 = vmul.u32 %v9193_v37, %v1591_v19 }
 0x1ae   : > { %v1610_v17 = vadd.s32 1, %v9216_v28  ;;  %v1441_v23 = vxor.u32 2147483648, %v7889_v36  ;;  %v1313_v16 = vshll.u32 %v9184_v30, %v1311_v12  ;;  %vm1609_vm14 = vc.u32 %v9221_v40, %v9215_v52 }
 0x1af   : > { %v1314_v33 = vshrl.u32 %v1296_v21, %v1312_v32  ;;  %v1317_v60 = vadd.s32 127, %v1316_v42  ;;  %v1445_v6 = vsel %vm1443_vm13, %v1444_v27, %v7889_v36  ;;  %v4867_v1 = vsel %vm4865_vm5, %v1444_v27, %v7889_v36 }
 0x1b0   : > { %vm1459_vm15 = vcmp.gt.s32.totalorder %v1458_v56, 0  ;;  %v1442_v8 = vsel %vm1440_vm12, %v7887_v14, %v1441_v23  ;;  %v4864_v30 = vsel %vm4862_vm7, %v7887_v14, %v1441_v23  ;;  %v1611_v31 = vsel %vm1609_vm14, %v1610_v17, %v9216_v28 }
 0x1b1   : > { %v1315_v54 = vor.u32 %v1314_v33, %v1313_v16  ;;  %v1318_v49 = vshll.u32 %v1317_v60, 23  ;;  %v1446_v3 = vsel %vm1439_vm8, %v1442_v8, %v1445_v6  ;;  %v4868_v37 = vsel %vm4861_vm9, %v4864_v30, %v4867_v1 }
 0x1b2   : > { %v1460_v38 = vsel %vm1459_vm15, %v1458_v56, 0  ;;  %v1447_v62 = vsel %vm1436_vm10, nan, %v1446_v3  ;;  %v4869_v4 = vsel %vm1436_vm10, nan, %v4868_v37  ;;  %v1333_v61 = vadd.s32 3, %v1329_v58 }
 0x1b3   : > { %v1319_v0 = vor.u32 4788187, %v1318_v49  ;;  %7248 = vst [vmem:[%s8473_s3 + $0x90] sm:$0xff] %v1447_v62  ;;  %7281 = vst [vmem:[%s8473_s3 + $0x98] sm:$0xff] %v4869_v4  ;;  %v1612_v15 = vadd.s32 %v1611_v31, %v1607_v63  ;;  %v1455_v50 = vand.u32 8388607, %v1448_v35  ;;  %v1322_v45 = vcvt.s32.f32 %v1315_v54 }
 0x1b4   : > { %v1462_v25 = vand.u32 31, %v1460_v38  ;;  %v9262_v2 = vmul.f32 %v9259_v44, %v272_v43  ;;  %v9264_v20 = vand.u32 3, %v1329_v58  ;;  %v9266_v57 = vand.u32 3, %v1333_v61 }
 0x1b5   : > { %v1320_v10 = vand.u32 2147483647, %v1319_v0  ;;  %v1613_v34 = vadd.s32 536870912, %v1612_v15  ;;  %v1456_v53 = vor.u32 8388608, %v1455_v50  ;;  %v9270_v55 = vshrl.u32 %v1460_v38, 5 }
 0x1b6   : > { %v1463_v48 = vsub.s32 32, %v1462_v25  ;;  %v1465_v21 = vshll.u32 %v8056_v5, %v1462_v25  ;;  %v1763_v14 = vand.u32 2139095040, %v9262_v2  ;;  %v1468_v42 = vshll.u32 %v8057_v7, %v1462_v25 }
 0x1b7   : > { %v1323_v47 = vmul.f32 %v1322_v45, %v1320_v10  ;;  %v9268_v39 = vshrl.u32 %v1613_v34, 30  ;;  %v1474_v56 = vshll.u32 %v8059_v11, %v1462_v25  ;;  %v1471_v63 = vshll.u32 %v8058_v9, %v1462_v25 }
 0x1b8   : > { %v1466_v46 = vshrl.u32 %v8057_v7, %v1463_v48  ;;  %v1469_v28 = vshrl.u32 %v8058_v9, %v1463_v48  ;;  %v1475_v41 = vshrl.u32 %v8060_v13, %v1463_v48  ;;  %v1472_v12 = vshrl.u32 %v8059_v11, %v1463_v48 }
 0x1b9   : > { %v1324_v19 = vxor.u32 2147483648, %v1323_v47  ;;  %v1615_v24 = vshll.u32 %v9268_v39, 30  ;;  %v1478_v36 = vshrl.u32 %v8061_v22, %v1463_v48  ;;  %v1477_v17 = vshll.u32 %v8060_v13, %v1462_v25 }
 0x1ba   : > { %v1467_v23 = vor.u32 %v1466_v46, %v1465_v21  ;;  %v1470_v16 = vor.u32 %v1469_v28, %v1468_v42  ;;  %v1476_v33 = vor.u32 %v1475_v41, %v1474_v56  ;;  %v1473_v6 = vor.u32 %v1472_v12, %v1471_v63 }
 0x1bb   : > { %v1325_v32 = vsel %vm1242_vm1, %v1324_v19, %v1323_v47  ;;  %v9287_v58 = vsub.s32 %v1612_v15, %v1615_v24  ;;  %vm1554_vm1 = vcmp.lt.s32.totalorder %v9062_v26, 0  ;;  %v1479_v1 = vor.u32 %v1478_v36, %v1477_v17 }
 0x1bc   : > { %v1328_v27 = vsel %vm9198_vm2, %v8942_v18, %v1325_v32  ;;  %v9293_v8 = vshll.u32 %v1456_v53, 8  ;;  %v1464_v30 = vshrl.u32 %v8056_v5, %v1463_v48  ;;  %vm1480_vm0 = vcmp.lt.s32.totalorder %v9270_v55, 1 }
 0x1bd   : > { %7890 = vcosq.f32 %v1328_v27  ;;  %v1618_v60 = vsub.s32 0, %v9287_v58  ;;  %vm1483_vm2 = vcmp.lt.s32.totalorder %v9270_v55, 4  ;;  %vm1339_vm3 = vcmp.eq.s32.totalorder %v9266_v57, 2 }
 0x1be   : > { %7892 = vsinq.f32 %v1328_v27  ;;  %vm4762_vm4 = vcmp.eq.s32.totalorder %v9264_v20, 2  ;;  %v1638_v54 = vsub.s32 4, %v9268_v39  ;;  %v1488_v49 = vsel %vm1480_vm0, %v1467_v23, %v1470_v16 }
 0x1bf   : > { %v7440_v51 = vmin.u32 %v1618_v60, %v9287_v58  ;;  %v1489_v3 = vsel %vm1483_vm2, %v1476_v33, 920167782  ;;  %v1764_v37 = vshrl.u32 %v1763_v14, 23  ;;  %vm1336_vm5 = vcmp.eq.s32.totalorder %v9266_v57, 0 }
 0x1c0   : > { %vm4759_vm6 = vcmp.eq.s32.totalorder %v9264_v20, 0  ;;  %vm1482_vm7 = vcmp.lt.s32.totalorder %v9270_v55, 3  ;;  %v1485_v38 = vsel %vm1483_vm2, %v1473_v6, 2102212464  ;;  %v1492_v62 = vsel %vm1480_vm0, %v1470_v16, %v1473_v6 }
 0x1c1   : > { %v1620_v31 = vclz %v7440_v51  ;;  %vm1335_vm8 = vcmp.lt.s32.totalorder %v9266_v57, 2  ;;  %vm4758_vm9 = vcmp.lt.s32.totalorder %v9264_v20, 2  ;;  %vm1481_vm10 = vcmp.lt.s32.totalorder %v9270_v55, 2 }
 0x1c2   : > { %v1490_v4 = vsel %vm1482_vm7, %v1473_v6, %v1489_v3  ;;  %v1493_v0 = vsel %vm1483_vm2, %v1479_v1, 1326507024  ;;  %v7447_v43 = vadd.s32 4294967169, %v1764_v37  ;;  %vm1332_vm11 = vweird.f32 %v8942_v18 }
 0x1c3   : > { %v7441_v61 = vadd.s32 4294967294, %v1620_v31  ;;  %v1484_v15 = vsel %vm1480_vm0, %v1464_v30, %v1467_v23  ;;  %v1491_v50 = vsel %vm1481_vm10, %v1488_v49, %v1490_v4  ;;  %v1494_v25 = vsel %vm1482_vm7, %v1476_v33, %v1493_v0 }
 0x1c4   : > { %v1486_v10 = vsel %vm1482_vm7, %v1470_v16, %v1485_v38  ;;  %v1495_v45 = vsel %vm1481_vm10, %v1492_v62, %v1494_v25  ;;  %v9326_v34 = vmul.u32.u64.low %v9293_v8, %v1491_v50  ;;  %v9327_v48 = vmul.u32.u64.high %v9293_v8, %v1491_v50, %v9326_v34 }
 0x1c5   : > { %vm7442_vm12 = vcmp.lt.s32.totalorder %v7441_v61, 0  ;;  %v9331_v47 = vmul.u32.u64.low %v9293_v8, %v1495_v45  ;;  %v9332_v53 = vmul.u32.u64.high %v9293_v8, %v1495_v45, %v9331_v47  ;;  %v1760_v19 = vand.u32 2147483647, %v9262_v2 }
 0x1c6   : > { %v1608_v28 = vadd.s32 %v9215_v52, %v9221_v40  ;;  %v1623_v41 = vsel %vm7442_vm12, 0, %v7441_v61  ;;  %v1639_v24 = vsel %vm1554_vm1, %v1638_v54, %v9268_v39  ;;  %v1770_v21 = vadd.s32 1, %v7447_v43 }
 0x1c7   : > { %v7891_v46 = vpop.eup %7890  ;;  %v1624_v32 = vsub.s32 32, %v1623_v41  ;;  %v1628_v42 = vsub.s32 4294967266, %v1623_v41  ;;  %v1487_v56 = vsel %vm1481_vm10, %v1484_v15, %v1486_v10  ;;  %v1625_v27 = vshll.u32 %v9287_v58, %v1623_v41 }
 0x1c8   : > { %v7893_v12 = vpop.eup %7892  ;;  %v1340_v14 = vxor.u32 2147483648, %v7891_v46  ;;  %v1506_v63 = vadd.s32 1, %v9327_v48  ;;  %vm1771_vm13 = vcmp.gt.s32.totalorder %v1770_v21, 0  ;;  %v1503_v58 = vmul.u32 %v9293_v8, %v1487_v56 }
 0x1c9   : > { %v1337_v36 = vxor.u32 2147483648, %v7893_v12  ;;  %v1626_v39 = vshrl.u32 %v1608_v28, %v1624_v32  ;;  %v1629_v17 = vadd.s32 127, %v1628_v42  ;;  %vm1505_vm14 = vc.u32 %v9332_v53, %v9326_v34  ;;  %v267_v42 = vpop.permute.xlu0 %266 }
 0x1ca   : > { %v1341_v52 = vsel %vm1339_vm3, %v1340_v14, %v7893_v12  ;;  %v4764_v40 = vsel %vm4762_vm4, %v1340_v14, %v7893_v12  ;;  %v1507_v30 = vsel %vm1505_vm14, %v1506_v63, %v9327_v48  ;;  %v1772_v8 = vsel %vm1771_vm13, %v1770_v21, 0 }
 0x1cb   : > { %v1338_v55 = vsel %vm1336_vm5, %v7891_v46, %v1337_v36  ;;  %v4761_v23 = vsel %vm4759_vm6, %v7891_v46, %v1337_v36  ;;  %v1627_v60 = vor.u32 %v1626_v39, %v1625_v27  ;;  %v1630_v6 = vshll.u32 %v1629_v17, 23 }
 0x1cc   : > { %v1342_v16 = vsel %vm1335_vm8, %v1338_v55, %v1341_v52  ;;  %v4765_v33 = vsel %vm4758_vm9, %v4761_v23, %v4764_v40  ;;  %vm9369_vm15 = vcmp.le.f32.partialorder %v1552_v59, 0.7853982  ;;  %v1508_v54 = vadd.s32 %v1507_v30, %v1503_v58 }
 0x1cd   : > { %v1343_v1 = vsel %vm1332_vm11, nan, %v1342_v16  ;;  %v4766_v51 = vsel %vm1332_vm11, nan, %v4765_v33  ;;  %v1631_v20 = vor.u32 4788187, %v1630_v6  ;;  %v1767_v49 = vand.u32 8388607, %v1760_v19 }
 0x1ce   : > { %7247 = vst [vmem:[%s8473_s3 + $0x80] sm:$0xff] %v1343_v1  ;;  %7280 = vst [vmem:[%s8473_s3 + $0x88] sm:$0xff] %v4766_v51  ;;  %v1641_v18 = vsel %vm9369_vm15, 0, %v1639_v24  ;;  %v1774_v3 = vand.u32 31, %v1772_v8  ;;  %v1634_v31 = vcvt.s32.f32 %v1627_v60  ;;  %v1509_v38 = vadd.s32 536870912, %v1508_v54 }
 0x1cf   : > { %v1632_v37 = vand.u32 2147483647, %v1631_v20  ;;  %v1645_v0 = vadd.s32 3, %v1641_v18  ;;  %v1768_v59 = vor.u32 8388608, %v1767_v49  ;;  %v1773_v61 = vshrl.u32 %v1772_v8, 5 }
 0x1d0   : > { %v1775_v62 = vsub.s32 32, %v1774_v3  ;;  %v1510_v43 = vshrl.u32 %v1509_v38, 30  ;;  %v1777_v48 = vshll.u32 %v8056_v5, %v1774_v3  ;;  %vm1450_vm0 = vcmp.lt.s32.totalorder %v9170_v29, 0 }
 0x1d1   : > { %v1635_v4 = vmul.f32 %v1634_v31, %v1632_v37  ;;  %v1780_v46 = vshll.u32 %v8057_v7, %v1774_v3  ;;  %v1783_v28 = vshll.u32 %v8058_v9, %v1774_v3  ;;  %v1786_v41 = vshll.u32 %v8059_v11, %v1774_v3 }
 0x1d2   : > { %v1778_v15 = vshrl.u32 %v8057_v7, %v1775_v62  ;;  %v1781_v50 = vshrl.u32 %v8058_v9, %v1775_v62  ;;  %v1784_v25 = vshrl.u32 %v8059_v11, %v1775_v62  ;;  %v1511_v45 = vshll.u32 %v1510_v43, 30 }
 0x1d3   : > { %v1636_v10 = vxor.u32 2147483648, %v1635_v4  ;;  %v1787_v47 = vshrl.u32 %v8060_v13, %v1775_v62  ;;  %v1790_v24 = vshrl.u32 %v8061_v22, %v1775_v62  ;;  %v1789_v32 = vshll.u32 %v8060_v13, %v1774_v3 }
 0x1d4   : > { %v9389_v12 = vsub.s32 %v1508_v54, %v1511_v45  ;;  %v1779_v14 = vor.u32 %v1778_v15, %v1777_v48  ;;  %v1782_v36 = vor.u32 %v1781_v50, %v1780_v46  ;;  %v1785_v27 = vor.u32 %v1784_v25, %v1783_v28 }
 0x1d5   : > { %v1637_v21 = vsel %vm1554_vm1, %v1636_v10, %v1635_v4  ;;  %v1788_v63 = vor.u32 %v1787_v47, %v1786_v41  ;;  %v9395_v52 = vand.u32 3, %v1645_v0  ;;  %v9397_v40 = vand.u32 3, %v1641_v18 }
 0x1d6   : > { %v1640_v56 = vsel %vm9369_vm15, %v9062_v26, %v1637_v21  ;;  %v1514_v39 = vsub.s32 0, %v9389_v12  ;;  %v1791_v17 = vor.u32 %v1790_v24, %v1789_v32  ;;  %vm1792_vm1 = vcmp.lt.s32.totalorder %v1773_v61, 1 }
 0x1d7   : > { %7894 = vcosq.f32 %v1640_v56  ;;  %v9401_v55 = vmul.f32 %v9259_v44, %v267_v42  ;;  %vm9405_vm2 = vcmp.le.f32.partialorder %v1448_v35, 0.7853982  ;;  %v1534_v16 = vsub.s32 4, %v1510_v43 }
 0x1d8   : > { %7896 = vsinq.f32 %v1640_v56  ;;  %v7436_v58 = vmin.u32 %v1514_v39, %v9389_v12  ;;  %v1776_v33 = vshrl.u32 %v8056_v5, %v1775_v62  ;;  %vm1795_vm3 = vcmp.lt.s32.totalorder %v1773_v61, 4 }
 0x1d9   : > { %v1797_v60 = vsel %vm1795_vm3, %v1785_v27, 2102212464  ;;  %v1800_v6 = vsel %vm1792_vm1, %v1779_v14, %v1782_v36  ;;  %v1801_v1 = vsel %vm1795_vm3, %v1788_v63, 920167782  ;;  %v9411_v51 = vshll.u32 %v1768_v59, 8 }
 0x1da   : > { %vm5071_vm4 = vcmp.eq.s32.totalorder %v9397_v40, 2  ;;  %v1516_v30 = vclz %v7436_v58  ;;  %vm1794_vm5 = vcmp.lt.s32.totalorder %v1773_v61, 3  ;;  %v1796_v8 = vsel %vm1792_vm1, %v1776_v33, %v1779_v14 }
 0x1db   : > { %v1804_v35 = vsel %vm1792_vm1, %v1782_v36, %v1785_v27  ;;  %vm5068_vm6 = vcmp.eq.s32.totalorder %v9397_v40, 0  ;;  %vm1793_vm7 = vcmp.lt.s32.totalorder %v1773_v61, 2  ;;  %v1798_v57 = vsel %vm1794_vm5, %v1782_v36, %v1797_v60 }
 0x1dc   : > { %v1802_v20 = vsel %vm1794_vm5, %v1785_v27, %v1801_v1  ;;  %v1805_v54 = vsel %vm1795_vm3, %v1791_v17, 1326507024  ;;  %vm1647_vm8 = vcmp.lt.s32.totalorder %v9395_v52, 2  ;;  %vm5067_vm9 = vcmp.lt.s32.totalorder %v9397_v40, 2  ;;  %v282_v1 = vpop.permute.xlu1 %281 }
 0x1dd   : > { %v7437_v49 = vadd.s32 4294967294, %v1516_v30  ;;  %v1535_v18 = vsel %vm1450_vm0, %v1534_v16, %v1510_v43  ;;  %v1803_v3 = vsel %vm1793_vm7, %v1800_v6, %v1802_v20  ;;  %v1806_v37 = vsel %vm1794_vm5, %v1788_v63, %v1805_v54 }
 0x1de   : > { %vm1644_vm10 = vweird.f32 %v9062_v26  ;;  %v1799_v31 = vsel %vm1793_vm7, %v1796_v8, %v1798_v57  ;;  %v1807_v38 = vsel %vm1793_vm7, %v1804_v35, %v1806_v37  ;;  %v1659_v61 = vand.u32 2139095040, %v9401_v55 }
 0x1df   : > { %v9421_v62 = vmul.u32.u64.low %v9411_v51, %v1803_v3  ;;  %v9422_v4 = vmul.u32.u64.high %v9411_v51, %v1803_v3, %v9421_v62  ;;  %vm7438_vm11 = vcmp.lt.s32.totalorder %v7437_v49, 0  ;;  %vm1648_vm12 = vcmp.eq.s32.totalorder %v9395_v52, 0 }
 0x1e0   : > { %v9426_v0 = vmul.u32.u64.low %v9411_v51, %v1807_v38  ;;  %v9427_v59 = vmul.u32.u64.high %v9411_v51, %v1807_v38, %v9426_v0  ;;  %vm1651_vm13 = vcmp.eq.s32.totalorder %v9395_v52, 2  ;;  %v1504_v43 = vadd.s32 %v9326_v34, %v9332_v53 }
 0x1e1   : > { %v1519_v15 = vsel %vm7438_vm11, 0, %v7437_v49  ;;  %v7895_v50 = vpop.eup %7894  ;;  %v1656_v45 = vand.u32 2147483647, %v9401_v55  ;;  %v1660_v48 = vshrl.u32 %v1659_v61, 23  ;;  %v1537_v28 = vsel %vm9405_vm2, 0, %v1535_v18 }
 0x1e2   : > { %v1520_v25 = vsub.s32 32, %v1519_v15  ;;  %v1524_v10 = vsub.s32 4294967266, %v1519_v15  ;;  %v7897_v47 = vpop.eup %7896  ;;  %v1652_v46 = vxor.u32 2147483648, %v7895_v50  ;;  %v1815_v41 = vmul.u32 %v9411_v51, %v1799_v31 }
 0x1e3   : > { %v1818_v24 = vadd.s32 1, %v9422_v4  ;;  %v1649_v21 = vxor.u32 2147483648, %v7897_v47  ;;  %v1521_v14 = vshll.u32 %v9389_v12, %v1519_v15  ;;  %vm1817_vm14 = vc.u32 %v9427_v59, %v9421_v62 }
 0x1e4   : > { %v1522_v34 = vshrl.u32 %v1504_v43, %v1520_v25  ;;  %v1525_v53 = vadd.s32 127, %v1524_v10  ;;  %v1653_v32 = vsel %vm1651_vm13, %v1652_v46, %v7897_v47  ;;  %v5073_v42 = vsel %vm5071_vm4, %v1652_v46, %v7897_v47 }
 0x1e5   : > { %v7443_v56 = vadd.s32 4294967169, %v1660_v48  ;;  %v1650_v36 = vsel %vm1648_vm12, %v7895_v50, %v1649_v21  ;;  %v5070_v12 = vsel %vm5068_vm6, %v7895_v50, %v1649_v21  ;;  %v1819_v58 = vsel %vm1817_vm14, %v1818_v24, %v9422_v4 }
 0x1e6   : > { %v1523_v27 = vor.u32 %v1522_v34, %v1521_v14  ;;  %v1526_v63 = vshll.u32 %v1525_v53, 23  ;;  %v1654_v39 = vsel %vm1647_vm8, %v1650_v36, %v1653_v32  ;;  %v5074_v17 = vsel %vm5067_vm9, %v5070_v12, %v5073_v42 }
 0x1e7   : > { %v1666_v16 = vadd.s32 1, %v7443_v56  ;;  %v1655_v33 = vsel %vm1644_vm10, nan, %v1654_v39  ;;  %v5075_v60 = vsel %vm1644_vm10, nan, %v5074_v17  ;;  %v1541_v51 = vadd.s32 3, %v1537_v28 }
 0x1e8   : > { %v1527_v6 = vor.u32 4788187, %v1526_v63  ;;  %7250 = vst [vmem:[%s8473_s3 + $0xb0] sm:$0xff] %v1655_v33  ;;  %7283 = vst [vmem:[%s8473_s3 + $0xb8] sm:$0xff] %v5075_v60  ;;  %v1820_v30 = vadd.s32 %v1819_v58, %v1815_v41  ;;  %v1530_v8 = vcvt.s32.f32 %v1523_v27  ;;  %v1663_v40 = vand.u32 8388607, %v1656_v45 }
 0x1e9   : > { %vm1667_vm15 = vcmp.gt.s32.totalorder %v1666_v16, 0  ;;  %v9464_v54 = vmul.f32 %v9259_v44, %v282_v1  ;;  %vm1762_vm1 = vcmp.lt.s32.totalorder %v9262_v2, 0  ;;  %v9467_v37 = vand.u32 3, %v1541_v51 }
 0x1ea   : > { %v1528_v52 = vand.u32 2147483647, %v1527_v6  ;;  %v1668_v35 = vsel %vm1667_vm15, %v1666_v16, 0  ;;  %v1821_v57 = vadd.s32 536870912, %v1820_v30  ;;  %v9469_v31 = vand.u32 3, %v1537_v28 }
 0x1eb   : > { %v1670_v20 = vand.u32 31, %v1668_v35  ;;  %v1664_v38 = vor.u32 8388608, %v1663_v40  ;;  %v9471_v0 = vshrl.u32 %v1668_v35, 5  ;;  %v1971_v43 = vand.u32 2139095040, %v9464_v54 }
 0x1ec   : > { %v1531_v26 = vmul.f32 %v1530_v8, %v1528_v52  ;;  %v1822_v49 = vshrl.u32 %v1821_v57, 30  ;;  %v1968_v63 = vand.u32 2147483647, %v9464_v54  ;;  %vm4968_vm3 = vcmp.eq.s32.totalorder %v9469_v31, 2 }
 0x1ed   : > { %v1671_v18 = vsub.s32 32, %v1670_v20  ;;  %v1673_v46 = vshll.u32 %v8056_v5, %v1670_v20  ;;  %v1676_v28 = vshll.u32 %v8057_v7, %v1670_v20  ;;  %v1679_v24 = vshll.u32 %v8058_v9, %v1670_v20 }
 0x1ee   : > { %v1532_v3 = vxor.u32 2147483648, %v1531_v26  ;;  %v1823_v4 = vshll.u32 %v1822_v49, 30  ;;  %v1846_v41 = vsub.s32 4, %v1822_v49  ;;  %v1682_v21 = vshll.u32 %v8059_v11, %v1670_v20 }
 0x1ef   : > { %v1674_v61 = vshrl.u32 %v8057_v7, %v1671_v18  ;;  %v1677_v50 = vshrl.u32 %v8058_v9, %v1671_v18  ;;  %v1680_v25 = vshrl.u32 %v8059_v11, %v1671_v18  ;;  %v1683_v10 = vshrl.u32 %v8060_v13, %v1671_v18 }
 0x1f0   : > { %v1533_v15 = vsel %vm1450_vm0, %v1532_v3, %v1531_v26  ;;  %v9483_v47 = vsub.s32 %v1820_v30, %v1823_v4  ;;  %vm9491_vm0 = vcmp.le.f32.partialorder %v1760_v19, 0.7853982  ;;  %v1685_v53 = vshll.u32 %v8060_v13, %v1670_v20 }
 0x1f1   : > { %v1536_v48 = vsel %vm9405_vm2, %v9170_v29, %v1533_v15  ;;  %v1675_v34 = vor.u32 %v1674_v61, %v1673_v46  ;;  %v1678_v32 = vor.u32 %v1677_v50, %v1676_v28  ;;  %v1681_v42 = vor.u32 %v1680_v25, %v1679_v24 }
 0x1f2   : > { %7898 = vcosq.f32 %v1536_v48  ;;  %v1826_v23 = vsub.s32 0, %v9483_v47  ;;  %v1684_v56 = vor.u32 %v1683_v10, %v1682_v21  ;;  %v1686_v36 = vshrl.u32 %v8061_v22, %v1671_v18 }
 0x1f3   : > { %7900 = vsinq.f32 %v1536_v48  ;;  %v9499_v27 = vshll.u32 %v1664_v38, 8  ;;  %v1972_v19 = vshrl.u32 %v1971_v43, 23  ;;  %vm1547_vm2 = vcmp.eq.s32.totalorder %v9467_v37, 2 }
 0x1f4   : > { %v7448_v12 = vmin.u32 %v1826_v23, %v9483_v47  ;;  %v1847_v39 = vsel %vm1762_vm1, %v1846_v41, %v1822_v49  ;;  %v1672_v17 = vshrl.u32 %v8056_v5, %v1671_v18  ;;  %v1687_v58 = vor.u32 %v1686_v36, %v1685_v53 }
 0x1f5   : > { %vm1688_vm4 = vcmp.lt.s32.totalorder %v9471_v0, 1  ;;  %vm1544_vm5 = vcmp.eq.s32.totalorder %v9467_v37, 0  ;;  %vm4965_vm6 = vcmp.eq.s32.totalorder %v9469_v31, 0  ;;  %vm1689_vm7 = vcmp.lt.s32.totalorder %v9471_v0, 2 }
 0x1f6   : > { %v1828_v16 = vclz %v7448_v12  ;;  %vm1690_vm8 = vcmp.lt.s32.totalorder %v9471_v0, 3  ;;  %vm1691_vm9 = vcmp.lt.s32.totalorder %v9471_v0, 4  ;;  %vm1543_vm10 = vcmp.lt.s32.totalorder %v9467_v37, 2 }
 0x1f7   : > { %vm4964_vm11 = vcmp.lt.s32.totalorder %v9469_v31, 2  ;;  %v1692_v33 = vsel %vm1688_vm4, %v1672_v17, %v1675_v34  ;;  %v1693_v60 = vsel %vm1691_vm9, %v1681_v42, 2102212464  ;;  %v1696_v6 = vsel %vm1688_vm4, %v1675_v34, %v1678_v32 }
 0x1f8   : > { %v1697_v1 = vsel %vm1691_vm9, %v1684_v56, 920167782  ;;  %vm1540_vm12 = vweird.f32 %v9170_v29  ;;  %v7449_v51 = vadd.s32 4294967294, %v1828_v16  ;;  %v1694_v30 = vsel %vm1690_vm8, %v1678_v32, %v1693_v60  ;;  %v277_v60 = vpop.permute.xlu0 %276 }
 0x1f9   : > { %v1698_v52 = vsel %vm1690_vm8, %v1681_v42, %v1697_v1  ;;  %v1700_v8 = vsel %vm1688_vm4, %v1678_v32, %v1681_v42  ;;  %v1816_v40 = vadd.s32 %v9421_v62, %v9427_v59  ;;  %v1701_v57 = vsel %vm1691_vm9, %v1687_v58, 1326507024 }
 0x1fa   : > { %v1699_v35 = vsel %vm1689_vm7, %v1696_v6, %v1698_v52  ;;  %v7455_v20 = vadd.s32 4294967169, %v1972_v19  ;;  %vm7450_vm13 = vcmp.lt.s32.totalorder %v7449_v51, 0  ;;  %v1702_v26 = vsel %vm1690_vm8, %v1684_v56, %v1701_v57 }
 0x1fb   : > { %v9533_v49 = vmul.u32.u64.low %v9499_v27, %v1699_v35  ;;  %v9534_v18 = vmul.u32.u64.high %v9499_v27, %v1699_v35, %v9533_v49  ;;  %v1831_v38 = vsel %vm7450_vm13, 0, %v7449_v51  ;;  %v1849_v4 = vsel %vm9491_vm0, 0, %v1847_v39 }
 0x1fc   : > { %v7899_v3 = vpop.eup %7898  ;;  %v1695_v62 = vsel %vm1689_vm7, %v1692_v33, %v1694_v30  ;;  %v1703_v59 = vsel %vm1689_vm7, %v1700_v8, %v1702_v26  ;;  %v1832_v15 = vsub.s32 32, %v1831_v38  ;;  %v1833_v50 = vshll.u32 %v9483_v47, %v1831_v38 }
 0x1fd   : > { %v7901_v61 = vpop.eup %7900  ;;  %v1548_v43 = vxor.u32 2147483648, %v7899_v3  ;;  %v1836_v25 = vsub.s32 4294967266, %v1831_v38  ;;  %v9545_v48 = vmul.u32.u64.low %v9499_v27, %v1703_v59  ;;  %v9546_v46 = vmul.u32.u64.high %v9499_v27, %v1703_v59, %v9545_v48 }
 0x1fe   : > { %v1545_v10 = vxor.u32 2147483648, %v7901_v61  ;;  %v1978_v28 = vadd.s32 1, %v7455_v20  ;;  %v1834_v24 = vshrl.u32 %v1816_v40, %v1832_v15  ;;  %v1714_v34 = vadd.s32 1, %v9534_v18 }
 0x1ff   : > { %v1549_v41 = vsel %vm1547_vm2, %v1548_v43, %v7901_v61  ;;  %v4970_v0 = vsel %vm4968_vm3, %v1548_v43, %v7901_v61  ;;  %v1837_v21 = vadd.s32 127, %v1836_v25  ;;  %v1711_v19 = vmul.u32 %v9499_v27, %v1695_v62 }
 0x200   : > { %v1546_v47 = vsel %vm1544_vm5, %v7899_v3, %v1545_v10  ;;  %v4967_v23 = vsel %vm4965_vm6, %v7899_v3, %v1545_v10  ;;  %vm1979_vm14 = vcmp.gt.s32.totalorder %v1978_v28, 0  ;;  %v1835_v42 = vor.u32 %v1834_v24, %v1833_v50 }
 0x201   : > { %v1550_v53 = vsel %vm1543_vm10, %v1546_v47, %v1549_v41  ;;  %v4971_v32 = vsel %vm4964_vm11, %v4967_v23, %v4970_v0  ;;  %v1838_v56 = vshll.u32 %v1837_v21, 23  ;;  %vm1713_vm15 = vc.u32 %v9546_v46, %v9533_v49 }
 0x202   : > { %v1551_v36 = vsel %vm1540_vm12, nan, %v1550_v53  ;;  %v4972_v12 = vsel %vm1540_vm12, nan, %v4971_v32  ;;  %v1715_v39 = vsel %vm1713_vm15, %v1714_v34, %v9534_v18  ;;  %v1980_v31 = vsel %vm1979_vm14, %v1978_v28, 0 }
 0x203   : > { %7249 = vst [vmem:[%s8473_s3 + $0xa0] sm:$0xff] %v1551_v36  ;;  %7282 = vst [vmem:[%s8473_s3 + $0xa8] sm:$0xff] %v4972_v12  ;;  %v1839_v37 = vor.u32 4788187, %v1838_v56  ;;  %v1853_v17 = vadd.s32 3, %v1849_v4  ;;  %v1716_v58 = vadd.s32 %v1715_v39, %v1711_v19  ;;  %v1982_v33 = vand.u32 31, %v1980_v31 }
 0x204   : > { %v1975_v16 = vand.u32 8388607, %v1968_v63  ;;  %v1842_v6 = vcvt.s32.f32 %v1835_v42  ;;  %v9574_v30 = vmul.f32 %v9259_v44, %v277_v60  ;;  %v9578_v8 = vand.u32 3, %v1849_v4 }
 0x205   : > { %v1840_v29 = vand.u32 2147483647, %v1839_v37  ;;  %v1717_v1 = vadd.s32 536870912, %v1716_v58  ;;  %v1983_v27 = vsub.s32 32, %v1982_v33  ;;  %v9576_v52 = vand.u32 3, %v1853_v17 }
 0x206   : > { %v1976_v35 = vor.u32 8388608, %v1975_v16  ;;  %v9586_v38 = vshrl.u32 %v1980_v31, 5  ;;  %v1985_v62 = vshll.u32 %v8056_v5, %v1982_v33  ;;  %v1988_v61 = vshll.u32 %v8057_v7, %v1982_v33 }
 0x207   : > { %v1843_v51 = vmul.f32 %v1842_v6, %v1840_v29  ;;  %v9580_v40 = vshrl.u32 %v1717_v1, 30  ;;  %v1986_v20 = vshrl.u32 %v8057_v7, %v1983_v27  ;;  %v1989_v26 = vshrl.u32 %v8058_v9, %v1983_v27 }
 0x208   : > { %v1995_v18 = vshrl.u32 %v8060_v13, %v1983_v27  ;;  %v1992_v59 = vshrl.u32 %v8059_v11, %v1983_v27  ;;  %v1994_v43 = vshll.u32 %v8059_v11, %v1982_v33  ;;  %v1998_v15 = vshrl.u32 %v8061_v22, %v1983_v27 }
 0x209   : > { %v1844_v57 = vxor.u32 2147483648, %v1843_v51  ;;  %v1719_v3 = vshll.u32 %v9580_v40, 30  ;;  %v1991_v10 = vshll.u32 %v8058_v9, %v1982_v33  ;;  %v1997_v48 = vshll.u32 %v8060_v13, %v1982_v33 }
 0x20a   : > { %v1987_v28 = vor.u32 %v1986_v20, %v1985_v62  ;;  %v1990_v41 = vor.u32 %v1989_v26, %v1988_v61  ;;  %v1996_v0 = vor.u32 %v1995_v18, %v1994_v43  ;;  %v1867_v47 = vand.u32 2139095040, %v9574_v30 }
 0x20b   : > { %v1845_v4 = vsel %vm1762_vm1, %v1844_v57, %v1843_v51  ;;  %v9598_v25 = vsub.s32 %v1716_v58, %v1719_v3  ;;  %v1993_v21 = vor.u32 %v1992_v59, %v1991_v10  ;;  %vm1658_vm1 = vcmp.lt.s32.totalorder %v9401_v55, 0 }
 0x20c   : > { %v1848_v50 = vsel %vm9491_vm0, %v9262_v2, %v1845_v4  ;;  %v1999_v14 = vor.u32 %v1998_v15, %v1997_v48  ;;  %vm2000_vm0 = vcmp.lt.s32.totalorder %v9586_v38, 1  ;;  %vm2003_vm2 = vcmp.lt.s32.totalorder %v9586_v38, 4 }
 0x20d   : > { %7902 = vcosq.f32 %v1848_v50  ;;  %v1722_v24 = vsub.s32 0, %v9598_v25  ;;  %v9608_v34 = vshll.u32 %v1976_v35, 8  ;;  %vm1859_vm3 = vcmp.eq.s32.totalorder %v9576_v52, 2 }
 0x20e   : > { %7904 = vsinq.f32 %v1848_v50  ;;  %vm5277_vm4 = vcmp.eq.s32.totalorder %v9578_v8, 2  ;;  %v1984_v53 = vshrl.u32 %v8056_v5, %v1983_v27  ;;  %vm2002_vm5 = vcmp.lt.s32.totalorder %v9586_v38, 3 }
 0x20f   : > { %v7444_v23 = vmin.u32 %v1722_v24, %v9598_v25  ;;  %v2008_v32 = vsel %vm2000_vm0, %v1987_v28, %v1990_v41  ;;  %v2009_v42 = vsel %vm2003_vm2, %v1996_v0, 920167782  ;;  %vm1856_vm6 = vcmp.eq.s32.totalorder %v9576_v52, 0 }
 0x210   : > { %vm5274_vm7 = vcmp.eq.s32.totalorder %v9578_v8, 0  ;;  %v2005_v36 = vsel %vm2003_vm2, %v1993_v21, 2102212464  ;;  %v2012_v12 = vsel %vm2000_vm0, %v1990_v41, %v1993_v21  ;;  %v1868_v19 = vshrl.u32 %v1867_v47, 23 }
 0x211   : > { %v1724_v56 = vclz %v7444_v23  ;;  %vm1855_vm8 = vcmp.lt.s32.totalorder %v9576_v52, 2  ;;  %vm5273_vm9 = vcmp.lt.s32.totalorder %v9578_v8, 2  ;;  %v1742_v37 = vsub.s32 4, %v9580_v40 }
 0x212   : > { %vm2001_vm10 = vcmp.lt.s32.totalorder %v9586_v38, 2  ;;  %v2010_v39 = vsel %vm2002_vm5, %v1993_v21, %v2009_v42  ;;  %v2013_v31 = vsel %vm2003_vm2, %v1999_v14, 1326507024  ;;  %vm1852_vm11 = vweird.f32 %v9262_v2 }
 0x213   : > { %v7445_v17 = vadd.s32 4294967294, %v1724_v56  ;;  %v2004_v58 = vsel %vm2000_vm0, %v1984_v53, %v1987_v28  ;;  %v2011_v16 = vsel %vm2001_vm10, %v2008_v32, %v2010_v39  ;;  %v2014_v33 = vsel %vm2002_vm5, %v1996_v0, %v2013_v31 }
 0x214   : > { %v2006_v60 = vsel %vm2002_vm5, %v1990_v41, %v2005_v36  ;;  %v2015_v29 = vsel %vm2001_vm10, %v2012_v12, %v2014_v33  ;;  %v9644_v6 = vmul.u32.u64.low %v9608_v34, %v2011_v16  ;;  %v9645_v1 = vmul.u32.u64.high %v9608_v34, %v2011_v16, %v9644_v6 }
 0x215   : > { %vm7446_vm12 = vcmp.lt.s32.totalorder %v7445_v17, 0  ;;  %v9649_v27 = vmul.u32.u64.low %v9608_v34, %v2015_v29  ;;  %v9650_v51 = vmul.u32.u64.high %v9608_v34, %v2015_v29, %v9649_v27  ;;  %v7451_v35 = vadd.s32 4294967169, %v1868_v19 }
 0x216   : > { %v1712_v20 = vadd.s32 %v9533_v49, %v9546_v46  ;;  %v1727_v26 = vsel %vm7446_vm12, 0, %v7445_v17  ;;  %v1743_v18 = vsel %vm1658_vm1, %v1742_v37, %v9580_v40  ;;  %v1864_v3 = vand.u32 2147483647, %v9574_v30  ;;  %v292_v37 = vpop.permute.xlu1 %291 }
 0x217   : > { %v7903_v57 = vpop.eup %7902  ;;  %v1728_v4 = vsub.s32 32, %v1727_v26  ;;  %v1732_v61 = vsub.s32 4294967266, %v1727_v26  ;;  %v2007_v43 = vsel %vm2001_vm10, %v2004_v58, %v2006_v60  ;;  %v1729_v50 = vshll.u32 %v9598_v25, %v1727_v26 }
 0x218   : > { %v7905_v62 = vpop.eup %7904  ;;  %v1860_v59 = vxor.u32 2147483648, %v7903_v57  ;;  %v2026_v10 = vadd.s32 1, %v9645_v1  ;;  %v1874_v49 = vadd.s32 1, %v7451_v35  ;;  %v2023_v25 = vmul.u32 %v9608_v34, %v2007_v43 }
 0x219   : > { %v1857_v15 = vxor.u32 2147483648, %v7905_v62  ;;  %v1730_v48 = vshrl.u32 %v1712_v20, %v1728_v4  ;;  %v1733_v28 = vadd.s32 127, %v1732_v61  ;;  %vm2025_vm13 = vc.u32 %v9650_v51, %v9644_v6 }
 0x21a   : > { %v1861_v46 = vsel %vm1859_vm3, %v1860_v59, %v7905_v62  ;;  %v5279_v40 = vsel %vm5277_vm4, %v1860_v59, %v7905_v62  ;;  %v2027_v53 = vsel %vm2025_vm13, %v2026_v10, %v9645_v1  ;;  %vm1875_vm14 = vcmp.gt.s32.totalorder %v1874_v49, 0 }
 0x21b   : > { %v1858_v38 = vsel %vm1856_vm6, %v7903_v57, %v1857_v15  ;;  %v5276_v41 = vsel %vm5274_vm7, %v7903_v57, %v1857_v15  ;;  %v1731_v21 = vor.u32 %v1730_v48, %v1729_v50  ;;  %v1734_v47 = vshll.u32 %v1733_v28, 23 }
 0x21c   : > { %v1862_v0 = vsel %vm1855_vm8, %v1858_v38, %v1861_v46  ;;  %v5280_v24 = vsel %vm5273_vm9, %v5276_v41, %v5279_v40  ;;  %vm9686_vm15 = vcmp.le.f32.partialorder %v1656_v45, 0.7853982  ;;  %v2028_v34 = vadd.s32 %v2027_v53, %v2023_v25 }
 0x21d   : > { %v1863_v14 = vsel %vm1852_vm11, nan, %v1862_v0  ;;  %v5281_v23 = vsel %vm1852_vm11, nan, %v5280_v24  ;;  %v1735_v8 = vor.u32 4788187, %v1734_v47  ;;  %v1876_v32 = vsel %vm1875_vm14, %v1874_v49, 0 }
 0x21e   : > { %7252 = vst [vmem:[%s8473_s3 + $0xd0] sm:$0xff] %v1863_v14  ;;  %7285 = vst [vmem:[%s8473_s3 + $0xd8] sm:$0xff] %v5281_v23  ;;  %v1745_v42 = vsel %vm9686_vm15, 0, %v1743_v18  ;;  %v1871_v2 = vand.u32 8388607, %v1864_v3  ;;  %v1878_v56 = vand.u32 31, %v1876_v32  ;;  %v1738_v12 = vcvt.s32.f32 %v1731_v21 }
 0x21f   : > { %v1736_v36 = vand.u32 2147483647, %v1735_v8  ;;  %v2029_v19 = vadd.s32 536870912, %v2028_v34  ;;  %v1749_v45 = vadd.s32 3, %v1745_v42  ;;  %v9694_v58 = vand.u32 3, %v1745_v42 }
 0x220   : > { %v1879_v39 = vsub.s32 32, %v1878_v56  ;;  %v1872_v16 = vor.u32 8388608, %v1871_v2  ;;  %v9698_v60 = vmul.f32 %v9259_v44, %v292_v37  ;;  %v1877_v57 = vshrl.u32 %v1876_v32, 5 }
 0x221   : > { %v1739_v31 = vmul.f32 %v1738_v12, %v1736_v36  ;;  %v2030_v17 = vshrl.u32 %v2029_v19, 30  ;;  %v1887_v20 = vshll.u32 %v8058_v9, %v1878_v56  ;;  %vm1970_vm0 = vcmp.lt.s32.totalorder %v9464_v54, 0 }
 0x222   : > { %v1888_v33 = vshrl.u32 %v8059_v11, %v1879_v39  ;;  %v1882_v27 = vshrl.u32 %v8057_v7, %v1879_v39  ;;  %v1885_v35 = vshrl.u32 %v8058_v9, %v1879_v39  ;;  %v1891_v26 = vshrl.u32 %v8060_v13, %v1879_v39 }
 0x223   : > { %v1740_v29 = vxor.u32 2147483648, %v1739_v31  ;;  %v2031_v1 = vshll.u32 %v2030_v17, 30  ;;  %v1894_v18 = vshrl.u32 %v8061_v22, %v1879_v39  ;;  %v1881_v59 = vshll.u32 %v8056_v5, %v1878_v56 }
 0x224   : > { %v1884_v4 = vshll.u32 %v8057_v7, %v1878_v56  ;;  %v1889_v43 = vor.u32 %v1888_v33, %v1887_v20  ;;  %v1890_v15 = vshll.u32 %v8059_v11, %v1878_v56  ;;  %v1893_v50 = vshll.u32 %v8060_v13, %v1878_v56 }
 0x225   : > { %v1741_v62 = vsel %vm1658_vm1, %v1740_v29, %v1739_v31  ;;  %v9708_v44 = vsub.s32 %v2028_v34, %v2031_v1  ;;  %v1883_v49 = vor.u32 %v1882_v27, %v1881_v59  ;;  %v9718_v40 = vand.u32 3, %v1749_v45 }
 0x226   : > { %v1744_v61 = vsel %vm9686_vm15, %v9401_v55, %v1741_v62  ;;  %v1886_v46 = vor.u32 %v1885_v35, %v1884_v4  ;;  %v1892_v48 = vor.u32 %v1891_v26, %v1890_v15  ;;  %v1895_v28 = vor.u32 %v1894_v18, %v1893_v50 }
 0x227   : > { %7906 = vcosq.f32 %v1744_v61  ;;  %v2034_v10 = vsub.s32 0, %v9708_v44  ;;  %vm9722_vm1 = vcmp.le.f32.partialorder %v1968_v63, 0.7853982  ;;  %v1880_v25 = vshrl.u32 %v8056_v5, %v1879_v39 }
 0x228   : > { %7908 = vsinq.f32 %v1744_v61  ;;  %vm1899_vm2 = vcmp.lt.s32.totalorder %v1877_v57, 4  ;;  %v9728_v0 = vshll.u32 %v1872_v16, 8  ;;  %v2054_v24 = vsub.s32 4, %v2030_v17 }
 0x229   : > { %v7456_v41 = vmin.u32 %v2034_v10, %v9708_v44  ;;  %vm1896_vm3 = vcmp.lt.s32.totalorder %v1877_v57, 1  ;;  %v1901_v21 = vsel %vm1899_vm2, %v1889_v43, 2102212464  ;;  %v2179_v47 = vand.u32 2139095040, %v9698_v60 }
 0x22a   : > { %vm5174_vm4 = vcmp.eq.s32.totalorder %v9694_v58, 2  ;;  %vm1898_vm5 = vcmp.lt.s32.totalorder %v1877_v57, 3  ;;  %v1900_v63 = vsel %vm1896_vm3, %v1880_v25, %v1883_v49  ;;  %v1904_v23 = vsel %vm1896_vm3, %v1883_v49, %v1886_v46 }
 0x22b   : > { %v2036_v14 = vclz %v7456_v41  ;;  %vm1752_vm6 = vcmp.eq.s32.totalorder %v9718_v40, 0  ;;  %vm5171_vm7 = vcmp.eq.s32.totalorder %v9694_v58, 0  ;;  %v1902_v53 = vsel %vm1898_vm5, %v1886_v46, %v1901_v21  ;;  %v287_v21 = vpop.permute.xlu0 %286 }
 0x22c   : > { %v1905_v52 = vsel %vm1899_vm2, %v1892_v48, 920167782  ;;  %v1908_v8 = vsel %vm1896_vm3, %v1886_v46, %v1889_v43  ;;  %v1909_v34 = vsel %vm1899_vm2, %v1895_v28, 1326507024  ;;  %vm1751_vm8 = vcmp.lt.s32.totalorder %v9718_v40, 2 }
 0x22d   : > { %vm5170_vm9 = vcmp.lt.s32.totalorder %v9694_v58, 2  ;;  %v7457_v32 = vadd.s32 4294967294, %v2036_v14  ;;  %vm1897_vm10 = vcmp.lt.s32.totalorder %v1877_v57, 2  ;;  %v1906_v42 = vsel %vm1898_vm5, %v1889_v43, %v1905_v52 }
 0x22e   : > { %v1910_v2 = vsel %vm1898_vm5, %v1892_v48, %v1909_v34  ;;  %vm1748_vm11 = vweird.f32 %v9401_v55  ;;  %v2055_v56 = vsel %vm1970_vm0, %v2054_v24, %v2030_v17  ;;  %v1903_v36 = vsel %vm1897_vm10, %v1900_v63, %v1902_v53  ;;  %v9786_v55 = vld [vmem:[%s11562_s1] ss:$0 sm:$0xff] }
 0x22f   : > { %v1907_v12 = vsel %vm1897_vm10, %v1904_v23, %v1906_v42  ;;  %v1911_v19 = vsel %vm1897_vm10, %v1908_v8, %v1910_v2  ;;  %vm7458_vm12 = vcmp.lt.s32.totalorder %v7457_v32, 0  ;;  %v2180_v31 = vshrl.u32 %v2179_v47, 23 }
 0x230   : > { %v9743_v37 = vmul.u32.u64.low %v9728_v0, %v1911_v19  ;;  %v9744_v39 = vmul.u32.u64.high %v9728_v0, %v1911_v19, %v9743_v37  ;;  %vm1755_vm13 = vcmp.eq.s32.totalorder %v9718_v40, 2  ;;  %v2039_v45 = vsel %vm7458_vm12, 0, %v7457_v32 }
 0x231   : > { %v9748_v16 = vmul.u32.u64.low %v9728_v0, %v1907_v12  ;;  %v9749_v33 = vmul.u32.u64.high %v9728_v0, %v1907_v12, %v9748_v16  ;;  %v7907_v29 = vpop.eup %7906  ;;  %v2024_v17 = vadd.s32 %v9644_v6, %v9650_v51  ;;  %v2040_v1 = vsub.s32 32, %v2039_v45 }
 0x232   : > { %v2044_v27 = vsub.s32 4294967266, %v2039_v45  ;;  %v2176_v35 = vand.u32 2147483647, %v9698_v60  ;;  %v7909_v57 = vpop.eup %7908  ;;  %v1756_v20 = vxor.u32 2147483648, %v7907_v29  ;;  %v2057_v26 = vsel %vm9722_vm1, 0, %v2055_v56 }
 0x233   : > { %v1919_v18 = vmul.u32 %v9728_v0, %v1903_v36  ;;  %v7463_v62 = vadd.s32 4294967169, %v2180_v31  ;;  %v1753_v59 = vxor.u32 2147483648, %v7909_v57  ;;  %v2041_v4 = vshll.u32 %v9708_v44, %v2039_v45 }
 0x234   : > { %v2042_v61 = vshrl.u32 %v2024_v17, %v2040_v1  ;;  %v2045_v43 = vadd.s32 127, %v2044_v27  ;;  %v1757_v6 = vsel %vm1755_vm13, %v1756_v20, %v7909_v57  ;;  %v5176_v51 = vsel %vm5174_vm4, %v1756_v20, %v7909_v57 }
 0x235   : > { %vm1921_vm14 = vc.u32 %v9744_v39, %v9748_v16  ;;  %v1922_v15 = vadd.s32 1, %v9749_v33  ;;  %v1754_v50 = vsel %vm1752_vm6, %v7907_v29, %v1753_v59  ;;  %v5173_v44 = vsel %vm5171_vm7, %v7907_v29, %v1753_v59 }
 0x236   : > { %v2043_v10 = vor.u32 %v2042_v61, %v2041_v4  ;;  %v2046_v49 = vshll.u32 %v2045_v43, 23  ;;  %v1758_v46 = vsel %vm1751_vm8, %v1754_v50, %v1757_v6  ;;  %v5177_v48 = vsel %vm5170_vm9, %v5173_v44, %v5176_v51 }
 0x237   : > { %v1923_v28 = vsel %vm1921_vm14, %v1922_v15, %v9749_v33  ;;  %v2186_v41 = vadd.s32 1, %v7463_v62  ;;  %v1759_v25 = vsel %vm1748_vm11, nan, %v1758_v46  ;;  %v5178_v0 = vsel %vm1748_vm11, nan, %v5177_v48 }
 0x238   : > { %v2047_v24 = vor.u32 4788187, %v2046_v49  ;;  %7251 = vst [vmem:[%s8473_s3 + $0xc0] sm:$0xff] %v1759_v25  ;;  %7284 = vst [vmem:[%s8473_s3 + $0xc8] sm:$0xff] %v5178_v0  ;;  %v2061_v47 = vadd.s32 3, %v2057_v26  ;;  %v1924_v14 = vadd.s32 %v1923_v28, %v1919_v18  ;;  %v2050_v63 = vcvt.s32.f32 %v2043_v10 }
 0x239   : > { %vm2187_vm15 = vcmp.gt.s32.totalorder %v2186_v41, 0  ;;  %v2183_v58 = vand.u32 8388607, %v2176_v35  ;;  %v9789_v8 = vmul.f32 %v9786_v55, %v287_v21  ;;  %vm1866_vm2 = vcmp.lt.s32.totalorder %v9574_v30, 0 }
 0x23a   : > { %v2048_v40 = vand.u32 2147483647, %v2047_v24  ;;  %v2188_v23 = vsel %vm2187_vm15, %v2186_v41, 0  ;;  %v1925_v53 = vadd.s32 536870912, %v1924_v14  ;;  %v9792_v56 = vand.u32 3, %v2061_v47 }
 0x23b   : > { %v2190_v52 = vand.u32 31, %v2188_v23  ;;  %v9794_v36 = vand.u32 3, %v2057_v26  ;;  %v2184_v12 = vor.u32 8388608, %v2183_v58  ;;  %v9796_v37 = vshrl.u32 %v2188_v23, 5 }
 0x23c   : > { %v2051_v34 = vmul.f32 %v2050_v63, %v2048_v40  ;;  %v1926_v32 = vshrl.u32 %v1925_v53, 30  ;;  %v2075_v45 = vand.u32 2139095040, %v9789_v8  ;;  %v1920_v44 = vadd.s32 %v9748_v16, %v9744_v39 }
 0x23d   : > { %v2191_v42 = vsub.s32 32, %v2190_v52  ;;  %v2193_v20 = vshll.u32 %v8056_v5, %v2190_v52  ;;  %v2196_v26 = vshll.u32 %v8057_v7, %v2190_v52  ;;  %v2199_v62 = vshll.u32 %v8058_v9, %v2190_v52 }
 0x23e   : > { %v2052_v2 = vxor.u32 2147483648, %v2051_v34  ;;  %v1927_v19 = vshll.u32 %v1926_v32, 30  ;;  %v1950_v18 = vsub.s32 4, %v1926_v32  ;;  %v2202_v59 = vshll.u32 %v8059_v11, %v2190_v52 }
 0x23f   : > { %v2194_v31 = vshrl.u32 %v8057_v7, %v2191_v42  ;;  %v2197_v29 = vshrl.u32 %v8058_v9, %v2191_v42  ;;  %v2200_v17 = vshrl.u32 %v8059_v11, %v2191_v42  ;;  %v2203_v1 = vshrl.u32 %v8060_v13, %v2191_v42 }
 0x240   : > { %v2053_v33 = vsel %vm1970_vm0, %v2052_v2, %v2051_v34  ;;  %v9808_v57 = vsub.s32 %v1924_v14, %v1927_v19  ;;  %vm9816_vm0 = vcmp.le.f32.partialorder %v1864_v3, 0.7853982  ;;  %v2205_v43 = vshll.u32 %v8060_v13, %v2190_v52 }
 0x241   : > { %v2056_v27 = vsel %vm9722_vm1, %v9464_v54, %v2053_v33  ;;  %v2195_v61 = vor.u32 %v2194_v31, %v2193_v20  ;;  %v2198_v6 = vor.u32 %v2197_v29, %v2196_v26  ;;  %v2201_v51 = vor.u32 %v2200_v17, %v2199_v62 }
 0x242   : > { %7910 = vcosq.f32 %v2056_v27  ;;  %v1930_v38 = vsub.s32 0, %v9808_v57  ;;  %v2204_v15 = vor.u32 %v2203_v1, %v2202_v59  ;;  %v2206_v50 = vshrl.u32 %v8061_v22, %v2191_v42 }
 0x243   : > { %7912 = vsinq.f32 %v2056_v27  ;;  %v9826_v49 = vshll.u32 %v2184_v12, 8  ;;  %v2076_v3 = vshrl.u32 %v2075_v45, 23  ;;  %vm2067_vm1 = vcmp.eq.s32.totalorder %v9792_v56, 2 }
 0x244   : > { %v7452_v10 = vmin.u32 %v1930_v38, %v9808_v57  ;;  %vm5483_vm3 = vcmp.eq.s32.totalorder %v9794_v36, 2  ;;  %v1951_v46 = vsel %vm1866_vm2, %v1950_v18, %v1926_v32  ;;  %v2192_v48 = vshrl.u32 %v8056_v5, %v2191_v42 }
 0x245   : > { %v2207_v28 = vor.u32 %v2206_v50, %v2205_v43  ;;  %vm2208_vm4 = vcmp.lt.s32.totalorder %v9796_v37, 1  ;;  %vm2064_vm5 = vcmp.eq.s32.totalorder %v9792_v56, 0  ;;  %vm5480_vm6 = vcmp.eq.s32.totalorder %v9794_v36, 0 }
 0x246   : > { %v1932_v39 = vclz %v7452_v10  ;;  %vm2209_vm7 = vcmp.lt.s32.totalorder %v9796_v37, 2  ;;  %vm2210_vm8 = vcmp.lt.s32.totalorder %v9796_v37, 3  ;;  %vm2211_vm9 = vcmp.lt.s32.totalorder %v9796_v37, 4 }
 0x247   : > { %vm2063_vm10 = vcmp.lt.s32.totalorder %v9792_v56, 2  ;;  %vm5479_vm11 = vcmp.lt.s32.totalorder %v9794_v36, 2  ;;  %v2212_v16 = vsel %vm2208_vm4, %v2192_v48, %v2195_v61  ;;  %v2213_v41 = vsel %vm2211_vm9, %v2201_v51, 2102212464 }
 0x248   : > { %v2216_v25 = vsel %vm2208_vm4, %v2195_v61, %v2198_v6  ;;  %v2217_v0 = vsel %vm2211_vm9, %v2204_v15, 920167782  ;;  %vm2060_vm12 = vweird.f32 %v9464_v54  ;;  %v7453_v24 = vadd.s32 4294967294, %v1932_v39 }
 0x249   : > { %v2214_v21 = vsel %vm2210_vm8, %v2198_v6, %v2213_v41  ;;  %v2218_v47 = vsel %vm2210_vm8, %v2201_v51, %v2217_v0  ;;  %v2220_v14 = vsel %vm2208_vm4, %v2198_v6, %v2201_v51  ;;  %v2221_v63 = vsel %vm2211_vm9, %v2207_v28, 1326507024 }
 0x24a   : > { %v2219_v40 = vsel %vm2209_vm7, %v2216_v25, %v2218_v47  ;;  %v2072_v58 = vand.u32 2147483647, %v9789_v8  ;;  %v7459_v23 = vadd.s32 4294967169, %v2076_v3  ;;  %vm7454_vm13 = vcmp.lt.s32.totalorder %v7453_v24, 0 }
 0x24b   : > { %v2222_v53 = vsel %vm2210_vm8, %v2204_v15, %v2221_v63  ;;  %v9858_v52 = vmul.u32.u64.low %v9826_v49, %v2219_v40  ;;  %v9859_v34 = vmul.u32.u64.high %v9826_v49, %v2219_v40, %v9858_v52  ;;  %v1935_v42 = vsel %vm7454_vm13, 0, %v7453_v24 }
 0x24c   : > { %v7911_v32 = vpop.eup %7910  ;;  %v1953_v2 = vsel %vm9816_vm0, 0, %v1951_v46  ;;  %v2215_v12 = vsel %vm2209_vm7, %v2212_v16, %v2214_v21  ;;  %v2223_v19 = vsel %vm2209_vm7, %v2220_v14, %v2222_v53  ;;  %v1936_v33 = vsub.s32 32, %v1935_v42 }
 0x24d   : > { %v7913_v31 = vpop.eup %7912  ;;  %v2068_v45 = vxor.u32 2147483648, %v7911_v32  ;;  %v1937_v29 = vshll.u32 %v9808_v57, %v1935_v42  ;;  %v1940_v17 = vsub.s32 4294967266, %v1935_v42  ;;  %v2082_v26 = vadd.s32 1, %v7459_v23 }
 0x24e   : > { %v2065_v1 = vxor.u32 2147483648, %v7913_v31  ;;  %v9870_v27 = vmul.u32.u64.low %v9826_v49, %v2223_v19  ;;  %v9871_v20 = vmul.u32.u64.high %v9826_v49, %v2223_v19, %v9870_v27  ;;  %v1938_v62 = vshrl.u32 %v1920_v44, %v1936_v33 }
 0x24f   : > { %v2069_v18 = vsel %vm2067_vm1, %v2068_v45, %v7913_v31  ;;  %v5485_v37 = vsel %vm5483_vm3, %v2068_v45, %v7913_v31  ;;  %v1941_v59 = vadd.s32 127, %v1940_v17  ;;  %v2234_v61 = vadd.s32 1, %v9859_v34 }
 0x250   : > { %v2066_v57 = vsel %vm2064_vm5, %v7911_v32, %v2065_v1  ;;  %v5482_v38 = vsel %vm5480_vm6, %v7911_v32, %v2065_v1  ;;  %vm2083_vm14 = vcmp.gt.s32.totalorder %v2082_v26, 0  ;;  %v1939_v51 = vor.u32 %v1938_v62, %v1937_v29  ;;  %v302_v62 = vpop.permute.xlu1 %301 }
 0x251   : > { %v2070_v43 = vsel %vm2063_vm10, %v2066_v57, %v2069_v18  ;;  %v5486_v6 = vsel %vm5479_vm11, %v5482_v38, %v5485_v37  ;;  %v1942_v15 = vshll.u32 %v1941_v59, 23  ;;  %v2231_v10 = vmul.u32 %v9826_v49, %v2215_v12 }
 0x252   : > { %v2071_v50 = vsel %vm2060_vm12, nan, %v2070_v43  ;;  %v5487_v44 = vsel %vm2060_vm12, nan, %v5486_v6  ;;  %vm2233_vm15 = vc.u32 %v9871_v20, %v9858_v52  ;;  %v2084_v36 = vsel %vm2083_vm14, %v2082_v26, 0 }
 0x253   : > { %7254 = vst [vmem:[%s8473_s3 + $0xf0] sm:$0xff] %v2071_v50  ;;  %7287 = vst [vmem:[%s8473_s3 + $0xf8] sm:$0xff] %v5487_v44  ;;  %v1943_v56 = vor.u32 4788187, %v1942_v15  ;;  %v2235_v3 = vsel %vm2233_vm15, %v2234_v61, %v9859_v34  ;;  %v1957_v46 = vadd.s32 3, %v1953_v2  ;;  %v2086_v39 = vand.u32 31, %v2084_v36 }
 0x254   : > { %v2236_v48 = vadd.s32 %v2235_v3, %v2231_v10  ;;  %v2079_v28 = vand.u32 8388607, %v2072_v58  ;;  %v1946_v54 = vcvt.s32.f32 %v1939_v51  ;;  %v9900_v24 = vand.u32 3, %v1953_v2 }
 0x255   : > { %v1944_v16 = vand.u32 2147483647, %v1943_v56  ;;  %v2087_v25 = vsub.s32 32, %v2086_v39  ;;  %v9898_v0 = vand.u32 3, %v1957_v46  ;;  %v9908_v34 = vshrl.u32 %v2084_v36, 5 }
 0x256   : > { %v2237_v41 = vadd.s32 536870912, %v2236_v48  ;;  %v2080_v47 = vor.u32 8388608, %v2079_v28  ;;  %v2089_v32 = vshll.u32 %v8056_v5, %v2086_v39  ;;  %v2092_v12 = vshll.u32 %v8057_v7, %v2086_v39 }
 0x257   : > { %v1947_v49 = vmul.f32 %v1946_v54, %v1944_v16  ;;  %v2090_v40 = vshrl.u32 %v8057_v7, %v2087_v25  ;;  %v2093_v63 = vshrl.u32 %v8058_v9, %v2087_v25  ;;  %v2099_v23 = vshrl.u32 %v8060_v13, %v2087_v25 }
 0x258   : > { %v9902_v21 = vshrl.u32 %v2237_v41, 30  ;;  %v2096_v42 = vshrl.u32 %v8059_v11, %v2087_v25  ;;  %v2098_v19 = vshll.u32 %v8059_v11, %v2086_v39  ;;  %v2102_v31 = vshrl.u32 %v8061_v22, %v2087_v25 }
 0x259   : > { %v1948_v14 = vxor.u32 2147483648, %v1947_v49  ;;  %v2095_v29 = vshll.u32 %v8058_v9, %v2086_v39  ;;  %v2101_v17 = vshll.u32 %v8060_v13, %v2086_v39  ;;  %v2091_v1 = vor.u32 %v2090_v40, %v2089_v32 }
 0x25a   : > { %v2239_v53 = vshll.u32 %v9902_v21, 30  ;;  %v2094_v27 = vor.u32 %v2093_v63, %v2092_v12  ;;  %v2100_v26 = vor.u32 %v2099_v23, %v2098_v19  ;;  %vm2107_vm1 = vcmp.lt.s32.totalorder %v9908_v34, 4 }
 0x25b   : > { %v1949_v2 = vsel %vm1866_vm2, %v1948_v14, %v1947_v49  ;;  %v2097_v37 = vor.u32 %v2096_v42, %v2095_v29  ;;  %vm2178_vm2 = vcmp.lt.s32.totalorder %v9698_v60, 0  ;;  %v2103_v59 = vor.u32 %v2102_v31, %v2101_v17 }
 0x25c   : > { %v1952_v45 = vsel %vm9816_vm0, %v9574_v30, %v1949_v2  ;;  %v9920_v33 = vsub.s32 %v2236_v48, %v2239_v53  ;;  %vm2104_vm0 = vcmp.lt.s32.totalorder %v9908_v34, 1  ;;  %v9929_v57 = vshll.u32 %v2080_v47, 8 }
 0x25d   : > { %7914 = vcosq.f32 %v1952_v45  ;;  %vm1963_vm3 = vcmp.eq.s32.totalorder %v9898_v0, 2  ;;  %vm5380_vm4 = vcmp.eq.s32.totalorder %v9900_v24, 2  ;;  %v2088_v38 = vshrl.u32 %v8056_v5, %v2087_v25 }
 0x25e   : > { %7916 = vsinq.f32 %v1952_v45  ;;  %v2242_v18 = vsub.s32 0, %v9920_v33  ;;  %v2112_v61 = vsel %vm2104_vm0, %v2091_v1, %v2094_v27  ;;  %v2113_v43 = vsel %vm2107_vm1, %v2100_v26, 920167782 }
 0x25f   : > { %v9939_v6 = vmul.f32 %v9786_v55, %v302_v62  ;;  %vm1960_vm5 = vcmp.eq.s32.totalorder %v9898_v0, 0  ;;  %vm5377_vm6 = vcmp.eq.s32.totalorder %v9900_v24, 0  ;;  %vm2106_vm7 = vcmp.lt.s32.totalorder %v9908_v34, 3 }
 0x260   : > { %v7464_v4 = vmin.u32 %v2242_v18, %v9920_v33  ;;  %v2109_v15 = vsel %vm2107_vm1, %v2097_v37, 2102212464  ;;  %v2116_v50 = vsel %vm2104_vm0, %v2094_v27, %v2097_v37  ;;  %vm1959_vm8 = vcmp.lt.s32.totalorder %v9898_v0, 2 }
 0x261   : > { %vm5376_vm9 = vcmp.lt.s32.totalorder %v9900_v24, 2  ;;  %v2262_v44 = vsub.s32 4, %v9902_v21  ;;  %vm2105_vm10 = vcmp.lt.s32.totalorder %v9908_v34, 2  ;;  %v2114_v10 = vsel %vm2106_vm7, %v2097_v37, %v2113_v43 }
 0x262   : > { %v2244_v51 = vclz %v7464_v4  ;;  %v2117_v56 = vsel %vm2107_vm1, %v2103_v59, 1326507024  ;;  %vm1956_vm11 = vweird.f32 %v9574_v30  ;;  %v2108_v36 = vsel %vm2104_vm0, %v2088_v38, %v2091_v1 }
 0x263   : > { %v2115_v46 = vsel %vm2105_vm10, %v2112_v61, %v2114_v10  ;;  %v2118_v48 = vsel %vm2106_vm7, %v2100_v26, %v2117_v56  ;;  %vm9961_vm12 = vcmp.le.f32.partialorder %v2176_v35, 0.7853982  ;;  %v2110_v39 = vsel %vm2106_vm7, %v2094_v27, %v2109_v15  ;;  %v297_v27 = vpop.permute.xlu0 %296 }
 0x264   : > { %v7465_v3 = vadd.s32 4294967294, %v2244_v51  ;;  %v2119_v16 = vsel %vm2105_vm10, %v2116_v50, %v2118_v48  ;;  %v9968_v54 = vmul.u32.u64.low %v9929_v57, %v2115_v46  ;;  %v9969_v41 = vmul.u32.u64.high %v9929_v57, %v2115_v46, %v9968_v54 }
 0x265   : > { %v2232_v25 = vadd.s32 %v9858_v52, %v9871_v20  ;;  %v9975_v49 = vmul.u32.u64.low %v9929_v57, %v2119_v16  ;;  %v9976_v47 = vmul.u32.u64.high %v9929_v57, %v2119_v16, %v9975_v49  ;;  %v2263_v40 = vsel %vm2178_vm2, %v2262_v44, %v9902_v21 }
 0x266   : > { %vm7466_vm13 = vcmp.lt.s32.totalorder %v7465_v3, 0  ;;  %v2384_v63 = vand.u32 2147483647, %v9939_v6  ;;  %v2387_v23 = vand.u32 2139095040, %v9939_v6  ;;  %v2111_v52 = vsel %vm2105_vm10, %v2108_v36, %v2110_v39 }
 0x267   : > { %v7915_v35 = vpop.eup %7914  ;;  %v2247_v14 = vsel %vm7466_vm13, 0, %v7465_v3  ;;  %v2130_v19 = vadd.s32 1, %v9969_v41  ;;  %vm2129_vm14 = vc.u32 %v9976_v47, %v9968_v54  ;;  %v2265_v0 = vsel %vm9961_vm12, 0, %v2263_v40 }
 0x268   : > { %v7917_v53 = vpop.eup %7916  ;;  %v1964_v32 = vxor.u32 2147483648, %v7915_v35  ;;  %v2248_v42 = vsub.s32 32, %v2247_v14  ;;  %v2252_v2 = vsub.s32 4294967266, %v2247_v14  ;;  %v2249_v12 = vshll.u32 %v9920_v33, %v2247_v14 }
 0x269   : > { %v1961_v20 = vxor.u32 2147483648, %v7917_v53  ;;  %v2388_v31 = vshrl.u32 %v2387_v23, 23  ;;  %v2127_v33 = vmul.u32 %v9929_v57, %v2111_v52  ;;  %v2131_v57 = vsel %vm2129_vm14, %v2130_v19, %v9969_v41 }
 0x26a   : > { %v1965_v21 = vsel %vm1963_vm3, %v1964_v32, %v7917_v53  ;;  %v5382_v45 = vsel %vm5380_vm4, %v1964_v32, %v7917_v53  ;;  %v2250_v29 = vshrl.u32 %v2232_v25, %v2248_v42  ;;  %v2253_v17 = vadd.s32 127, %v2252_v2 }
 0x26b   : > { %v1962_v34 = vsel %vm1960_vm5, %v7915_v35, %v1961_v20  ;;  %v5379_v1 = vsel %vm5377_vm6, %v7915_v35, %v1961_v20  ;;  %v7471_v38 = vadd.s32 4294967169, %v2388_v31  ;;  %v2132_v43 = vadd.s32 %v2131_v57, %v2127_v33 }
 0x26c   : > { %v1966_v26 = vsel %vm1959_vm8, %v1962_v34, %v1965_v21  ;;  %v5383_v18 = vsel %vm5376_vm9, %v5379_v1, %v5382_v45  ;;  %v2251_v37 = vor.u32 %v2250_v29, %v2249_v12  ;;  %v2254_v62 = vshll.u32 %v2253_v17, 23 }
 0x26d   : > { %v1967_v59 = vsel %vm1956_vm11, nan, %v1966_v26  ;;  %v5384_v4 = vsel %vm1956_vm11, nan, %v5383_v18  ;;  %v10012_v24 = vmul.f32 %v9786_v55, %v297_v27  ;;  %v2394_v51 = vadd.s32 1, %v7471_v38 }
 0x26e   : > { %7253 = vst [vmem:[%s8473_s3 + $0xe0] sm:$0xff] %v1967_v59  ;;  %7286 = vst [vmem:[%s8473_s3 + $0xe8] sm:$0xff] %v5384_v4  ;;  %v2255_v61 = vor.u32 4788187, %v2254_v62  ;;  %v2258_v50 = vcvt.s32.f32 %v2251_v37  ;;  %v2133_v44 = vadd.s32 536870912, %v2132_v43  ;;  %v2269_v10 = vadd.s32 3, %v2265_v0 }
 0x26f   : > { %v2391_v30 = vand.u32 8388607, %v2384_v63  ;;  %vm2395_vm15 = vcmp.gt.s32.totalorder %v2394_v51, 0  ;;  %v2283_v46 = vand.u32 2139095040, %v10012_v24  ;;  %v10019_v25 = vand.u32 3, %v2265_v0 }
 0x270   : > { %v2256_v15 = vand.u32 2147483647, %v2255_v61  ;;  %v2134_v3 = vshrl.u32 %v2133_v44, 30  ;;  %v2396_v36 = vsel %vm2395_vm15, %v2394_v51, 0  ;;  %v10017_v41 = vand.u32 3, %v2269_v10 }
 0x271   : > { %v2398_v48 = vand.u32 31, %v2396_v36  ;;  %vm2074_vm0 = vcmp.lt.s32.totalorder %v9789_v8, 0  ;;  %v2392_v40 = vor.u32 8388608, %v2391_v30  ;;  %v2284_v23 = vshrl.u32 %v2283_v46, 23 }
 0x272   : > { %v2259_v56 = vmul.f32 %v2258_v50, %v2256_v15  ;;  %v2135_v16 = vshll.u32 %v2134_v3, 30  ;;  %v2158_v32 = vsub.s32 4, %v2134_v3  ;;  %v10029_v42 = vshrl.u32 %v2396_v36, 5 }
 0x273   : > { %v2399_v49 = vsub.s32 32, %v2398_v48  ;;  %v2401_v20 = vshll.u32 %v8056_v5, %v2398_v48  ;;  %v2404_v12 = vshll.u32 %v8057_v7, %v2398_v48  ;;  %v2407_v31 = vshll.u32 %v8058_v9, %v2398_v48 }
 0x274   : > { %v2260_v39 = vxor.u32 2147483648, %v2259_v56  ;;  %v10024_v14 = vsub.s32 %v2132_v43, %v2135_v16  ;;  %v2128_v21 = vadd.s32 %v9968_v54, %v9976_v47  ;;  %v2410_v29 = vshll.u32 %v8059_v11, %v2398_v48 }
 0x275   : > { %v2402_v2 = vshrl.u32 %v8057_v7, %v2399_v49  ;;  %v2405_v19 = vshrl.u32 %v8058_v9, %v2399_v49  ;;  %v2408_v28 = vshrl.u32 %v8059_v11, %v2399_v49  ;;  %v10042_v17 = vshll.u32 %v2392_v40, 8 }
 0x276   : > { %v2261_v35 = vsel %vm2178_vm2, %v2260_v39, %v2259_v56  ;;  %v2138_v52 = vsub.s32 0, %v10024_v14  ;;  %v2411_v27 = vshrl.u32 %v8060_v13, %v2399_v49  ;;  %vm2275_vm2 = vcmp.eq.s32.totalorder %v10017_v41, 2 }
 0x277   : > { %v2264_v53 = vsel %vm9961_vm12, %v9698_v60, %v2261_v35  ;;  %v2403_v34 = vor.u32 %v2402_v2, %v2401_v20  ;;  %v2406_v1 = vor.u32 %v2405_v19, %v2404_v12  ;;  %v2409_v33 = vor.u32 %v2408_v28, %v2407_v31  ;;  %v312_v19 = vpop.permute.xlu1 %311 }
 0x278   : > { %7918 = vcosq.f32 %v2264_v53  ;;  %v7460_v45 = vmin.u32 %v2138_v52, %v10024_v14  ;;  %vm5689_vm1 = vcmp.eq.s32.totalorder %v10019_v25, 2  ;;  %v2159_v18 = vsel %vm2074_vm0, %v2158_v32, %v2134_v3 }
 0x279   : > { %7920 = vsinq.f32 %v2264_v53  ;;  %v2400_v54 = vshrl.u32 %v8056_v5, %v2399_v49  ;;  %v10050_v47 = vadd.s32 4294967169, %v2284_v23  ;;  %vm2272_vm3 = vcmp.eq.s32.totalorder %v10017_v41, 0 }
 0x27a   : > { %v2140_v26 = vclz %v7460_v45  ;;  %vm5686_vm4 = vcmp.eq.s32.totalorder %v10019_v25, 0  ;;  %v2412_v37 = vor.u32 %v2411_v27, %v2410_v29  ;;  %v2413_v62 = vshll.u32 %v8060_v13, %v2398_v48 }
 0x27b   : > { %v2414_v59 = vshrl.u32 %v8061_v22, %v2399_v49  ;;  %vm2416_vm5 = vcmp.lt.s32.totalorder %v10029_v42, 1  ;;  %vm2271_vm6 = vcmp.lt.s32.totalorder %v10017_v41, 2  ;;  %vm5685_vm7 = vcmp.lt.s32.totalorder %v10019_v25, 2 }
 0x27c   : > { %v7461_v4 = vadd.s32 4294967294, %v2140_v26  ;;  %vm2417_vm8 = vcmp.lt.s32.totalorder %v10029_v42, 2  ;;  %vm2418_vm9 = vcmp.lt.s32.totalorder %v10029_v42, 3  ;;  %vm2419_vm10 = vcmp.lt.s32.totalorder %v10029_v42, 4 }
 0x27d   : > { %vm2268_vm11 = vweird.f32 %v9698_v60  ;;  %v2415_v57 = vor.u32 %v2414_v59, %v2413_v62  ;;  %v2420_v38 = vsel %vm2416_vm5, %v2400_v54, %v2403_v34  ;;  %v2421_v61 = vsel %vm2419_vm10, %v2409_v33, 2102212464 }
 0x27e   : > { %v2424_v0 = vsel %vm2416_vm5, %v2403_v34, %v2406_v1  ;;  %vm10069_vm12 = vcmp.le.f32.partialorder %v2072_v58, 0.7853982  ;;  %vm7462_vm13 = vcmp.lt.s32.totalorder %v7461_v4, 0  ;;  %v2422_v51 = vsel %vm2418_vm9, %v2406_v1, %v2421_v61 }
 0x27f   : > { %v2425_v15 = vsel %vm2419_vm10, %v2412_v37, 920167782  ;;  %v2428_v50 = vsel %vm2416_vm5, %v2406_v1, %v2409_v33  ;;  %v2143_v44 = vsel %vm7462_vm13, 0, %v7461_v4  ;;  %v2423_v10 = vsel %vm2417_vm8, %v2420_v38, %v2422_v51 }
 0x280   : > { %v2426_v30 = vsel %vm2418_vm9, %v2409_v33, %v2425_v15  ;;  %v2429_v56 = vsel %vm2419_vm10, %v2415_v57, 1326507024  ;;  %v2144_v3 = vsub.s32 32, %v2143_v44  ;;  %v2145_v36 = vshll.u32 %v10024_v14, %v2143_v44 }
 0x281   : > { %v2148_v46 = vsub.s32 4294967266, %v2143_v44  ;;  %v2427_v48 = vsel %vm2417_vm8, %v2424_v0, %v2426_v30  ;;  %v2430_v49 = vsel %vm2418_vm9, %v2412_v37, %v2429_v56  ;;  %v2280_v1 = vand.u32 2147483647, %v10012_v24 }
 0x282   : > { %v7919_v58 = vpop.eup %7918  ;;  %v10087_v35 = vmul.u32.u64.low %v10042_v17, %v2427_v48  ;;  %v10088_v40 = vmul.u32.u64.high %v10042_v17, %v2427_v48, %v10087_v35  ;;  %v2146_v53 = vshrl.u32 %v2128_v21, %v2144_v3  ;;  %v2431_v2 = vsel %vm2417_vm8, %v2428_v50, %v2430_v49 }
 0x283   : > { %v7921_v39 = vpop.eup %7920  ;;  %v2276_v16 = vxor.u32 2147483648, %v7919_v58  ;;  %v2149_v32 = vadd.s32 127, %v2148_v46  ;;  %v10097_v20 = vmul.u32.u64.low %v10042_v17, %v2431_v2  ;;  %v10098_v12 = vmul.u32.u64.high %v10042_v17, %v2431_v2, %v10097_v20 }
 0x284   : > { %v2273_v23 = vxor.u32 2147483648, %v7921_v39  ;;  %v2147_v28 = vor.u32 %v2146_v53, %v2145_v36  ;;  %v2442_v34 = vadd.s32 1, %v10088_v40  ;;  %v10115_v54 = vmul.f32 %v9786_v55, %v312_v19 }
 0x285   : > { %v2277_v14 = vsel %vm2275_vm2, %v2276_v16, %v7921_v39  ;;  %v5691_v52 = vsel %vm5689_vm1, %v2276_v16, %v7921_v39  ;;  %v2150_v21 = vshll.u32 %v2149_v32, 23  ;;  %v2161_v41 = vsel %vm10069_vm12, 0, %v2159_v18 }
 0x286   : > { %v2274_v31 = vsel %vm2272_vm3, %v7919_v58, %v2273_v23  ;;  %v5688_v42 = vsel %vm5686_vm4, %v7919_v58, %v2273_v23  ;;  %v2439_v25 = vmul.u32 %v10042_v17, %v2423_v10  ;;  %vm2441_vm14 = vc.u32 %v10098_v12, %v10087_v35 }
 0x287   : > { %v2278_v45 = vsel %vm2271_vm6, %v2274_v31, %v2277_v14  ;;  %v5692_v29 = vsel %vm5685_vm7, %v5688_v42, %v5691_v52  ;;  %v2151_v26 = vor.u32 4788187, %v2150_v21  ;;  %v2290_v37 = vadd.s32 1, %v10050_v47 }
 0x288   : > { %v2279_v33 = vsel %vm2268_vm11, nan, %v2278_v45  ;;  %v5693_v27 = vsel %vm2268_vm11, nan, %v5692_v29  ;;  %v2154_v59 = vcvt.s32.f32 %v2147_v28  ;;  %v2443_v60 = vsel %vm2441_vm14, %v2442_v34, %v10088_v40 }
 0x289   : > { %7256 = vst [vmem:[%s8473_s3 + $0x110] sm:$0xff] %v2279_v33  ;;  %7289 = vst [vmem:[%s8473_s3 + $0x118] sm:$0xff] %v5693_v27  ;;  %v2152_v62 = vand.u32 2147483647, %v2151_v26  ;;  %v2444_v4 = vadd.s32 %v2443_v60, %v2439_v25  ;;  %v2287_v57 = vand.u32 8388607, %v2280_v1  ;;  %v10136_v3 = vadd.s32 %v10087_v35, %v10098_v12 }
 0x28a   : > { %vm2291_vm15 = vcmp.gt.s32.totalorder %v2290_v37, 0  ;;  %v2165_v61 = vadd.s32 3, %v2161_v41  ;;  %v2592_v17 = vand.u32 2147483647, %v10115_v54  ;;  %v2595_v15 = vand.u32 2139095040, %v10115_v54 }
 0x28b   : > { %v2155_v38 = vmul.f32 %v2154_v59, %v2152_v62  ;;  %v2292_v0 = vsel %vm2291_vm15, %v2290_v37, 0  ;;  %v2445_v51 = vadd.s32 536870912, %v2444_v4  ;;  %v2288_v44 = vor.u32 8388608, %v2287_v57 }
 0x28c   : > { %v2294_v18 = vand.u32 31, %v2292_v0  ;;  %v10131_v56 = vand.u32 3, %v2165_v61  ;;  %v10133_v58 = vand.u32 3, %v2161_v41  ;;  %v2596_v48 = vshrl.u32 %v2595_v15, 23 }
 0x28d   : > { %v2156_v50 = vxor.u32 2147483648, %v2155_v38  ;;  %v2446_v47 = vshrl.u32 %v2445_v51, 30  ;;  %v10143_v39 = vand.u32 8388607, %v2592_v17  ;;  %v2293_v53 = vshrl.u32 %v2292_v0, 5 }
 0x28e   : > { %v2295_v10 = vsub.s32 32, %v2294_v18  ;;  %v2297_v43 = vshll.u32 %v8056_v5, %v2294_v18  ;;  %v2300_v32 = vshll.u32 %v8057_v7, %v2294_v18  ;;  %v2303_v2 = vshll.u32 %v8058_v9, %v2294_v18 }
 0x28f   : > { %v2157_v30 = vsel %vm2074_vm0, %v2156_v50, %v2155_v38  ;;  %v2447_v46 = vshll.u32 %v2446_v47, 30  ;;  %vm2386_vm0 = vcmp.lt.s32.totalorder %v9939_v6, 0  ;;  %v2306_v14 = vshll.u32 %v8059_v11, %v2294_v18 }
 0x290   : > { %v2160_v36 = vsel %vm10069_vm12, %v9789_v8, %v2157_v30  ;;  %v2298_v16 = vshrl.u32 %v8057_v7, %v2295_v10  ;;  %v2301_v49 = vshrl.u32 %v8058_v9, %v2295_v10  ;;  %v2304_v40 = vshrl.u32 %v8059_v11, %v2295_v10 }
 0x291   : > { %7922 = vcosq.f32 %v2160_v36  ;;  %v10149_v35 = vsub.s32 %v2444_v4, %v2447_v46  ;;  %v2307_v23 = vshrl.u32 %v8060_v13, %v2295_v10  ;;  %v2309_v12 = vshll.u32 %v8060_v13, %v2294_v18 }
 0x292   : > { %7924 = vsinq.f32 %v2160_v36  ;;  %v2299_v20 = vor.u32 %v2298_v16, %v2297_v43  ;;  %v10158_v19 = vshll.u32 %v2288_v44, 8  ;;  %vm2171_vm2 = vcmp.eq.s32.totalorder %v10131_v56, 2 }
 0x293   : > { %v2450_v52 = vsub.s32 0, %v10149_v35  ;;  %vm5586_vm1 = vcmp.eq.s32.totalorder %v10133_v58, 2  ;;  %v2302_v31 = vor.u32 %v2301_v49, %v2300_v32  ;;  %v2305_v42 = vor.u32 %v2304_v40, %v2303_v2 }
 0x294   : > { %v2308_v28 = vor.u32 %v2307_v23, %v2306_v14  ;;  %v2310_v21 = vshrl.u32 %v8061_v22, %v2295_v10  ;;  %vm2168_vm3 = vcmp.eq.s32.totalorder %v10131_v56, 0  ;;  %vm5583_vm4 = vcmp.eq.s32.totalorder %v10133_v58, 0 }
 0x295   : > { %v7472_v45 = vmin.u32 %v2450_v52, %v10149_v35  ;;  %v2296_v29 = vshrl.u32 %v8056_v5, %v2295_v10  ;;  %v7479_v34 = vadd.s32 4294967169, %v2596_v48  ;;  %v2600_v33 = vor.u32 8388608, %v10143_v39 }
 0x296   : > { %vm2167_vm5 = vcmp.lt.s32.totalorder %v10131_v56, 2  ;;  %vm5582_vm6 = vcmp.lt.s32.totalorder %v10133_v58, 2  ;;  %v2470_v27 = vsub.s32 4, %v2446_v47  ;;  %v2311_v26 = vor.u32 %v2310_v21, %v2309_v12  ;;  %v307_v12 = vpop.permute.xlu0 %306 }
 0x297   : > { %vm2312_vm7 = vcmp.lt.s32.totalorder %v2293_v53, 1  ;;  %vm2313_vm8 = vcmp.lt.s32.totalorder %v2293_v53, 2  ;;  %vm2164_vm9 = vweird.f32 %v9789_v8  ;;  %v2452_v41 = vclz %v7472_v45 }
 0x298   : > { %vm2314_vm10 = vcmp.lt.s32.totalorder %v2293_v53, 3  ;;  %vm2315_vm11 = vcmp.lt.s32.totalorder %v2293_v53, 4  ;;  %v2316_v25 = vsel %vm2312_vm7, %v2296_v29, %v2299_v20  ;;  %v2320_v62 = vsel %vm2312_vm7, %v2299_v20, %v2302_v31 }
 0x299   : > { %v2317_v37 = vsel %vm2315_vm11, %v2305_v42, 2102212464  ;;  %v2321_v59 = vsel %vm2315_vm11, %v2308_v28, 920167782  ;;  %v2324_v60 = vsel %vm2312_vm7, %v2302_v31, %v2305_v42  ;;  %vm10173_vm12 = vcmp.le.f32.partialorder %v2384_v63, 0.7853982 }
 0x29a   : > { %v7473_v57 = vadd.s32 4294967294, %v2452_v41  ;;  %v2318_v38 = vsel %vm2314_vm10, %v2302_v31, %v2317_v37  ;;  %v2322_v61 = vsel %vm2314_vm10, %v2305_v42, %v2321_v59  ;;  %v2325_v0 = vsel %vm2315_vm11, %v2311_v26, 1326507024 }
 0x29b   : > { %v7923_v51 = vpop.eup %7922  ;;  %v2471_v18 = vsel %vm2386_vm0, %v2470_v27, %v2446_v47  ;;  %v2319_v15 = vsel %vm2313_vm8, %v2316_v25, %v2318_v38  ;;  %v2326_v50 = vsel %vm2314_vm10, %v2308_v28, %v2325_v0  ;;  %v2602_v44 = vadd.s32 1, %v7479_v34 }
 0x29c   : > { %v7925_v10 = vpop.eup %7924  ;;  %v2172_v30 = vxor.u32 2147483648, %v7923_v51  ;;  %vm7474_vm13 = vcmp.lt.s32.totalorder %v7473_v57, 0  ;;  %v2323_v63 = vsel %vm2313_vm8, %v2320_v62, %v2322_v61  ;;  %v2327_v36 = vsel %vm2313_vm8, %v2324_v60, %v2326_v50 }
 0x29d   : > { %v2169_v46 = vxor.u32 2147483648, %v7925_v10  ;;  %v2455_v48 = vsel %vm7474_vm13, 0, %v7473_v57  ;;  %v10183_v39 = vmul.u32.u64.low %v10158_v19, %v2327_v36  ;;  %v10184_v16 = vmul.u32.u64.high %v10158_v19, %v2327_v36, %v10183_v39 }
 0x29e   : > { %v2173_v47 = vsel %vm2171_vm2, %v2172_v30, %v7925_v10  ;;  %v5588_v49 = vsel %vm5586_vm1, %v2172_v30, %v7925_v10  ;;  %v2456_v40 = vsub.s32 32, %v2455_v48  ;;  %v2457_v43 = vshll.u32 %v10149_v35, %v2455_v48 }
 0x29f   : > { %v2170_v23 = vsel %vm2168_vm3, %v7923_v51, %v2169_v46  ;;  %v5585_v53 = vsel %vm5583_vm4, %v7923_v51, %v2169_v46  ;;  %v2460_v32 = vsub.s32 4294967266, %v2455_v48  ;;  %vm2603_vm14 = vcmp.gt.s32.totalorder %v2602_v44, 0 }
 0x2a0   : > { %v2174_v2 = vsel %vm2167_vm5, %v2170_v23, %v2173_v47  ;;  %v5589_v14 = vsel %vm5582_vm6, %v5585_v53, %v5588_v49  ;;  %v2458_v52 = vshrl.u32 %v10136_v3, %v2456_v40  ;;  %v2604_v20 = vsel %vm2603_vm14, %v2602_v44, 0 }
 0x2a1   : > { %v2175_v35 = vsel %vm2164_vm9, nan, %v2174_v2  ;;  %v5590_v31 = vsel %vm2164_vm9, nan, %v5589_v14  ;;  %v2461_v42 = vadd.s32 127, %v2460_v32  ;;  %v10204_v28 = vshrl.u32 %v2604_v20, 5 }
 0x2a2   : > { %7255 = vst [vmem:[%s8473_s3 + $0x100] sm:$0xff] %v2175_v35  ;;  %7288 = vst [vmem:[%s8473_s3 + $0x108] sm:$0xff] %v5590_v31  ;;  %v2459_v56 = vor.u32 %v2458_v52, %v2457_v43  ;;  %v10209_v21 = vmul.u32.u64.low %v10158_v19, %v2323_v63  ;;  %v10210_v58 = vmul.u32.u64.high %v10158_v19, %v2323_v63, %v10209_v21  ;;  %v2606_v3 = vand.u32 31, %v2604_v20 }
 0x2a3   : > { %v2462_v45 = vshll.u32 %v2461_v42, 23  ;;  %v2473_v29 = vsel %vm10173_vm12, 0, %v2471_v18  ;;  %v10215_v34 = vshll.u32 %v2600_v33, 8  ;;  %v10218_v8 = vmul.f32 %v9786_v55, %v307_v12 }
 0x2a4   : > { %v2466_v27 = vcvt.s32.f32 %v2459_v56  ;;  %v2335_v26 = vmul.u32 %v10158_v19, %v2319_v15  ;;  %v2607_v41 = vsub.s32 32, %v2606_v3  ;;  %vm2624_vm15 = vcmp.lt.s32.totalorder %v10204_v28, 1 }
 0x2a5   : > { %v2463_v25 = vor.u32 4788187, %v2462_v45  ;;  %vm2337_vm2 = vc.u32 %v10184_v16, %v10209_v21  ;;  %v2609_v37 = vshll.u32 %v8056_v5, %v2606_v3  ;;  %v2612_v62 = vshll.u32 %v8057_v7, %v2606_v3 }
 0x2a6   : > { %v2338_v33 = vadd.s32 1, %v10210_v58  ;;  %v2610_v59 = vshrl.u32 %v8057_v7, %v2607_v41  ;;  %v2613_v55 = vshrl.u32 %v8058_v9, %v2607_v41  ;;  %v2615_v60 = vshll.u32 %v8058_v9, %v2606_v3 }
 0x2a7   : > { %v2464_v19 = vand.u32 2147483647, %v2463_v25  ;;  %v2616_v57 = vshrl.u32 %v8059_v11, %v2607_v41  ;;  %v2618_v38 = vshll.u32 %v8059_v11, %v2606_v3  ;;  %v2619_v61 = vshrl.u32 %v8060_v13, %v2607_v41 }
 0x2a8   : > { %v2339_v0 = vsel %vm2337_vm2, %v2338_v33, %v10210_v58  ;;  %v2611_v51 = vor.u32 %v2610_v59, %v2609_v37  ;;  %v2614_v18 = vor.u32 %v2613_v55, %v2612_v62  ;;  %vm2625_vm1 = vcmp.lt.s32.totalorder %v10204_v28, 2 }
 0x2a9   : > { %v2467_v15 = vmul.f32 %v2466_v27, %v2464_v19  ;;  %v2340_v50 = vadd.s32 %v2339_v0, %v2335_v26  ;;  %v2617_v44 = vor.u32 %v2616_v57, %v2615_v60  ;;  %v2620_v10 = vor.u32 %v2619_v61, %v2618_v38 }
 0x2aa   : > { %v2621_v30 = vshll.u32 %v8060_v13, %v2606_v3  ;;  %v2622_v63 = vshrl.u32 %v8061_v22, %v2607_v41  ;;  %vm2627_vm3 = vcmp.lt.s32.totalorder %v10204_v28, 4  ;;  %v2632_v36 = vsel %vm2624_vm15, %v2611_v51, %v2614_v18 }
 0x2ab   : > { %v2468_v46 = vxor.u32 2147483648, %v2467_v15  ;;  %v2341_v48 = vadd.s32 536870912, %v2340_v50  ;;  %vm2626_vm4 = vcmp.lt.s32.totalorder %v10204_v28, 3  ;;  %v2633_v39 = vsel %vm2627_vm3, %v2620_v10, 920167782 }
 0x2ac   : > { %v2608_v47 = vshrl.u32 %v8056_v5, %v2607_v41  ;;  %v2623_v49 = vor.u32 %v2622_v63, %v2621_v30  ;;  %v2629_v40 = vsel %vm2627_vm3, %v2617_v44, 2102212464  ;;  %v2634_v43 = vsel %vm2626_vm4, %v2617_v44, %v2633_v39 }
 0x2ad   : > { %v2469_v23 = vsel %vm2386_vm0, %v2468_v46, %v2467_v15  ;;  %v2342_v53 = vshrl.u32 %v2341_v48, 30  ;;  %v2635_v32 = vsel %vm2625_vm1, %v2632_v36, %v2634_v43  ;;  %v2636_v2 = vsel %vm2624_vm15, %v2614_v18, %v2617_v44 }
 0x2ae   : > { %v2472_v14 = vsel %vm10173_vm12, %v9939_v6, %v2469_v23  ;;  %v2637_v52 = vsel %vm2627_vm3, %v2623_v49, 1326507024  ;;  %v10254_v20 = vmul.u32.u64.low %v10215_v34, %v2635_v32  ;;  %v10255_v12 = vmul.u32.u64.high %v10215_v34, %v2635_v32, %v10254_v20 }
 0x2af   : > { %7926 = vcosq.f32 %v2472_v14  ;;  %v2343_v35 = vshll.u32 %v2342_v53, 30  ;;  %v2638_v31 = vsel %vm2626_vm4, %v2620_v10, %v2637_v52  ;;  %v2477_v42 = vadd.s32 3, %v2473_v29 }
 0x2b0   : > { %7928 = vsinq.f32 %v2472_v14  ;;  %v2628_v56 = vsel %vm2624_vm15, %v2608_v47, %v2611_v51  ;;  %v2639_v4 = vsel %vm2625_vm1, %v2636_v2, %v2638_v31  ;;  %v2630_v3 = vsel %vm2626_vm4, %v2614_v18, %v2629_v40  ;;  %v322_v2 = vpop.permute.xlu1 %321 }
 0x2b1   : > { %v10264_v58 = vsub.s32 %v2340_v50, %v2343_v35  ;;  %v10269_v45 = vmul.u32.u64.low %v10215_v34, %v2639_v4  ;;  %v10270_v27 = vmul.u32.u64.high %v10215_v34, %v2639_v4, %v10269_v45  ;;  %v5890_v26 = vand.u32 3, %v2473_v29 }
 0x2b2   : > { %v2491_v41 = vand.u32 2139095040, %v10218_v8  ;;  %v2366_v37 = vsub.s32 4, %v2342_v53  ;;  %v2478_v62 = vand.u32 3, %v2477_v42  ;;  %v2631_v33 = vsel %vm2625_vm1, %v2628_v56, %v2630_v3  ;;  %v10314_v45 = vld [vmem:[%s11562_s1] ss:$0 sm:$0xff] }
 0x2b3   : > { %v2346_v25 = vsub.s32 0, %v10264_v58  ;;  %v2650_v59 = vadd.s32 1, %v10255_v12  ;;  %vm10279_vm0 = vcmp.le.f32.partialorder %v2280_v1, 0.7853982  ;;  %vm2282_vm5 = vcmp.lt.s32.totalorder %v10012_v24, 0 }
 0x2b4   : > { %v2492_v55 = vshrl.u32 %v2491_v41, 23  ;;  %vm2476_vm6 = vweird.f32 %v9939_v6  ;;  %vm5891_vm7 = vcmp.lt.s32.totalorder %v5890_v26, 2  ;;  %vm2649_vm8 = vc.u32 %v10270_v27, %v10254_v20 }
 0x2b5   : > { %v7468_v29 = vmin.u32 %v2346_v25, %v10264_v58  ;;  %v2488_v28 = vand.u32 2147483647, %v10218_v8  ;;  %vm5892_vm9 = vcmp.eq.s32.totalorder %v5890_v26, 0  ;;  %v2367_v1 = vsel %vm2282_vm5, %v2366_v37, %v2342_v53 }
 0x2b6   : > { %v7475_v19 = vadd.s32 4294967169, %v2492_v55  ;;  %v2647_v38 = vmul.u32 %v10215_v34, %v2631_v33  ;;  %vm2479_vm10 = vcmp.lt.s32.totalorder %v2478_v62, 2  ;;  %vm5895_vm11 = vcmp.eq.s32.totalorder %v5890_v26, 2 }
 0x2b7   : > { %v2348_v57 = vclz %v7468_v29  ;;  %v2651_v61 = vsel %vm2649_vm8, %v2650_v59, %v10255_v12  ;;  %vm2480_vm12 = vcmp.eq.s32.totalorder %v2478_v62, 0  ;;  %vm2483_vm13 = vcmp.eq.s32.totalorder %v2478_v62, 2 }
 0x2b8   : > { %v2498_v0 = vadd.s32 1, %v7475_v19  ;;  %v2652_v15 = vadd.s32 %v2651_v61, %v2647_v38  ;;  %v2336_v10 = vadd.s32 %v10209_v21, %v10184_v16  ;;  %v2369_v30 = vsel %vm10279_vm0, 0, %v2367_v1 }
 0x2b9   : > { %v7927_v51 = vpop.eup %7926  ;;  %v7469_v18 = vadd.s32 4294967294, %v2348_v57  ;;  %v2495_v36 = vand.u32 8388607, %v2488_v28  ;;  %v2373_v40 = vadd.s32 3, %v2369_v30  ;;  %v10317_v26 = vmul.f32 %v10314_v45, %v322_v2 }
 0x2ba   : > { %v7929_v50 = vpop.eup %7928  ;;  %v2484_v44 = vxor.u32 2147483648, %v7927_v51  ;;  %vm2499_vm14 = vcmp.gt.s32.totalorder %v2498_v0, 0  ;;  %v2653_v63 = vadd.s32 536870912, %v2652_v15  ;;  %vm2594_vm2 = vcmp.lt.s32.totalorder %v10115_v54, 0 }
 0x2bb   : > { %v2481_v34 = vxor.u32 2147483648, %v7929_v50  ;;  %vm7470_vm15 = vcmp.lt.s32.totalorder %v7469_v18, 0  ;;  %v2500_v47 = vsel %vm2499_vm14, %v2498_v0, 0  ;;  %v2496_v4 = vor.u32 8388608, %v2495_v36 }
 0x2bc   : > { %v2485_v46 = vsel %vm2483_vm13, %v2484_v44, %v7929_v50  ;;  %v5897_v48 = vsel %vm5895_vm11, %v2484_v44, %v7929_v50  ;;  %v2351_v39 = vsel %vm7470_vm15, 0, %v7469_v18  ;;  %v2654_v32 = vshrl.u32 %v2653_v63, 30 }
 0x2bd   : > { %v2482_v49 = vsel %vm2480_vm12, %v7927_v51, %v2481_v34  ;;  %v5894_v16 = vsel %vm5892_vm9, %v7927_v51, %v2481_v34  ;;  %v2352_v21 = vsub.s32 32, %v2351_v39  ;;  %v2356_v53 = vsub.s32 4294967266, %v2351_v39 }
 0x2be   : > { %v2486_v43 = vsel %vm2479_vm10, %v2482_v49, %v2485_v46  ;;  %v5898_v23 = vsel %vm5891_vm7, %v5894_v16, %v5897_v48  ;;  %v2502_v35 = vand.u32 31, %v2500_v47  ;;  %v2353_v31 = vshll.u32 %v10264_v58, %v2351_v39 }
 0x2bf   : > { %v2487_v14 = vsel %vm2476_vm6, nan, %v2486_v43  ;;  %v5899_v52 = vsel %vm2476_vm6, nan, %v5898_v23  ;;  %v2354_v12 = vshrl.u32 %v2336_v10, %v2352_v21  ;;  %v2357_v42 = vadd.s32 127, %v2356_v53 }
 0x2c0   : > { %7258 = vst [vmem:[%s8473_s3 + $0x130] sm:$0xff] %v2487_v14  ;;  %7291 = vst [vmem:[%s8473_s3 + $0x138] sm:$0xff] %v5899_v52  ;;  %v2655_v56 = vshll.u32 %v2654_v32, 30  ;;  %v2503_v3 = vsub.s32 32, %v2502_v35  ;;  %v10320_v37 = vand.u32 3, %v2373_v40  ;;  %v10322_v58 = vand.u32 3, %v2369_v30 }
 0x2c1   : > { %v2355_v6 = vor.u32 %v2354_v12, %v2353_v31  ;;  %v2358_v41 = vshll.u32 %v2357_v42, 23  ;;  %v2678_v62 = vsub.s32 4, %v2654_v32  ;;  %v10324_v33 = vshrl.u32 %v2500_v47, 5 }
 0x2c2   : > { %v2656_v25 = vsub.s32 %v2652_v15, %v2655_v56  ;;  %v2648_v55 = vadd.s32 %v10254_v20, %v10270_v27  ;;  %v2506_v19 = vshrl.u32 %v8057_v7, %v2503_v3  ;;  %v2505_v57 = vshll.u32 %v8056_v5, %v2502_v35 }
 0x2c3   : > { %v2359_v59 = vor.u32 4788187, %v2358_v41  ;;  %v2509_v1 = vshrl.u32 %v8058_v9, %v2503_v3  ;;  %v10331_v38 = vshll.u32 %v2496_v4, 8  ;;  %v2803_v61 = vand.u32 2139095040, %v10317_v26  ;;  %v317_v41 = vpop.permute.xlu0 %316 }
 0x2c4   : > { %v2658_v29 = vsub.s32 0, %v2656_v25  ;;  %v2362_v51 = vcvt.s32.f32 %v2355_v6  ;;  %v2512_v15 = vshrl.u32 %v8059_v11, %v2503_v3  ;;  %v2679_v50 = vsel %vm2594_vm2, %v2678_v62, %v2654_v32 }
 0x2c5   : > { %v2360_v0 = vand.u32 2147483647, %v2359_v59  ;;  %v2508_v20 = vshll.u32 %v8057_v7, %v2502_v35  ;;  %v2511_v27 = vshll.u32 %v8058_v9, %v2502_v35  ;;  %vm2520_vm1 = vcmp.lt.s32.totalorder %v10324_v33, 1 }
 0x2c6   : > { %v7480_v18 = vmin.u32 %v2658_v29, %v2656_v25  ;;  %v2507_v30 = vor.u32 %v2506_v19, %v2505_v57  ;;  %v2514_v34 = vshll.u32 %v8059_v11, %v2502_v35  ;;  %v2515_v36 = vshrl.u32 %v8060_v13, %v2503_v3 }
 0x2c7   : > { %v2363_v44 = vmul.f32 %v2362_v51, %v2360_v0  ;;  %v2510_v63 = vor.u32 %v2509_v1, %v2508_v20  ;;  %v2517_v46 = vshll.u32 %v8060_v13, %v2502_v35  ;;  %v2518_v48 = vshrl.u32 %v8061_v22, %v2503_v3 }
 0x2c8   : > { %v2660_v10 = vclz %v7480_v18  ;;  %v2504_v49 = vshrl.u32 %v8056_v5, %v2503_v3  ;;  %v2513_v16 = vor.u32 %v2512_v15, %v2511_v27  ;;  %v2516_v21 = vor.u32 %v2515_v36, %v2514_v34 }
 0x2c9   : > { %v2364_v39 = vxor.u32 2147483648, %v2363_v44  ;;  %v2519_v40 = vor.u32 %v2518_v48, %v2517_v46  ;;  %vm2521_vm3 = vcmp.lt.s32.totalorder %v10324_v33, 2  ;;  %vm2522_vm4 = vcmp.lt.s32.totalorder %v10324_v33, 3 }
 0x2ca   : > { %v7481_v47 = vadd.s32 4294967294, %v2660_v10  ;;  %vm2523_vm7 = vcmp.lt.s32.totalorder %v10324_v33, 4  ;;  %v2524_v23 = vsel %vm2520_vm1, %v2504_v49, %v2507_v30  ;;  %v2528_v2 = vsel %vm2520_vm1, %v2507_v30, %v2510_v63 }
 0x2cb   : > { %v2365_v43 = vsel %vm2282_vm5, %v2364_v39, %v2363_v44  ;;  %v2529_v14 = vsel %vm2523_vm7, %v2516_v21, 920167782  ;;  %v2525_v35 = vsel %vm2523_vm7, %v2513_v16, 2102212464  ;;  %v2532_v60 = vsel %vm2520_vm1, %v2510_v63, %v2513_v16 }
 0x2cc   : > { %vm7482_vm6 = vcmp.lt.s32.totalorder %v7481_v47, 0  ;;  %v2368_v53 = vsel %vm10279_vm0, %v10012_v24, %v2365_v43  ;;  %v2530_v42 = vsel %vm2522_vm4, %v2513_v16, %v2529_v14  ;;  %v2533_v6 = vsel %vm2523_vm7, %v2519_v40, 1326507024 }
 0x2cd   : > { %v2663_v32 = vsel %vm7482_vm6, 0, %v7481_v47  ;;  %7930 = vcosq.f32 %v2368_v53  ;;  %v2531_v3 = vsel %vm2521_vm3, %v2528_v2, %v2530_v42  ;;  %v2526_v62 = vsel %vm2522_vm4, %v2510_v63, %v2525_v35 }
 0x2ce   : > { %v2664_v52 = vsub.s32 32, %v2663_v32  ;;  %v2668_v12 = vsub.s32 4294967266, %v2663_v32  ;;  %7932 = vsinq.f32 %v2368_v53  ;;  %v2665_v31 = vshll.u32 %v2656_v25, %v2663_v32 }
 0x2cf   : > { %v2534_v25 = vsel %vm2522_vm4, %v2516_v21, %v2533_v6  ;;  %v10374_v59 = vmul.u32.u64.low %v10331_v38, %v2531_v3  ;;  %v10375_v29 = vmul.u32.u64.high %v10331_v38, %v2531_v3, %v10374_v59  ;;  %v2804_v1 = vshrl.u32 %v2803_v61, 23 }
 0x2d0   : > { %v2666_v56 = vshrl.u32 %v2648_v55, %v2664_v52  ;;  %v2669_v4 = vadd.s32 127, %v2668_v12  ;;  %v2535_v57 = vsel %vm2521_vm3, %v2532_v60, %v2534_v25  ;;  %vm10382_vm0 = vcmp.le.f32.partialorder %v2592_v17, 0.7853982 }
 0x2d1   : > { %v10387_v51 = vmul.u32.u64.low %v10331_v38, %v2535_v57  ;;  %v10388_v18 = vmul.u32.u64.high %v10331_v38, %v2535_v57, %v10387_v51  ;;  %v10391_v15 = vmul.f32 %v10314_v45, %v317_v41  ;;  %vm5788_vm5 = vcmp.lt.s32.totalorder %v10322_v58, 2 }
 0x2d2   : > { %v2667_v55 = vor.u32 %v2666_v56, %v2665_v31  ;;  %v2670_v19 = vshll.u32 %v2669_v4, 23  ;;  %v2681_v27 = vsel %vm10382_vm0, 0, %v2679_v50  ;;  %v2527_v61 = vsel %vm2521_vm3, %v2524_v23, %v2526_v62 }
 0x2d3   : > { %v7487_v17 = vadd.s32 4294967169, %v2804_v1  ;;  %vm2372_vm8 = vweird.f32 %v10012_v24  ;;  %vm5789_vm9 = vcmp.eq.s32.totalorder %v10322_v58, 0  ;;  %vm5792_vm10 = vcmp.eq.s32.totalorder %v10322_v58, 2 }
 0x2d4   : > { %v2671_v20 = vor.u32 4788187, %v2670_v19  ;;  %v2546_v44 = vadd.s32 1, %v10375_v29  ;;  %v2800_v10 = vand.u32 2147483647, %v10317_v26  ;;  %vm2375_vm11 = vcmp.lt.s32.totalorder %v10320_v37, 2 }
 0x2d5   : > { %v2674_v34 = vcvt.s32.f32 %v2667_v55  ;;  %v2810_v63 = vadd.s32 1, %v7487_v17  ;;  %vm2376_vm12 = vcmp.eq.s32.totalorder %v10320_v37, 0  ;;  %v2685_v33 = vadd.s32 3, %v2681_v27 }
 0x2d6   : > { %v2672_v30 = vand.u32 2147483647, %v2671_v20  ;;  %v2543_v50 = vmul.u32 %v10331_v38, %v2527_v61  ;;  %vm2545_vm13 = vc.u32 %v10388_v18, %v10374_v59  ;;  %vm2379_vm14 = vcmp.eq.s32.totalorder %v10320_v37, 2 }
 0x2d7   : > { %v7931_v36 = vpop.eup %7930  ;;  %v2547_v48 = vsel %vm2545_vm13, %v2546_v44, %v10375_v29  ;;  %vm2811_vm15 = vcmp.gt.s32.totalorder %v2810_v63, 0  ;;  %v2807_v16 = vand.u32 8388607, %v2800_v10  ;;  %v10412_v38 = vand.u32 3, %v2681_v27 }
 0x2d8   : > { %v2675_v46 = vmul.f32 %v2674_v34, %v2672_v30  ;;  %v7933_v39 = vpop.eup %7932  ;;  %v2380_v47 = vxor.u32 2147483648, %v7931_v36  ;;  %v2548_v49 = vadd.s32 %v2547_v48, %v2543_v50  ;;  %v2812_v21 = vsel %vm2811_vm15, %v2810_v63, 0 }
 0x2d9   : > { %v2377_v40 = vxor.u32 2147483648, %v7933_v39  ;;  %v2814_v23 = vand.u32 31, %v2812_v21  ;;  %v10416_v2 = vand.u32 3, %v2685_v33  ;;  %v2699_v41 = vand.u32 2139095040, %v10391_v15 }
 0x2da   : > { %v2676_v43 = vxor.u32 2147483648, %v2675_v46  ;;  %v2381_v53 = vsel %vm2379_vm14, %v2380_v47, %v7933_v39  ;;  %v5794_v32 = vsel %vm5792_vm10, %v2380_v47, %v7933_v39  ;;  %v2549_v14 = vadd.s32 536870912, %v2548_v49 }
 0x2db   : > { %v2378_v52 = vsel %vm2376_vm12, %v7931_v36, %v2377_v40  ;;  %v5791_v12 = vsel %vm5789_vm9, %v7931_v36, %v2377_v40  ;;  %v2815_v31 = vsub.s32 32, %v2814_v23  ;;  %v2808_v58 = vor.u32 8388608, %v2807_v16 }
 0x2dc   : > { %v2677_v35 = vsel %vm2594_vm2, %v2676_v43, %v2675_v46  ;;  %v2382_v42 = vsel %vm2375_vm11, %v2378_v52, %v2381_v53  ;;  %v5795_v60 = vsel %vm5788_vm5, %v5791_v12, %v5794_v32  ;;  %v10431_v4 = vshrl.u32 %v2549_v14, 30 }
 0x2dd   : > { %v2680_v56 = vsel %vm10382_vm0, %v10115_v54, %v2677_v35  ;;  %v2383_v3 = vsel %vm2372_vm8, nan, %v2382_v42  ;;  %v5796_v6 = vsel %vm2372_vm8, nan, %v5795_v60  ;;  %v2818_v62 = vshrl.u32 %v8057_v7, %v2815_v31 }
 0x2de   : > { %7934 = vcosq.f32 %v2680_v56  ;;  %7257 = vst [vmem:[%s8473_s3 + $0x120] sm:$0xff] %v2383_v3  ;;  %7290 = vst [vmem:[%s8473_s3 + $0x128] sm:$0xff] %v5796_v6  ;;  %v2551_v37 = vshll.u32 %v10431_v4, 30  ;;  %v2821_v29 = vshrl.u32 %v8058_v9, %v2815_v31  ;;  %vm2691_vm2 = vcmp.eq.s32.totalorder %v10416_v2, 2 }
 0x2df   : > { %7936 = vsinq.f32 %v2680_v56  ;;  %vm6101_vm1 = vcmp.eq.s32.totalorder %v10412_v38, 2  ;;  %v2817_v24 = vshll.u32 %v8056_v5, %v2814_v23  ;;  %v2824_v55 = vshrl.u32 %v8059_v11, %v2815_v31 }
 0x2e0   : > { %v10442_v25 = vsub.s32 %v2548_v49, %v2551_v37  ;;  %v2827_v19 = vshrl.u32 %v8060_v13, %v2815_v31  ;;  %v2700_v57 = vshrl.u32 %v2699_v41, 23  ;;  %vm2688_vm3 = vcmp.eq.s32.totalorder %v10416_v2, 0 }
 0x2e1   : > { %vm6098_vm4 = vcmp.eq.s32.totalorder %v10412_v38, 0  ;;  %v10453_v0 = vshrl.u32 %v2812_v21, 5  ;;  %v2820_v51 = vshll.u32 %v8057_v7, %v2814_v23  ;;  %v2826_v20 = vshll.u32 %v8059_v11, %v2814_v23 }
 0x2e2   : > { %v2554_v1 = vsub.s32 0, %v10442_v25  ;;  %vm2687_vm6 = vcmp.lt.s32.totalorder %v10416_v2, 2  ;;  %vm6097_vm7 = vcmp.lt.s32.totalorder %v10412_v38, 2  ;;  %v2819_v27 = vor.u32 %v2818_v62, %v2817_v24 }
 0x2e3   : > { %v2823_v61 = vshll.u32 %v8058_v9, %v2814_v23  ;;  %v2830_v17 = vshrl.u32 %v8061_v22, %v2815_v31  ;;  %v10461_v44 = vshll.u32 %v2808_v58, 8  ;;  %vm2684_vm0 = vweird.f32 %v10115_v54 }
 0x2e4   : > { %v7476_v30 = vmin.u32 %v2554_v1, %v10442_v25  ;;  %v2822_v34 = vor.u32 %v2821_v29, %v2820_v51  ;;  %v2828_v63 = vor.u32 %v2827_v19, %v2826_v20  ;;  %v2829_v33 = vshll.u32 %v8060_v13, %v2814_v23 }
 0x2e5   : > { %v2544_v50 = vadd.s32 %v10374_v59, %v10388_v18  ;;  %v2816_v36 = vshrl.u32 %v8056_v5, %v2815_v31  ;;  %v2825_v46 = vor.u32 %v2824_v55, %v2823_v61  ;;  %v7483_v48 = vadd.s32 4294967169, %v2700_v57 }
 0x2e6   : > { %v2556_v39 = vclz %v7476_v30  ;;  %v2574_v47 = vsub.s32 4, %v10431_v4  ;;  %v2831_v49 = vor.u32 %v2830_v17, %v2829_v33  ;;  %vm2832_vm5 = vcmp.lt.s32.totalorder %v10453_v0, 1 }
 0x2e7   : > { %vm2833_vm8 = vcmp.lt.s32.totalorder %v10453_v0, 2  ;;  %vm2834_vm9 = vcmp.lt.s32.totalorder %v10453_v0, 3  ;;  %vm2835_vm10 = vcmp.lt.s32.totalorder %v10453_v0, 4  ;;  %v2836_v21 = vsel %vm2832_vm5, %v2816_v36, %v2819_v27 }
 0x2e8   : > { %v7935_v16 = vpop.eup %7934  ;;  %v7477_v18 = vadd.s32 4294967294, %v2556_v39  ;;  %v2840_v43 = vsel %vm2832_vm5, %v2819_v27, %v2822_v34  ;;  %v2841_v23 = vsel %vm2835_vm10, %v2828_v63, 920167782  ;;  %v2837_v32 = vsel %vm2835_vm10, %v2825_v46, 2102212464 }
 0x2e9   : > { %v7937_v40 = vpop.eup %7936  ;;  %v2692_v59 = vxor.u32 2147483648, %v7935_v16  ;;  %v2842_v14 = vsel %vm2834_vm9, %v2825_v46, %v2841_v23  ;;  %v2844_v52 = vsel %vm2832_vm5, %v2822_v34, %v2825_v46  ;;  %v2845_v31 = vsel %vm2835_vm10, %v2831_v49, 1326507024 }
 0x2ea   : > { %v2689_v53 = vxor.u32 2147483648, %v7937_v40  ;;  %vm7478_vm11 = vcmp.lt.s32.totalorder %v7477_v18, 0  ;;  %v2843_v3 = vsel %vm2833_vm8, %v2840_v43, %v2842_v14  ;;  %v2838_v58 = vsel %vm2834_vm9, %v2822_v34, %v2837_v32 }
 0x2eb   : > { %v2693_v12 = vsel %vm2691_vm2, %v2692_v59, %v7937_v40  ;;  %v6103_v35 = vsel %vm6101_vm1, %v2692_v59, %v7937_v40  ;;  %v2559_v56 = vsel %vm7478_vm11, 0, %v7477_v18  ;;  %v2846_v55 = vsel %vm2834_vm9, %v2828_v63, %v2845_v31 }
 0x2ec   : > { %v2690_v42 = vsel %vm2688_vm3, %v7935_v16, %v2689_v53  ;;  %v6100_v60 = vsel %vm6098_vm4, %v7935_v16, %v2689_v53  ;;  %v2560_v37 = vsub.s32 32, %v2559_v56  ;;  %v2564_v24 = vsub.s32 4294967266, %v2559_v56 }
 0x2ed   : > { %v2694_v6 = vsel %vm2687_vm6, %v2690_v42, %v2693_v12  ;;  %v6104_v41 = vsel %vm6097_vm7, %v6100_v60, %v6103_v35  ;;  %v2847_v38 = vsel %vm2833_vm8, %v2844_v52, %v2846_v55  ;;  %v2561_v1 = vshll.u32 %v10442_v25, %v2559_v56 }
 0x2ee   : > { %v2695_v62 = vsel %vm2684_vm0, nan, %v2694_v6  ;;  %v6105_v29 = vsel %vm2684_vm0, nan, %v6104_v41  ;;  %v2562_v2 = vshrl.u32 %v2544_v50, %v2560_v37  ;;  %v2565_v51 = vadd.s32 127, %v2564_v24 }
 0x2ef   : > { %7260 = vst [vmem:[%s8473_s3 + $0x150] sm:$0xff] %v2695_v62  ;;  %7293 = vst [vmem:[%s8473_s3 + $0x158] sm:$0xff] %v6105_v29  ;;  %v10503_v19 = vmul.u32.u64.low %v10461_v44, %v2843_v3  ;;  %v10504_v57 = vmul.u32.u64.high %v10461_v44, %v2843_v3, %v10503_v19  ;;  %v10509_v54 = vmul.u32.u64.low %v10461_v44, %v2847_v38  ;;  %v10510_v20 = vmul.u32.u64.high %v10461_v44, %v2847_v38, %v10509_v54 }
 0x2f0   : > { %vm2490_vm12 = vcmp.lt.s32.totalorder %v10218_v8, 0  ;;  %v2839_v27 = vsel %vm2833_vm8, %v2836_v21, %v2838_v58  ;;  %v2706_v61 = vadd.s32 1, %v7483_v48  ;;  %v2563_v17 = vor.u32 %v2562_v2, %v2561_v1  ;;  %v332_v48 = vpop.permute.xlu1 %331 }
 0x2f1   : > { %v2566_v30 = vshll.u32 %v2565_v51, 23  ;;  %v2575_v34 = vsel %vm2490_vm12, %v2574_v47, %v10431_v4  ;;  %vm10520_vm13 = vcmp.le.f32.partialorder %v2488_v28, 0.7853982  ;;  %v2858_v63 = vadd.s32 1, %v10504_v57 }
 0x2f2   : > { %v2696_v33 = vand.u32 2147483647, %v10391_v15  ;;  %vm2707_vm14 = vcmp.gt.s32.totalorder %v2706_v61, 0  ;;  %v2855_v50 = vmul.u32 %v10461_v44, %v2839_v27  ;;  %vm2857_vm15 = vc.u32 %v10510_v20, %v10503_v19 }
 0x2f3   : > { %v2567_v0 = vor.u32 4788187, %v2566_v30  ;;  %v2708_v36 = vsel %vm2707_vm14, %v2706_v61, 0  ;;  %v2577_v4 = vsel %vm10520_vm13, 0, %v2575_v34  ;;  %v2859_v28 = vsel %vm2857_vm15, %v2858_v63, %v10504_v57 }
 0x2f4   : > { %v2710_v46 = vand.u32 31, %v2708_v36  ;;  %v2570_v47 = vcvt.s32.f32 %v2563_v17  ;;  %v2860_v49 = vadd.s32 %v2859_v28, %v2855_v50  ;;  %v2703_v16 = vand.u32 8388607, %v2696_v33 }
 0x2f5   : > { %v2568_v39 = vand.u32 2147483647, %v2567_v0  ;;  %v2581_v44 = vadd.s32 3, %v2577_v4  ;;  %v10535_v18 = vmul.f32 %v10314_v45, %v332_v48  ;;  %v2709_v43 = vshrl.u32 %v2708_v36, 5 }
 0x2f6   : > { %v2711_v21 = vsub.s32 32, %v2710_v46  ;;  %v2861_v59 = vadd.s32 536870912, %v2860_v49  ;;  %v2719_v53 = vshll.u32 %v8058_v9, %v2710_v46  ;;  %v2713_v31 = vshll.u32 %v8056_v5, %v2710_v46 }
 0x2f7   : > { %v2571_v40 = vmul.f32 %v2570_v47, %v2568_v39  ;;  %v2722_v60 = vshll.u32 %v8059_v11, %v2710_v46  ;;  %v2716_v41 = vshll.u32 %v8057_v7, %v2710_v46  ;;  %v3011_v37 = vand.u32 2139095040, %v10535_v18 }
 0x2f8   : > { %v2714_v23 = vshrl.u32 %v8057_v7, %v2711_v21  ;;  %v2720_v32 = vshrl.u32 %v8059_v11, %v2711_v21  ;;  %v10540_v52 = vshrl.u32 %v2861_v59, 30  ;;  %v2717_v12 = vshrl.u32 %v8058_v9, %v2711_v21 }
 0x2f9   : > { %v2572_v14 = vxor.u32 2147483648, %v2571_v40  ;;  %v2723_v35 = vshrl.u32 %v8060_v13, %v2711_v21  ;;  %v2726_v56 = vshrl.u32 %v8061_v22, %v2711_v21  ;;  %v2725_v24 = vshll.u32 %v8060_v13, %v2710_v46 }
 0x2fa   : > { %v2721_v42 = vor.u32 %v2720_v32, %v2719_v53  ;;  %v2863_v6 = vshll.u32 %v10540_v52, 30  ;;  %v2715_v62 = vor.u32 %v2714_v23, %v2713_v31  ;;  %v2718_v2 = vor.u32 %v2717_v12, %v2716_v41 }
 0x2fb   : > { %v2573_v3 = vsel %vm2490_vm12, %v2572_v14, %v2571_v40  ;;  %v2724_v29 = vor.u32 %v2723_v35, %v2722_v60  ;;  %vm2731_vm2 = vcmp.lt.s32.totalorder %v2709_v43, 4  ;;  %v10558_v38 = vand.u32 3, %v2577_v4 }
 0x2fc   : > { %v2576_v58 = vsel %vm10520_vm13, %v10218_v8, %v2573_v3  ;;  %v10556_v55 = vsub.s32 %v2860_v49, %v2863_v6  ;;  %v2727_v57 = vor.u32 %v2726_v56, %v2725_v24  ;;  %v2733_v1 = vsel %vm2731_vm2, %v2721_v42, 2102212464  ;;  %v327_v24 = vpop.permute.xlu0 %326 }
 0x2fd   : > { %7938 = vcosq.f32 %v2576_v58  ;;  %v10561_v51 = vand.u32 3, %v2581_v44  ;;  %vm2802_vm1 = vcmp.lt.s32.totalorder %v10317_v26, 0  ;;  %v2704_v27 = vor.u32 8388608, %v2703_v16 }
 0x2fe   : > { %7940 = vsinq.f32 %v2576_v58  ;;  %v2866_v54 = vsub.s32 0, %v10556_v55  ;;  %v2712_v61 = vshrl.u32 %v8056_v5, %v2711_v21  ;;  %vm2728_vm3 = vcmp.lt.s32.totalorder %v2709_v43, 1 }
 0x2ff   : > { %vm2730_vm4 = vcmp.lt.s32.totalorder %v2709_v43, 3  ;;  %v2737_v17 = vsel %vm2731_vm2, %v2724_v29, 920167782  ;;  %v3012_v30 = vshrl.u32 %v3011_v37, 23  ;;  %v2736_v0 = vsel %vm2728_vm3, %v2715_v62, %v2718_v2 }
 0x300   : > { %v7488_v34 = vmin.u32 %v2866_v54, %v10556_v55  ;;  %v2732_v25 = vsel %vm2728_vm3, %v2712_v61, %v2715_v62  ;;  %v2734_v63 = vsel %vm2730_vm4, %v2718_v2, %v2733_v1  ;;  %vm5995_vm6 = vcmp.eq.s32.totalorder %v10558_v38, 0 }
 0x301   : > { %vm5998_vm7 = vcmp.eq.s32.totalorder %v10558_v38, 2  ;;  %v2738_v50 = vsel %vm2730_vm4, %v2721_v42, %v2737_v17  ;;  %v2740_v36 = vsel %vm2728_vm3, %v2718_v2, %v2721_v42  ;;  %v2741_v4 = vsel %vm2731_vm2, %v2727_v57, 1326507024 }
 0x302   : > { %vm2583_vm0 = vcmp.lt.s32.totalorder %v10561_v51, 2  ;;  %vm5994_vm5 = vcmp.lt.s32.totalorder %v10558_v38, 2  ;;  %v2868_v28 = vclz %v7488_v34  ;;  %v2886_v46 = vsub.s32 4, %v10540_v52 }
 0x303   : > { %vm2729_vm8 = vcmp.lt.s32.totalorder %v2709_v43, 2  ;;  %v2744_v48 = vshll.u32 %v2704_v27, 8  ;;  %vm2580_vm9 = vweird.f32 %v10218_v8  ;;  %v2742_v49 = vsel %vm2730_vm4, %v2724_v29, %v2741_v4 }
 0x304   : > { %v2735_v39 = vsel %vm2729_vm8, %v2732_v25, %v2734_v63  ;;  %v2739_v47 = vsel %vm2729_vm8, %v2736_v0, %v2738_v50  ;;  %v7495_v16 = vadd.s32 4294967169, %v3012_v30  ;;  %vm10580_vm10 = vcmp.le.f32.partialorder %v2800_v10, 0.7853982 }
 0x305   : > { %v7489_v40 = vadd.s32 4294967294, %v2868_v28  ;;  %v2743_v44 = vsel %vm2729_vm8, %v2740_v36, %v2742_v49  ;;  %v10584_v59 = vmul.u32.u64.low %v2744_v48, %v2739_v47  ;;  %v10585_v23 = vmul.u32.u64.high %v2744_v48, %v2739_v47, %v10584_v59 }
 0x306   : > { %vm2584_vm11 = vcmp.eq.s32.totalorder %v10561_v51, 0  ;;  %v10589_v53 = vmul.u32.u64.low %v2744_v48, %v2743_v44  ;;  %v10590_v32 = vmul.u32.u64.high %v2744_v48, %v2743_v44, %v10589_v53  ;;  %v3018_v43 = vadd.s32 1, %v7495_v16 }
 0x307   : > { %v7939_v14 = vpop.eup %7938  ;;  %vm2587_vm12 = vcmp.eq.s32.totalorder %v10561_v51, 2  ;;  %v2856_v10 = vadd.s32 %v10503_v19, %v10510_v20  ;;  %vm7490_vm13 = vcmp.lt.s32.totalorder %v7489_v40, 0  ;;  %v3008_v12 = vand.u32 2147483647, %v10535_v18 }
 0x308   : > { %v7941_v35 = vpop.eup %7940  ;;  %v2588_v31 = vxor.u32 2147483648, %v7939_v14  ;;  %v2871_v42 = vsel %vm7490_vm13, 0, %v7489_v40  ;;  %v2887_v60 = vsel %vm2802_vm1, %v2886_v46, %v10540_v52  ;;  %v2751_v56 = vmul.u32 %v2744_v48, %v2735_v39 }
 0x309   : > { %v2585_v3 = vxor.u32 2147483648, %v7941_v35  ;;  %v2872_v6 = vsub.s32 32, %v2871_v42  ;;  %v2876_v41 = vsub.s32 4294967266, %v2871_v42  ;;  %vm3019_vm14 = vcmp.gt.s32.totalorder %v3018_v43, 0 }
 0x30a   : > { %v2589_v37 = vsel %vm2587_vm12, %v2588_v31, %v7941_v35  ;;  %v6000_v58 = vsel %vm5998_vm7, %v2588_v31, %v7941_v35  ;;  %v2873_v19 = vshll.u32 %v10556_v55, %v2871_v42  ;;  %vm2753_vm15 = vc.u32 %v10590_v32, %v10584_v59 }
 0x30b   : > { %v2586_v20 = vsel %vm2584_vm11, %v7939_v14, %v2585_v3  ;;  %v5997_v52 = vsel %vm5995_vm6, %v7939_v14, %v2585_v3  ;;  %v2874_v62 = vshrl.u32 %v2856_v10, %v2872_v6  ;;  %v2877_v29 = vadd.s32 127, %v2876_v41 }
 0x30c   : > { %v2590_v2 = vsel %vm2583_vm0, %v2586_v20, %v2589_v37  ;;  %v6001_v57 = vsel %vm5994_vm5, %v5997_v52, %v6000_v58  ;;  %v2754_v55 = vadd.s32 1, %v10585_v23  ;;  %v3020_v1 = vsel %vm3019_vm14, %v3018_v43, 0 }
 0x30d   : > { %v2591_v54 = vsel %vm2580_vm9, nan, %v2590_v2  ;;  %v6002_v27 = vsel %vm2580_vm9, nan, %v6001_v57  ;;  %v2875_v61 = vor.u32 %v2874_v62, %v2873_v19  ;;  %v2878_v17 = vshll.u32 %v2877_v29, 23 }
 0x30e   : > { %7259 = vst [vmem:[%s8473_s3 + $0x140] sm:$0xff] %v2591_v54  ;;  %7292 = vst [vmem:[%s8473_s3 + $0x148] sm:$0xff] %v6002_v27  ;;  %v2889_v51 = vsel %vm10580_vm10, 0, %v2887_v60  ;;  %v2755_v38 = vsel %vm2753_vm15, %v2754_v55, %v10585_v23  ;;  %v3022_v30 = vand.u32 31, %v3020_v1  ;;  %v10626_v34 = vmul.f32 %v10314_v45, %v327_v24 }
 0x30f   : > { %v2879_v25 = vor.u32 4788187, %v2878_v17  ;;  %v2756_v63 = vadd.s32 %v2755_v38, %v2751_v56  ;;  %v3015_v8 = vand.u32 8388607, %v3008_v12  ;;  %v2882_v36 = vcvt.s32.f32 %v2875_v61 }
 0x310   : > { %v3023_v0 = vsub.s32 32, %v3022_v30  ;;  %v2893_v4 = vadd.s32 3, %v2889_v51  ;;  %v10630_v46 = vand.u32 3, %v2889_v51  ;;  %v2907_v47 = vand.u32 2139095040, %v10626_v34 }
 0x311   : > { %v2880_v50 = vand.u32 2147483647, %v2879_v25  ;;  %v2757_v28 = vadd.s32 536870912, %v2756_v63  ;;  %v3021_v23 = vshrl.u32 %v3020_v1, 5  ;;  %v3031_v53 = vshll.u32 %v8058_v9, %v3022_v30 }
 0x312   : > { %v3026_v48 = vshrl.u32 %v8057_v7, %v3023_v0  ;;  %v3032_v39 = vshrl.u32 %v8059_v11, %v3023_v0  ;;  %v3029_v40 = vshrl.u32 %v8058_v9, %v3023_v0  ;;  %v3035_v44 = vshrl.u32 %v8060_v13, %v3023_v0 }
 0x313   : > { %v2883_v49 = vmul.f32 %v2882_v36, %v2880_v50  ;;  %v2758_v16 = vshrl.u32 %v2757_v28, 30  ;;  %v3034_v43 = vshll.u32 %v8059_v11, %v3022_v30  ;;  %v3038_v14 = vshrl.u32 %v8061_v22, %v3023_v0 }
 0x314   : > { %vm2698_vm2 = vcmp.lt.s32.totalorder %v10391_v15, 0  ;;  %v3025_v31 = vshll.u32 %v8056_v5, %v3022_v30  ;;  %v3028_v42 = vshll.u32 %v8057_v7, %v3022_v30  ;;  %v10643_v60 = vand.u32 3, %v2893_v4 }
 0x315   : > { %v2884_v10 = vxor.u32 2147483648, %v2883_v49  ;;  %v2759_v35 = vshll.u32 %v2758_v16, 30  ;;  %v3033_v56 = vor.u32 %v3032_v39, %v3031_v53  ;;  %v3036_v3 = vor.u32 %v3035_v44, %v3034_v43 }
 0x316   : > { %v3037_v6 = vshll.u32 %v8060_v13, %v3022_v30  ;;  %v3027_v58 = vor.u32 %v3026_v48, %v3025_v31  ;;  %v3030_v19 = vor.u32 %v3029_v40, %v3028_v42  ;;  %v3016_v52 = vor.u32 8388608, %v3015_v8 }
 0x317   : > { %v2885_v41 = vsel %vm2802_vm1, %v2884_v10, %v2883_v49  ;;  %v10648_v37 = vsub.s32 %v2756_v63, %v2759_v35  ;;  %v2908_v29 = vshrl.u32 %v2907_v47, 23  ;;  %vm10655_vm3 = vcmp.le.f32.partialorder %v2696_v33, 0.7853982 }
 0x318   : > { %v2888_v20 = vsel %vm10580_vm10, %v10317_v26, %v2885_v41  ;;  %v3039_v62 = vor.u32 %v3038_v14, %v3037_v6  ;;  %vm3040_vm1 = vcmp.lt.s32.totalorder %v3021_v23, 1  ;;  %vm3043_vm4 = vcmp.lt.s32.totalorder %v3021_v23, 4 }
 0x319   : > { %7942 = vcosq.f32 %v2888_v20  ;;  %v2762_v2 = vsub.s32 0, %v10648_v37  ;;  %v2782_v57 = vsub.s32 4, %v2758_v16  ;;  %v3045_v55 = vsel %vm3043_vm4, %v3033_v56, 2102212464 }
 0x31a   : > { %7944 = vsinq.f32 %v2888_v20  ;;  %v3049_v1 = vsel %vm3043_vm4, %v3036_v3, 920167782  ;;  %v3024_v54 = vshrl.u32 %v8056_v5, %v3023_v0  ;;  %vm3042_vm6 = vcmp.lt.s32.totalorder %v3021_v23, 3 }
 0x31b   : > { %v7484_v21 = vmin.u32 %v2762_v2, %v10648_v37  ;;  %v3048_v27 = vsel %vm3040_vm1, %v3027_v58, %v3030_v19  ;;  %v3050_v61 = vsel %vm3042_vm6, %v3033_v56, %v3049_v1  ;;  %v3052_v33 = vsel %vm3040_vm1, %v3030_v19, %v3033_v56 }
 0x31c   : > { %v3053_v17 = vsel %vm3043_vm4, %v3039_v62, 1326507024  ;;  %v3056_v51 = vshll.u32 %v3016_v52, 8  ;;  %vm6307_vm7 = vcmp.eq.s32.totalorder %v10630_v46, 2  ;;  %vm3041_vm0 = vcmp.lt.s32.totalorder %v3021_v23, 2 }
 0x31d   : > { %v2764_v38 = vclz %v7484_v21  ;;  %v3044_v30 = vsel %vm3040_vm1, %v3024_v54, %v3027_v58  ;;  %v3046_v25 = vsel %vm3042_vm6, %v3030_v19, %v3045_v55  ;;  %vm6304_vm5 = vcmp.eq.s32.totalorder %v10630_v46, 0 }
 0x31e   : > { %v2783_v63 = vsel %vm2698_vm2, %v2782_v57, %v2758_v16  ;;  %v3051_v8 = vsel %vm3041_vm0, %v3048_v27, %v3050_v61  ;;  %v3054_v0 = vsel %vm3042_vm6, %v3036_v3, %v3053_v17  ;;  %v7491_v50 = vadd.s32 4294967169, %v2908_v29 }
 0x31f   : > { %vm6303_vm8 = vcmp.lt.s32.totalorder %v10630_v46, 2  ;;  %v7485_v36 = vadd.s32 4294967294, %v2764_v38  ;;  %v3055_v4 = vsel %vm3041_vm0, %v3052_v33, %v3054_v0  ;;  %vm2892_vm9 = vweird.f32 %v10317_v26  ;;  %v342_v46 = vpop.permute.xlu1 %341 }
 0x320   : > { %v10670_v28 = vmul.u32.u64.low %v3056_v51, %v3051_v8  ;;  %v10671_v48 = vmul.u32.u64.high %v3056_v51, %v3051_v8, %v10670_v28  ;;  %v3047_v39 = vsel %vm3041_vm0, %v3044_v30, %v3046_v25  ;;  %v2914_v40 = vadd.s32 1, %v7491_v50 }
 0x321   : > { %v10675_v47 = vmul.u32.u64.low %v3056_v51, %v3055_v4  ;;  %v10676_v49 = vmul.u32.u64.high %v3056_v51, %v3055_v4, %v10675_v47  ;;  %vm2895_vm10 = vcmp.lt.s32.totalorder %v10643_v60, 2  ;;  %vm2896_vm11 = vcmp.eq.s32.totalorder %v10643_v60, 0 }
 0x322   : > { %vm2899_vm12 = vcmp.eq.s32.totalorder %v10643_v60, 2  ;;  %vm7486_vm13 = vcmp.lt.s32.totalorder %v7485_v36, 0  ;;  %v2752_v16 = vadd.s32 %v10584_v59, %v10590_v32  ;;  %v2785_v23 = vsel %vm10655_vm3, 0, %v2783_v63 }
 0x323   : > { %v2767_v44 = vsel %vm7486_vm13, 0, %v7485_v36  ;;  %vm2915_vm14 = vcmp.gt.s32.totalorder %v2914_v40, 0  ;;  %v7943_v53 = vpop.eup %7942  ;;  %v3063_v10 = vmul.u32 %v3056_v51, %v3047_v39  ;;  %v3066_v35 = vadd.s32 1, %v10671_v48 }
 0x324   : > { %v2768_v43 = vsub.s32 32, %v2767_v44  ;;  %v2772_v14 = vsub.s32 4294967266, %v2767_v44  ;;  %v7945_v31 = vpop.eup %7944  ;;  %v2900_v42 = vxor.u32 2147483648, %v7943_v53  ;;  %v2769_v56 = vshll.u32 %v10648_v37, %v2767_v44 }
 0x325   : > { %vm3065_vm15 = vc.u32 %v10676_v49, %v10670_v28  ;;  %v2916_v3 = vsel %vm2915_vm14, %v2914_v40, 0  ;;  %v2897_v59 = vxor.u32 2147483648, %v7945_v31  ;;  %v2789_v20 = vadd.s32 3, %v2785_v23 }
 0x326   : > { %v2770_v32 = vshrl.u32 %v2752_v16, %v2768_v43  ;;  %v2773_v6 = vadd.s32 127, %v2772_v14  ;;  %v3067_v41 = vsel %vm3065_vm15, %v3066_v35, %v10671_v48  ;;  %v2901_v58 = vsel %vm2899_vm12, %v2900_v42, %v7945_v31 }
 0x327   : > { %v6309_v19 = vsel %vm6307_vm7, %v2900_v42, %v7945_v31  ;;  %v3068_v52 = vadd.s32 %v3067_v41, %v3063_v10  ;;  %v2898_v37 = vsel %vm2896_vm11, %v7943_v53, %v2897_v59  ;;  %v6306_v62 = vsel %vm6304_vm5, %v7943_v53, %v2897_v59 }
 0x328   : > { %v2771_v29 = vor.u32 %v2770_v32, %v2769_v56  ;;  %v2774_v2 = vshll.u32 %v2773_v6, 23  ;;  %v2902_v57 = vsel %vm2895_vm10, %v2898_v37, %v2901_v58  ;;  %v6310_v55 = vsel %vm6303_vm8, %v6306_v62, %v6309_v19 }
 0x329   : > { %v3069_v1 = vadd.s32 536870912, %v3068_v52  ;;  %v2918_v21 = vand.u32 31, %v2916_v3  ;;  %v2903_v54 = vsel %vm2892_vm9, nan, %v2902_v57  ;;  %v6311_v27 = vsel %vm2892_vm9, nan, %v6310_v55 }
 0x32a   : > { %v2775_v61 = vor.u32 4788187, %v2774_v2  ;;  %v2904_v33 = vand.u32 2147483647, %v10626_v34  ;;  %7262 = vst [vmem:[%s8473_s3 + $0x170] sm:$0xff] %v2903_v54  ;;  %7295 = vst [vmem:[%s8473_s3 + $0x178] sm:$0xff] %v6311_v27  ;;  %v2778_v38 = vcvt.s32.f32 %v2771_v29  ;;  %v10725_v39 = vmul.f32 %v10314_v45, %v342_v46 }
 0x32b   : > { %v10709_v17 = vshrl.u32 %v3069_v1, 30  ;;  %v2919_v60 = vsub.s32 32, %v2918_v21  ;;  %v10711_v30 = vand.u32 3, %v2789_v20  ;;  %v10713_v25 = vand.u32 3, %v2785_v23 }
 0x32c   : > { %v2776_v51 = vand.u32 2147483647, %v2775_v61  ;;  %v2911_v26 = vand.u32 8388607, %v2904_v33  ;;  %v2921_v40 = vshll.u32 %v8056_v5, %v2918_v21  ;;  %v2924_v16 = vshll.u32 %v8057_v7, %v2918_v21 }
 0x32d   : > { %v3071_v63 = vshll.u32 %v10709_v17, 30  ;;  %v2922_v0 = vshrl.u32 %v8057_v7, %v2919_v60  ;;  %v2925_v50 = vshrl.u32 %v8058_v9, %v2919_v60  ;;  %v2928_v4 = vshrl.u32 %v8059_v11, %v2919_v60 }
 0x32e   : > { %v2779_v8 = vmul.f32 %v2778_v38, %v2776_v51  ;;  %v2931_v48 = vshrl.u32 %v8060_v13, %v2919_v60  ;;  %v2934_v44 = vshrl.u32 %v8061_v22, %v2919_v60  ;;  %v2917_v53 = vshrl.u32 %v2916_v3, 5 }
 0x32f   : > { %v10720_v36 = vsub.s32 %v3068_v52, %v3071_v63  ;;  %v2927_v43 = vshll.u32 %v8058_v9, %v2918_v21  ;;  %v2930_v14 = vshll.u32 %v8059_v11, %v2918_v21  ;;  %vm3010_vm1 = vcmp.lt.s32.totalorder %v10535_v18, 0 }
 0x330   : > { %v2780_v47 = vxor.u32 2147483648, %v2779_v8  ;;  %v2923_v45 = vor.u32 %v2922_v0, %v2921_v40  ;;  %v2926_v35 = vor.u32 %v2925_v50, %v2924_v16  ;;  %v2933_v31 = vshll.u32 %v8060_v13, %v2918_v21 }
 0x331   : > { %v3074_v23 = vsub.s32 0, %v10720_v36  ;;  %v2929_v3 = vor.u32 %v2928_v4, %v2927_v43  ;;  %v2932_v59 = vor.u32 %v2931_v48, %v2930_v14  ;;  %v3094_v32 = vsub.s32 4, %v10709_v17 }
 0x332   : > { %v2781_v10 = vsel %vm2698_vm2, %v2780_v47, %v2779_v8  ;;  %v2912_v6 = vor.u32 8388608, %v2911_v26  ;;  %v2935_v41 = vor.u32 %v2934_v44, %v2933_v31  ;;  %vm10744_vm2 = vcmp.le.f32.partialorder %v3008_v12, 0.7853982 }
 0x333   : > { %v2784_v42 = vsel %vm10655_vm3, %v10391_v15, %v2781_v10  ;;  %v7496_v56 = vmin.u32 %v3074_v23, %v10720_v36  ;;  %v2920_v24 = vshrl.u32 %v8056_v5, %v2919_v60  ;;  %vm2936_vm3 = vcmp.lt.s32.totalorder %v2917_v53, 1 }
 0x334   : > { %7946 = vcosq.f32 %v2784_v42  ;;  %vm2937_vm4 = vcmp.lt.s32.totalorder %v2917_v53, 2  ;;  %vm2938_vm6 = vcmp.lt.s32.totalorder %v2917_v53, 3  ;;  %vm2939_vm7 = vcmp.lt.s32.totalorder %v2917_v53, 4 }
 0x335   : > { %7948 = vsinq.f32 %v2784_v42  ;;  %v3076_v19 = vclz %v7496_v56  ;;  %v2944_v20 = vsel %vm2936_vm3, %v2923_v45, %v2926_v35  ;;  %v2941_v37 = vsel %vm2939_vm7, %v2929_v3, 2102212464 }
 0x336   : > { %v2945_v62 = vsel %vm2939_vm7, %v2932_v59, 920167782  ;;  %v2948_v29 = vsel %vm2936_vm3, %v2926_v35, %v2929_v3  ;;  %vm6204_vm0 = vcmp.eq.s32.totalorder %v10713_v25, 2  ;;  %v2940_v2 = vsel %vm2936_vm3, %v2920_v24, %v2923_v45 }
 0x337   : > { %v7497_v52 = vadd.s32 4294967294, %v3076_v19  ;;  %v2946_v12 = vsel %vm2938_vm6, %v2929_v3, %v2945_v62  ;;  %v2949_v57 = vsel %vm2939_vm7, %v2935_v41, 1326507024  ;;  %v2952_v55 = vshll.u32 %v2912_v6, 8 }
 0x338   : > { %vm6201_vm5 = vcmp.eq.s32.totalorder %v10713_v25, 0  ;;  %v2942_v1 = vsel %vm2938_vm6, %v2926_v35, %v2941_v37  ;;  %v2947_v21 = vsel %vm2937_vm4, %v2944_v20, %v2946_v12  ;;  %v2950_v54 = vsel %vm2938_vm6, %v2932_v59, %v2949_v57 }
 0x339   : > { %vm7498_vm8 = vcmp.lt.s32.totalorder %v7497_v52, 0  ;;  %vm6200_vm9 = vcmp.lt.s32.totalorder %v10713_v25, 2  ;;  %v2951_v61 = vsel %vm2937_vm4, %v2948_v29, %v2950_v54  ;;  %vm2788_vm10 = vweird.f32 %v10391_v15  ;;  %v10804_v15 = vld [vmem:[%s11562_s1] ss:$0 sm:$0xff] }
 0x33a   : > { %v3079_v27 = vsel %vm7498_vm8, 0, %v7497_v52  ;;  %v10757_v60 = vmul.u32.u64.low %v2952_v55, %v2947_v21  ;;  %v10758_v51 = vmul.u32.u64.high %v2952_v55, %v2947_v21, %v10757_v60  ;;  %v3064_v38 = vadd.s32 %v10670_v28, %v10676_v49 }
 0x33b   : > { %v3080_v46 = vsub.s32 32, %v3079_v27  ;;  %v3084_v63 = vsub.s32 4294967266, %v3079_v27  ;;  %v3095_v8 = vsel %vm3010_vm1, %v3094_v32, %v10709_v17  ;;  %vm2791_vm11 = vcmp.lt.s32.totalorder %v10711_v30, 2 }
 0x33c   : > { %v2943_v26 = vsel %vm2937_vm4, %v2940_v2, %v2942_v1  ;;  %v10769_v0 = vmul.u32.u64.low %v2952_v55, %v2951_v61  ;;  %v10770_v50 = vmul.u32.u64.high %v2952_v55, %v2951_v61, %v10769_v0  ;;  %v3081_v4 = vshll.u32 %v10720_v36, %v3079_v27  ;;  %v337_v2 = vpop.permute.xlu0 %336 }
 0x33d   : > { %v3082_v48 = vshrl.u32 %v3064_v38, %v3080_v46  ;;  %v3085_v47 = vadd.s32 127, %v3084_v63  ;;  %v3219_v40 = vand.u32 2139095040, %v10725_v39  ;;  %vm2792_vm12 = vcmp.eq.s32.totalorder %v10711_v30, 0 }
 0x33e   : > { %v7947_v28 = vpop.eup %7946  ;;  %vm2795_vm13 = vcmp.eq.s32.totalorder %v10711_v30, 2  ;;  %v3097_v49 = vsel %vm10744_vm2, 0, %v3095_v8  ;;  %v2962_v17 = vadd.s32 1, %v10758_v51  ;;  %v2959_v14 = vmul.u32 %v2952_v55, %v2943_v26 }
 0x33f   : > { %v7949_v16 = vpop.eup %7948  ;;  %v2796_v44 = vxor.u32 2147483648, %v7947_v28  ;;  %v3083_v23 = vor.u32 %v3082_v48, %v3081_v4  ;;  %v3086_v53 = vshll.u32 %v3085_v47, 23  ;;  %v3220_v43 = vshrl.u32 %v3219_v40, 23 }
 0x340   : > { %v2793_v36 = vxor.u32 2147483648, %v7949_v16  ;;  %vm2961_vm14 = vc.u32 %v10770_v50, %v10757_v60  ;;  %v3216_v10 = vand.u32 2147483647, %v10725_v39  ;;  %v3101_v12 = vadd.s32 3, %v3097_v49 }
 0x341   : > { %v2797_v45 = vsel %vm2795_vm13, %v2796_v44, %v7949_v16  ;;  %v6206_v35 = vsel %vm6204_vm0, %v2796_v44, %v7949_v16  ;;  %v3087_v31 = vor.u32 4788187, %v3086_v53  ;;  %v3090_v42 = vcvt.s32.f32 %v3083_v23 }
 0x342   : > { %v2794_v56 = vsel %vm2792_vm12, %v7947_v28, %v2793_v36  ;;  %v6203_v3 = vsel %vm6201_vm5, %v7947_v28, %v2793_v36  ;;  %v2963_v59 = vsel %vm2961_vm14, %v2962_v17, %v10758_v51  ;;  %v7503_v32 = vadd.s32 4294967169, %v3220_v43 }
 0x343   : > { %v2798_v6 = vsel %vm2791_vm11, %v2794_v56, %v2797_v45  ;;  %v6207_v41 = vsel %vm6200_vm9, %v6203_v3, %v6206_v35  ;;  %v3088_v19 = vand.u32 2147483647, %v3087_v31  ;;  %v2964_v24 = vadd.s32 %v2963_v59, %v2959_v14 }
 0x344   : > { %v2799_v20 = vsel %vm2788_vm10, nan, %v2798_v6  ;;  %v6208_v52 = vsel %vm2788_vm10, nan, %v6207_v41  ;;  %v3226_v37 = vadd.s32 1, %v7503_v32  ;;  %v3223_v25 = vand.u32 8388607, %v3216_v10 }
 0x345   : > { %7261 = vst [vmem:[%s8473_s3 + $0x160] sm:$0xff] %v2799_v20  ;;  %7294 = vst [vmem:[%s8473_s3 + $0x168] sm:$0xff] %v6208_v52  ;;  %v3091_v62 = vmul.f32 %v3090_v42, %v3088_v19  ;;  %v2965_v29 = vadd.s32 536870912, %v2964_v24  ;;  %v10807_v21 = vmul.f32 %v10804_v15, %v337_v2  ;;  %v10814_v51 = vand.u32 3, %v3097_v49 }
 0x346   : > { %vm3227_vm15 = vcmp.gt.s32.totalorder %v3226_v37, 0  ;;  %vm2906_vm3 = vcmp.lt.s32.totalorder %v10626_v34, 0  ;;  %v10817_v46 = vand.u32 3, %v3101_v12  ;;  %v3224_v8 = vor.u32 8388608, %v3223_v25 }
 0x347   : > { %v3092_v30 = vxor.u32 2147483648, %v3091_v62  ;;  %v2966_v57 = vshrl.u32 %v2965_v29, 30  ;;  %v3228_v55 = vsel %vm3227_vm15, %v3226_v37, 0  ;;  %v3115_v4 = vand.u32 2139095040, %v10807_v21 }
 0x348   : > { %v3230_v1 = vand.u32 31, %v3228_v55  ;;  %v2960_v44 = vadd.s32 %v10757_v60, %v10770_v50  ;;  %v10836_v53 = vshrl.u32 %v3228_v55, 5  ;;  %vm3104_vm4 = vcmp.eq.s32.totalorder %v10817_v46, 0 }
 0x349   : > { %v3093_v54 = vsel %vm3010_vm1, %v3092_v30, %v3091_v62  ;;  %v2967_v27 = vshll.u32 %v2966_v57, 30  ;;  %v2990_v26 = vsub.s32 4, %v2966_v57  ;;  %vm3107_vm1 = vcmp.eq.s32.totalorder %v10817_v46, 2 }
 0x34a   : > { %v3096_v61 = vsel %vm10744_vm2, %v10535_v18, %v3093_v54  ;;  %v3231_v38 = vsub.s32 32, %v3230_v1  ;;  %v3233_v48 = vshll.u32 %v8056_v5, %v3230_v1  ;;  %v3236_v47 = vshll.u32 %v8057_v7, %v3230_v1 }
 0x34b   : > { %7950 = vcosq.f32 %v3096_v61  ;;  %v10819_v63 = vsub.s32 %v2964_v24, %v2967_v27  ;;  %v3239_v28 = vshll.u32 %v8058_v9, %v3230_v1  ;;  %v3242_v17 = vshll.u32 %v8059_v11, %v3230_v1 }
 0x34c   : > { %7952 = vsinq.f32 %v3096_v61  ;;  %v3234_v0 = vshrl.u32 %v8057_v7, %v3231_v38  ;;  %v3237_v40 = vshrl.u32 %v8058_v9, %v3231_v38  ;;  %v3240_v49 = vshrl.u32 %v8059_v11, %v3231_v38 }
 0x34d   : > { %v2970_v58 = vsub.s32 0, %v10819_v63  ;;  %v3243_v16 = vshrl.u32 %v8060_v13, %v3231_v38  ;;  %vm6513_vm2 = vcmp.eq.s32.totalorder %v10814_v51, 2  ;;  %vm6510_vm6 = vcmp.eq.s32.totalorder %v10814_v51, 0 }
 0x34e   : > { %v3235_v43 = vor.u32 %v3234_v0, %v3233_v48  ;;  %v3238_v36 = vor.u32 %v3237_v40, %v3236_v47  ;;  %v3241_v14 = vor.u32 %v3240_v49, %v3239_v28  ;;  %vm3103_vm7 = vcmp.lt.s32.totalorder %v10817_v46, 2 }
 0x34f   : > { %v7492_v23 = vmin.u32 %v2970_v58, %v10819_v63  ;;  %v3244_v45 = vor.u32 %v3243_v16, %v3242_v17  ;;  %vm6509_vm0 = vcmp.lt.s32.totalorder %v10814_v51, 2  ;;  %v10842_v31 = vshll.u32 %v3224_v8, 8 }
 0x350   : > { %v3112_v60 = vand.u32 2147483647, %v10807_v21  ;;  %v3116_v50 = vshrl.u32 %v3115_v4, 23  ;;  %vm3100_vm5 = vweird.f32 %v10535_v18  ;;  %v2991_v42 = vsel %vm2906_vm3, %v2990_v26, %v2966_v57 }
 0x351   : > { %v2972_v35 = vclz %v7492_v23  ;;  %v3232_v56 = vshrl.u32 %v8056_v5, %v3231_v38  ;;  %v3245_v3 = vshll.u32 %v8060_v13, %v3230_v1  ;;  %v3246_v59 = vshrl.u32 %v8061_v22, %v3231_v38 }
 0x352   : > { %vm10853_vm8 = vcmp.le.f32.partialorder %v2904_v33, 0.7853982  ;;  %vm3248_vm9 = vcmp.lt.s32.totalorder %v10836_v53, 1  ;;  %vm3250_vm10 = vcmp.lt.s32.totalorder %v10836_v53, 3  ;;  %vm3251_vm11 = vcmp.lt.s32.totalorder %v10836_v53, 4 }
 0x353   : > { %v7493_v6 = vadd.s32 4294967294, %v2972_v35  ;;  %v3247_v41 = vor.u32 %v3246_v59, %v3245_v3  ;;  %v3253_v19 = vsel %vm3251_vm11, %v3241_v14, 2102212464  ;;  %v3256_v24 = vsel %vm3248_vm9, %v3235_v43, %v3238_v36 }
 0x354   : > { %v3257_v33 = vsel %vm3251_vm11, %v3244_v45, 920167782  ;;  %vm3249_vm13 = vcmp.lt.s32.totalorder %v10836_v53, 2  ;;  %v3252_v52 = vsel %vm3248_vm9, %v3232_v56, %v3235_v43  ;;  %v3254_v12 = vsel %vm3250_vm10, %v3238_v36, %v3253_v19 }
 0x355   : > { %v7951_v20 = vpop.eup %7950  ;;  %vm7494_vm12 = vcmp.lt.s32.totalorder %v7493_v6, 0  ;;  %v3258_v37 = vsel %vm3250_vm10, %v3241_v14, %v3257_v33  ;;  %v3260_v30 = vsel %vm3248_vm9, %v3238_v36, %v3241_v14  ;;  %v3261_v38 = vsel %vm3251_vm11, %v3247_v41, 1326507024  ;;  %v352_v36 = vpop.permute.xlu1 %351 }
 0x356   : > { %v7953_v62 = vpop.eup %7952  ;;  %v3108_v29 = vxor.u32 2147483648, %v7951_v20  ;;  %v2975_v2 = vsel %vm7494_vm12, 0, %v7493_v6  ;;  %v3259_v1 = vsel %vm3249_vm13, %v3256_v24, %v3258_v37  ;;  %v7499_v47 = vadd.s32 4294967169, %v3116_v50 }
 0x357   : > { %v3105_v57 = vxor.u32 2147483648, %v7953_v62  ;;  %v2976_v25 = vsub.s32 32, %v2975_v2  ;;  %v2980_v55 = vsub.s32 4294967266, %v2975_v2  ;;  %v2977_v61 = vshll.u32 %v10819_v63, %v2975_v2 }
 0x358   : > { %v3109_v54 = vsel %vm3107_vm1, %v3108_v29, %v7953_v62  ;;  %v6515_v27 = vsel %vm6513_vm2, %v3108_v29, %v7953_v62  ;;  %v3262_v63 = vsel %vm3250_vm10, %v3244_v45, %v3261_v38  ;;  %v2993_v46 = vsel %vm10853_vm8, 0, %v2991_v42 }
 0x359   : > { %v3106_v8 = vsel %vm3104_vm4, %v7951_v20, %v3105_v57  ;;  %v6512_v26 = vsel %vm6510_vm6, %v7951_v20, %v3105_v57  ;;  %v2978_v0 = vshrl.u32 %v2960_v44, %v2976_v25  ;;  %v2981_v4 = vadd.s32 127, %v2980_v55 }
 0x35a   : > { %v3110_v58 = vsel %vm3103_vm7, %v3106_v8, %v3109_v54  ;;  %v6516_v48 = vsel %vm6509_vm0, %v6512_v26, %v6515_v27  ;;  %v3263_v51 = vsel %vm3249_vm13, %v3260_v30, %v3262_v63  ;;  %v3255_v14 = vsel %vm3249_vm13, %v3252_v52, %v3254_v12  ;;  %v347_v26 = vpop.permute.xlu0 %346 }
 0x35b   : > { %v3111_v40 = vsel %vm3100_vm5, nan, %v3110_v58  ;;  %v6517_v28 = vsel %vm3100_vm5, nan, %v6516_v48  ;;  %v2979_v49 = vor.u32 %v2978_v0, %v2977_v61  ;;  %v2982_v17 = vshll.u32 %v2981_v4, 23 }
 0x35c   : > { %7264 = vst [vmem:[%s8473_s3 + $0x190] sm:$0xff] %v3111_v40  ;;  %7297 = vst [vmem:[%s8473_s3 + $0x198] sm:$0xff] %v6517_v28  ;;  %v10905_v16 = vmul.u32.u64.low %v10842_v31, %v3259_v1  ;;  %v10906_v44 = vmul.u32.u64.high %v10842_v31, %v3259_v1, %v10905_v16  ;;  %v10910_v43 = vmul.u32.u64.low %v10842_v31, %v3263_v51  ;;  %v10911_v18 = vmul.u32.u64.high %v10842_v31, %v3263_v51, %v10910_v43 }
 0x35d   : > { %v2983_v23 = vor.u32 4788187, %v2982_v17  ;;  %v3122_v45 = vadd.s32 1, %v7499_v47  ;;  %v2986_v50 = vcvt.s32.f32 %v2979_v49  ;;  %v2997_v42 = vadd.s32 3, %v2993_v46 }
 0x35e   : > { %v3274_v56 = vadd.s32 1, %v10906_v44  ;;  %v3119_v3 = vand.u32 8388607, %v3112_v60  ;;  %v10919_v59 = vmul.f32 %v10804_v15, %v352_v36  ;;  %v3271_v41 = vmul.u32 %v10842_v31, %v3255_v14 }
 0x35f   : > { %v2984_v35 = vand.u32 2147483647, %v2983_v23  ;;  %vm3123_vm14 = vcmp.gt.s32.totalorder %v3122_v45, 0  ;;  %vm3273_vm15 = vc.u32 %v10911_v18, %v10905_v16  ;;  %v10925_v20 = vand.u32 3, %v2997_v42 }
 0x360   : > { %v3124_v53 = vsel %vm3123_vm14, %v3122_v45, 0  ;;  %v3275_v19 = vsel %vm3273_vm15, %v3274_v56, %v10906_v44  ;;  %v10927_v52 = vand.u32 3, %v2993_v46  ;;  %v3120_v62 = vor.u32 8388608, %v3119_v3 }
 0x361   : > { %v2987_v6 = vmul.f32 %v2986_v50, %v2984_v35  ;;  %v3126_v24 = vand.u32 31, %v3124_v53  ;;  %v3276_v37 = vadd.s32 %v3275_v19, %v3271_v41  ;;  %v10929_v29 = vshrl.u32 %v3124_v53, 5 }
 0x362   : > { %v3427_v12 = vand.u32 2139095040, %v10919_v59  ;;  %v3424_v49 = vand.u32 2147483647, %v10919_v59  ;;  %v10949_v17 = vmul.f32 %v10804_v15, %v347_v26  ;;  %vm3218_vm1 = vcmp.lt.s32.totalorder %v10725_v39, 0 }
 0x363   : > { %v2988_v33 = vxor.u32 2147483648, %v2987_v6  ;;  %v3127_v2 = vsub.s32 32, %v3126_v24  ;;  %v3277_v30 = vadd.s32 536870912, %v3276_v37  ;;  %v3129_v57 = vshll.u32 %v8056_v5, %v3126_v24 }
 0x364   : > { %v3132_v25 = vshll.u32 %v8057_v7, %v3126_v24  ;;  %v3138_v27 = vshll.u32 %v8059_v11, %v3126_v24  ;;  %v3135_v0 = vshll.u32 %v8058_v9, %v3126_v24  ;;  %v3141_v4 = vshll.u32 %v8060_v13, %v3126_v24 }
 0x365   : > { %v2989_v31 = vsel %vm2906_vm3, %v2988_v33, %v2987_v6  ;;  %v3130_v1 = vshrl.u32 %v8057_v7, %v3127_v2  ;;  %v3133_v54 = vshrl.u32 %v8058_v9, %v3127_v2  ;;  %v3278_v61 = vshrl.u32 %v3277_v30, 30 }
 0x366   : > { %v2992_v55 = vsel %vm10853_vm8, %v10626_v34, %v2989_v31  ;;  %v3136_v38 = vshrl.u32 %v8059_v11, %v3127_v2  ;;  %v3139_v8 = vshrl.u32 %v8060_v13, %v3127_v2  ;;  %v3142_v32 = vshrl.u32 %v8061_v22, %v3127_v2 }
 0x367   : > { %7954 = vcosq.f32 %v2992_v55  ;;  %v3279_v58 = vshll.u32 %v3278_v61, 30  ;;  %v3131_v48 = vor.u32 %v3130_v1, %v3129_v57  ;;  %v3134_v63 = vor.u32 %v3133_v54, %v3132_v25 }
 0x368   : > { %7956 = vsinq.f32 %v2992_v55  ;;  %v3140_v47 = vor.u32 %v3139_v8, %v3138_v27  ;;  %v3137_v40 = vor.u32 %v3136_v38, %v3135_v0  ;;  %v3143_v28 = vor.u32 %v3142_v32, %v3141_v4 }
 0x369   : > { %vm6410_vm3 = vcmp.eq.s32.totalorder %v10927_v52, 2  ;;  %v10953_v46 = vsub.s32 %v3276_v37, %v3279_v58  ;;  %vm3147_vm2 = vcmp.lt.s32.totalorder %v10929_v29, 4  ;;  %vm3000_vm4 = vcmp.eq.s32.totalorder %v10925_v20, 0 }
 0x36a   : > { %vm3003_vm6 = vcmp.eq.s32.totalorder %v10925_v20, 2  ;;  %vm6407_vm7 = vcmp.eq.s32.totalorder %v10927_v52, 0  ;;  %vm3144_vm0 = vcmp.lt.s32.totalorder %v10929_v29, 1  ;;  %v3153_v51 = vsel %vm3147_vm2, %v3140_v47, 920167782 }
 0x36b   : > { %v3428_v44 = vshrl.u32 %v3427_v12, 23  ;;  %vm2999_vm5 = vcmp.lt.s32.totalorder %v10925_v20, 2  ;;  %vm6406_vm8 = vcmp.lt.s32.totalorder %v10927_v52, 2  ;;  %v3282_v23 = vsub.s32 0, %v10953_v46 }
 0x36c   : > { %vm3146_vm9 = vcmp.lt.s32.totalorder %v10929_v29, 3  ;;  %v3152_v43 = vsel %vm3144_vm0, %v3131_v48, %v3134_v63  ;;  %v3160_v36 = vshll.u32 %v3120_v62, 8  ;;  %vm2996_vm10 = vweird.f32 %v10626_v34 }
 0x36d   : > { %vm10971_vm11 = vcmp.le.f32.partialorder %v3216_v10, 0.7853982  ;;  %v3149_v45 = vsel %vm3147_vm2, %v3137_v40, 2102212464  ;;  %v3154_v35 = vsel %vm3146_vm9, %v3137_v40, %v3153_v51  ;;  %v3157_v50 = vsel %vm3147_vm2, %v3143_v28, 1326507024 }
 0x36e   : > { %v3431_v42 = vand.u32 8388607, %v3424_v49  ;;  %v7504_v56 = vmin.u32 %v3282_v23, %v10953_v46  ;;  %v3128_v3 = vshrl.u32 %v8056_v5, %v3127_v2  ;;  %vm3145_vm12 = vcmp.lt.s32.totalorder %v10929_v29, 2 }
 0x36f   : > { %v3156_v10 = vsel %vm3144_vm0, %v3134_v63, %v3137_v40  ;;  %v3302_v6 = vsub.s32 4, %v3278_v61  ;;  %v3155_v41 = vsel %vm3145_vm12, %v3152_v43, %v3154_v35  ;;  %v3158_v53 = vsel %vm3146_vm9, %v3140_v47, %v3157_v50 }
 0x370   : > { %v7511_v19 = vadd.s32 4294967169, %v3428_v44  ;;  %v3272_v33 = vadd.s32 %v10905_v16, %v10911_v18  ;;  %v3284_v37 = vclz %v7504_v56  ;;  %v3148_v62 = vsel %vm3144_vm0, %v3128_v3, %v3131_v48 }
 0x371   : > { %v7955_v24 = vpop.eup %7954  ;;  %v3150_v2 = vsel %vm3146_vm9, %v3134_v63, %v3149_v45  ;;  %v3159_v30 = vsel %vm3145_vm12, %v3156_v10, %v3158_v53  ;;  %v11000_v57 = vmul.u32.u64.low %v3160_v36, %v3155_v41  ;;  %v11001_v25 = vmul.u32.u64.high %v3160_v36, %v3155_v41, %v11000_v57 }
 0x372   : > { %v7957_v12 = vpop.eup %7956  ;;  %v3004_v31 = vxor.u32 2147483648, %v7955_v24  ;;  %v7505_v1 = vadd.s32 4294967294, %v3284_v37  ;;  %v11004_v54 = vmul.u32.u64.low %v3160_v36, %v3159_v30  ;;  %v11005_v16 = vmul.u32.u64.high %v3160_v36, %v3159_v30, %v11004_v54 }
 0x373   : > { %v3001_v55 = vxor.u32 2147483648, %v7957_v12  ;;  %v3303_v38 = vsel %vm3218_vm1, %v3302_v6, %v3278_v61  ;;  %v3434_v8 = vadd.s32 1, %v7511_v19  ;;  %v3151_v4 = vsel %vm3145_vm12, %v3148_v62, %v3150_v2 }
 0x374   : > { %v3005_v18 = vsel %vm3003_vm6, %v3004_v31, %v7957_v12  ;;  %v6412_v27 = vsel %vm6410_vm3, %v3004_v31, %v7957_v12  ;;  %vm7506_vm13 = vcmp.lt.s32.totalorder %v7505_v1, 0  ;;  %v3170_v61 = vadd.s32 1, %v11001_v25 }
 0x375   : > { %v3002_v26 = vsel %vm3000_vm4, %v7955_v24, %v3001_v55  ;;  %v6409_v0 = vsel %vm6407_vm7, %v7955_v24, %v3001_v55  ;;  %v3287_v48 = vsel %vm7506_vm13, 0, %v7505_v1  ;;  %v3305_v29 = vsel %vm10971_vm11, 0, %v3303_v38 }
 0x376   : > { %v3006_v32 = vsel %vm2999_vm5, %v3002_v26, %v3005_v18  ;;  %v6413_v58 = vsel %vm6406_vm8, %v6409_v0, %v6412_v27  ;;  %v3288_v40 = vsub.s32 32, %v3287_v48  ;;  %v3292_v20 = vsub.s32 4294967266, %v3287_v48 }
 0x377   : > { %v3007_v63 = vsel %vm2996_vm10, nan, %v3006_v32  ;;  %v6414_v47 = vsel %vm2996_vm10, nan, %v6413_v58  ;;  %v3167_v28 = vmul.u32 %v3160_v36, %v3151_v4  ;;  %vm3169_vm14 = vc.u32 %v11005_v16, %v11000_v57 }
 0x378   : > { %7263 = vst [vmem:[%s8473_s3 + $0x180] sm:$0xff] %v3007_v63  ;;  %7296 = vst [vmem:[%s8473_s3 + $0x188] sm:$0xff] %v6414_v47  ;;  %vm3435_vm15 = vcmp.gt.s32.totalorder %v3434_v8, 0  ;;  %v3289_v52 = vshll.u32 %v10953_v46, %v3287_v48  ;;  %v3290_v51 = vshrl.u32 %v3272_v33, %v3288_v40  ;;  %v3171_v44 = vsel %vm3169_vm14, %v3170_v61, %v11001_v25 }
 0x379   : > { %v3436_v23 = vsel %vm3435_vm15, %v3434_v8, 0  ;;  %v3293_v34 = vadd.s32 127, %v3292_v20  ;;  %v3172_v43 = vadd.s32 %v3171_v44, %v3167_v28  ;;  %v3432_v45 = vor.u32 8388608, %v3431_v42 }
 0x37a   : > { %v3438_v35 = vand.u32 31, %v3436_v23  ;;  %v3291_v50 = vor.u32 %v3290_v51, %v3289_v52  ;;  %v3309_v56 = vadd.s32 3, %v3305_v29  ;;  %v3323_v36 = vand.u32 2139095040, %v10949_v17 }
 0x37b   : > { %v3294_v3 = vshll.u32 %v3293_v34, 23  ;;  %v3173_v10 = vadd.s32 536870912, %v3172_v43  ;;  %v11039_v19 = vshll.u32 %v3432_v45, 8  ;;  %v3320_v46 = vand.u32 2147483647, %v10949_v17 }
 0x37c   : > { %v3439_v6 = vsub.s32 32, %v3438_v35  ;;  %v3298_v24 = vcvt.s32.f32 %v3291_v50  ;;  %v11042_v33 = vand.u32 3, %v3309_v56  ;;  %v11044_v37 = vand.u32 3, %v3305_v29 }
 0x37d   : > { %v3295_v41 = vor.u32 4788187, %v3294_v3  ;;  %v11037_v53 = vshrl.u32 %v3173_v10, 30  ;;  %v3441_v30 = vshll.u32 %v8056_v5, %v3438_v35  ;;  %v3444_v25 = vshll.u32 %v8057_v7, %v3438_v35 }
 0x37e   : > { %v3442_v42 = vshrl.u32 %v8057_v7, %v3439_v6  ;;  %v3445_v12 = vshrl.u32 %v8058_v9, %v3439_v6  ;;  %v3448_v31 = vshrl.u32 %v8059_v11, %v3439_v6  ;;  %v3451_v55 = vshrl.u32 %v8060_v13, %v3439_v6 }
 0x37f   : > { %v3296_v62 = vand.u32 2147483647, %v3295_v41  ;;  %v3175_v2 = vshll.u32 %v11037_v53, 30  ;;  %v3324_v1 = vshrl.u32 %v3323_v36, 23  ;;  %v3447_v27 = vshll.u32 %v8058_v9, %v3438_v35 }
 0x380   : > { %v3454_v38 = vshrl.u32 %v8061_v22, %v3439_v6  ;;  %v3437_v8 = vshrl.u32 %v3436_v23, 5  ;;  %v3443_v26 = vor.u32 %v3442_v42, %v3441_v30  ;;  %v3450_v0 = vshll.u32 %v8059_v11, %v3438_v35 }
 0x381   : > { %v3299_v54 = vmul.f32 %v3298_v24, %v3296_v62  ;;  %v11053_v18 = vsub.s32 %v3172_v43, %v3175_v2  ;;  %v3453_v4 = vshll.u32 %v8060_v13, %v3438_v35  ;;  %v3446_v48 = vor.u32 %v3445_v12, %v3444_v25 }
 0x382   : > { %v3449_v61 = vor.u32 %v3448_v31, %v3447_v27  ;;  %v3168_v63 = vadd.s32 %v11000_v57, %v11005_v16  ;;  %v3440_v47 = vshrl.u32 %v8056_v5, %v3439_v6  ;;  %v3452_v40 = vor.u32 %v3451_v55, %v3450_v0 }
 0x383   : > { %v3300_v32 = vxor.u32 2147483648, %v3299_v54  ;;  %v3178_v58 = vsub.s32 0, %v11053_v18  ;;  %v7507_v29 = vadd.s32 4294967169, %v3324_v1  ;;  %v3198_v52 = vsub.s32 4, %v11037_v53 }
 0x384   : > { %v3455_v51 = vor.u32 %v3454_v38, %v3453_v4  ;;  %vm3456_vm3 = vcmp.lt.s32.totalorder %v3437_v8, 1  ;;  %vm3457_vm2 = vcmp.lt.s32.totalorder %v3437_v8, 2  ;;  %vm3459_vm4 = vcmp.lt.s32.totalorder %v3437_v8, 4 }
 0x385   : > { %v3301_v20 = vsel %vm3218_vm1, %v3300_v32, %v3299_v54  ;;  %v7500_v28 = vmin.u32 %v3178_v58, %v11053_v18  ;;  %vm3114_vm6 = vcmp.lt.s32.totalorder %v10807_v21, 0  ;;  %v3461_v16 = vsel %vm3459_vm4, %v3449_v61, 2102212464 }
 0x386   : > { %v3304_v44 = vsel %vm10971_vm11, %v10725_v39, %v3301_v20  ;;  %v3464_v23 = vsel %vm3456_vm3, %v3443_v26, %v3446_v48  ;;  %vm3458_vm1 = vcmp.lt.s32.totalorder %v3437_v8, 3  ;;  %v3465_v34 = vsel %vm3459_vm4, %v3452_v40, 920167782 }
 0x387   : > { %7958 = vcosq.f32 %v3304_v44  ;;  %v3180_v57 = vclz %v7500_v28  ;;  %v3468_v43 = vsel %vm3456_vm3, %v3446_v48, %v3449_v61  ;;  %v3460_v35 = vsel %vm3456_vm3, %v3440_v47, %v3443_v26 }
 0x388   : > { %7960 = vsinq.f32 %v3304_v44  ;;  %v3466_v50 = vsel %vm3458_vm1, %v3449_v61, %v3465_v34  ;;  %v3469_v56 = vsel %vm3459_vm4, %v3455_v51, 1326507024  ;;  %vm11073_vm7 = vcmp.le.f32.partialorder %v3112_v60, 0.7853982 }
 0x389   : > { %v7501_v45 = vadd.s32 4294967294, %v3180_v57  ;;  %v3462_v3 = vsel %vm3458_vm1, %v3446_v48, %v3461_v16  ;;  %v3467_v10 = vsel %vm3457_vm2, %v3464_v23, %v3466_v50  ;;  %v3470_v6 = vsel %vm3458_vm1, %v3452_v40, %v3469_v56 }
 0x38a   : > { %v3330_v36 = vadd.s32 1, %v7507_v29  ;;  %v3471_v41 = vsel %vm3457_vm2, %v3468_v43, %v3470_v6  ;;  %v11080_v24 = vmul.u32.u64.low %v11039_v19, %v3467_v10  ;;  %v11081_v42 = vmul.u32.u64.high %v11039_v19, %v3467_v10, %v11080_v24 }
 0x38b   : > { %vm7502_vm0 = vcmp.lt.s32.totalorder %v7501_v45, 0  ;;  %v11085_v2 = vmul.u32.u64.low %v11039_v19, %v3471_v41  ;;  %v11086_v60 = vmul.u32.u64.high %v11039_v19, %v3471_v41, %v11085_v2  ;;  %v3463_v30 = vsel %vm3457_vm2, %v3460_v35, %v3462_v3 }
 0x38c   : > { %v3183_v62 = vsel %vm7502_vm0, 0, %v7501_v45  ;;  %vm3331_vm5 = vcmp.gt.s32.totalorder %v3330_v36, 0  ;;  %vm3308_vm8 = vweird.f32 %v10725_v39  ;;  %vm6715_vm9 = vcmp.lt.s32.totalorder %v11044_v37, 2 }
 0x38d   : > { %v3184_v12 = vsub.s32 32, %v3183_v62  ;;  %v3188_v31 = vsub.s32 4294967266, %v3183_v62  ;;  %v3332_v25 = vsel %vm3331_vm5, %v3330_v36, 0  ;;  %vm6716_vm10 = vcmp.eq.s32.totalorder %v11044_v37, 0 }
 0x38e   : > { %vm6719_vm11 = vcmp.eq.s32.totalorder %v11044_v37, 2  ;;  %v3185_v55 = vshll.u32 %v11053_v18, %v3183_v62  ;;  %v3482_v27 = vadd.s32 1, %v11081_v42  ;;  %v3334_v38 = vand.u32 31, %v3332_v25 }
 0x38f   : > { %v3186_v1 = vshrl.u32 %v3168_v63, %v3184_v12  ;;  %v3189_v54 = vadd.s32 127, %v3188_v31  ;;  %v3199_v8 = vsel %vm3114_vm6, %v3198_v52, %v11037_v53  ;;  %v3479_v26 = vmul.u32 %v11039_v19, %v3463_v30 }
 0x390   : > { %vm3481_vm12 = vc.u32 %v11086_v60, %v11080_v24  ;;  %v11103_v0 = vand.u32 8388607, %v3320_v46  ;;  %vm3311_vm13 = vcmp.lt.s32.totalorder %v11042_v33, 2  ;;  %vm3312_vm14 = vcmp.eq.s32.totalorder %v11042_v33, 0 }
 0x391   : > { %v7959_v4 = vpop.eup %7958  ;;  %v3187_v18 = vor.u32 %v3186_v1, %v3185_v55  ;;  %v3190_v32 = vshll.u32 %v3189_v54, 23  ;;  %v3483_v58 = vsel %vm3481_vm12, %v3482_v27, %v11081_v42  ;;  %vm3315_vm15 = vcmp.eq.s32.totalorder %v11042_v33, 2 }
 0x392   : > { %v7961_v48 = vpop.eup %7960  ;;  %v3316_v53 = vxor.u32 2147483648, %v7959_v4  ;;  %v3484_v19 = vadd.s32 %v3483_v58, %v3479_v26  ;;  %v3201_v47 = vsel %vm11073_vm7, 0, %v3199_v8  ;;  %v3335_v40 = vsub.s32 32, %v3334_v38 }
 0x393   : > { %v3313_v61 = vxor.u32 2147483648, %v7961_v48  ;;  %v3191_v63 = vor.u32 4788187, %v3190_v32  ;;  %v3328_v52 = vor.u32 8388608, %v11103_v0  ;;  %v3194_v16 = vcvt.s32.f32 %v3187_v18  ;;  %v362_v0 = vpop.permute.xlu1 %361 }
 0x394   : > { %v3317_v29 = vsel %vm3315_vm15, %v3316_v53, %v7961_v48  ;;  %v6721_v20 = vsel %vm6719_vm11, %v3316_v53, %v7961_v48  ;;  %v3485_v28 = vadd.s32 536870912, %v3484_v19  ;;  %v3205_v43 = vadd.s32 3, %v3201_v47 }
 0x395   : > { %v3314_v51 = vsel %vm3312_vm14, %v7959_v4, %v3313_v61  ;;  %v6718_v44 = vsel %vm6716_vm10, %v7959_v4, %v3313_v61  ;;  %v3192_v57 = vand.u32 2147483647, %v3191_v63  ;;  %v3344_v3 = vshrl.u32 %v8059_v11, %v3335_v40 }
 0x396   : > { %v3318_v23 = vsel %vm3311_vm13, %v3314_v51, %v3317_v29  ;;  %v6722_v34 = vsel %vm6715_vm9, %v6718_v44, %v6721_v20  ;;  %v11120_v45 = vshrl.u32 %v3485_v28, 30  ;;  %v11129_v10 = vand.u32 3, %v3201_v47 }
 0x397   : > { %v3319_v35 = vsel %vm3308_vm8, nan, %v3318_v23  ;;  %v6723_v50 = vsel %vm3308_vm8, nan, %v6722_v34  ;;  %v3195_v56 = vmul.f32 %v3194_v16, %v3192_v57  ;;  %v3338_v37 = vshrl.u32 %v8057_v7, %v3335_v40 }
 0x398   : > { %7266 = vst [vmem:[%s8473_s3 + $0x1b0] sm:$0xff] %v3319_v35  ;;  %7299 = vst [vmem:[%s8473_s3 + $0x1b8] sm:$0xff] %v6723_v50  ;;  %v3487_v33 = vshll.u32 %v11120_v45, 30  ;;  %v3341_v6 = vshrl.u32 %v8058_v9, %v3335_v40  ;;  %v3343_v41 = vshll.u32 %v8058_v9, %v3334_v38  ;;  %v3347_v42 = vshrl.u32 %v8060_v13, %v3335_v40 }
 0x399   : > { %v3196_v36 = vxor.u32 2147483648, %v3195_v56  ;;  %v3350_v39 = vshrl.u32 %v8061_v22, %v3335_v40  ;;  %v3333_v2 = vshrl.u32 %v3332_v25, 5  ;;  %v3337_v12 = vshll.u32 %v8056_v5, %v3334_v38 }
 0x39a   : > { %v11137_v62 = vsub.s32 %v3484_v19, %v3487_v33  ;;  %v3340_v31 = vshll.u32 %v8057_v7, %v3334_v38  ;;  %v3345_v55 = vor.u32 %v3344_v3, %v3343_v41  ;;  %v3346_v1 = vshll.u32 %v8059_v11, %v3334_v38 }
 0x39b   : > { %v3197_v30 = vsel %vm3114_vm6, %v3196_v36, %v3195_v56  ;;  %v3349_v54 = vshll.u32 %v8060_v13, %v3334_v38  ;;  %v3339_v26 = vor.u32 %v3338_v37, %v3337_v12  ;;  %v11149_v4 = vand.u32 3, %v3205_v43 }
 0x39c   : > { %v3200_v27 = vsel %vm11073_vm7, %v10807_v21, %v3197_v30  ;;  %v3490_v8 = vsub.s32 0, %v11137_v62  ;;  %v3342_v25 = vor.u32 %v3341_v6, %v3340_v31  ;;  %v3348_v18 = vor.u32 %v3347_v42, %v3346_v1 }
 0x39d   : > { %7962 = vcosq.f32 %v3200_v27  ;;  %v3351_v32 = vor.u32 %v3350_v39, %v3349_v54  ;;  %vm3426_vm3 = vcmp.lt.s32.totalorder %v10919_v59, 0  ;;  %v3336_v38 = vshrl.u32 %v8056_v5, %v3335_v40  ;;  %v357_v54 = vpop.permute.xlu0 %356 }
 0x39e   : > { %7964 = vsinq.f32 %v3200_v27  ;;  %v7512_v58 = vmin.u32 %v3490_v8, %v11137_v62  ;;  %vm3355_vm2 = vcmp.lt.s32.totalorder %v3333_v2, 4  ;;  %vm3352_vm4 = vcmp.lt.s32.totalorder %v3333_v2, 1 }
 0x39f   : > { %v3357_v14 = vsel %vm3355_vm2, %v3345_v55, 2102212464  ;;  %v11154_v48 = vshll.u32 %v3328_v52, 8  ;;  %v11157_v53 = vmul.f32 %v10804_v15, %v362_v0  ;;  %vm3354_vm6 = vcmp.lt.s32.totalorder %v3333_v2, 3 }
 0x3a0   : > { %v3492_v19 = vclz %v7512_v58  ;;  %v3356_v61 = vsel %vm3352_vm4, %v3336_v38, %v3339_v26  ;;  %v3360_v63 = vsel %vm3352_vm4, %v3339_v26, %v3342_v25  ;;  %vm6616_vm1 = vcmp.eq.s32.totalorder %v11129_v10, 2 }
 0x3a1   : > { %v3358_v47 = vsel %vm3354_vm6, %v3342_v25, %v3357_v14  ;;  %v3361_v29 = vsel %vm3355_vm2, %v3348_v18, 920167782  ;;  %v3364_v20 = vsel %vm3352_vm4, %v3342_v25, %v3345_v55  ;;  %v3365_v28 = vsel %vm3355_vm2, %v3351_v32, 1326507024 }
 0x3a2   : > { %vm6613_vm7 = vcmp.eq.s32.totalorder %v11129_v10, 0  ;;  %v7513_v40 = vadd.s32 4294967294, %v3492_v19  ;;  %vm3353_vm0 = vcmp.lt.s32.totalorder %v3333_v2, 2  ;;  %v3362_v51 = vsel %vm3354_vm6, %v3345_v55, %v3361_v29 }
 0x3a3   : > { %v3366_v52 = vsel %vm3354_vm6, %v3348_v18, %v3365_v28  ;;  %vm3207_vm5 = vcmp.lt.s32.totalorder %v11149_v4, 2  ;;  %vm6612_vm8 = vcmp.lt.s32.totalorder %v11129_v10, 2  ;;  %v3510_v44 = vsub.s32 4, %v11120_v45 }
 0x3a4   : > { %v3363_v57 = vsel %vm3353_vm0, %v3360_v63, %v3362_v51  ;;  %v3367_v16 = vsel %vm3353_vm0, %v3364_v20, %v3366_v52  ;;  %vm3204_vm9 = vweird.f32 %v10807_v21  ;;  %vm11167_vm10 = vcmp.le.f32.partialorder %v3424_v49, 0.7853982 }
 0x3a5   : > { %vm7514_vm11 = vcmp.lt.s32.totalorder %v7513_v40, 0  ;;  %v3359_v34 = vsel %vm3353_vm0, %v3356_v61, %v3358_v47  ;;  %v11172_v43 = vmul.u32.u64.low %v11154_v48, %v3367_v16  ;;  %v11173_v35 = vmul.u32.u64.high %v11154_v48, %v3367_v16, %v11172_v43 }
 0x3a6   : > { %vm3208_vm12 = vcmp.eq.s32.totalorder %v11149_v4, 0  ;;  %v3495_v50 = vsel %vm7514_vm11, 0, %v7513_v40  ;;  %v11177_v56 = vmul.u32.u64.low %v11154_v48, %v3363_v57  ;;  %v11178_v3 = vmul.u32.u64.high %v11154_v48, %v3363_v57, %v11177_v56 }
 0x3a7   : > { %v3480_v49 = vadd.s32 %v11080_v24, %v11086_v60  ;;  %v3496_v33 = vsub.s32 32, %v3495_v50  ;;  %v3500_v37 = vsub.s32 4294967266, %v3495_v50  ;;  %v3635_v6 = vand.u32 2139095040, %v11157_v53  ;;  %v7963_v36 = vpop.eup %7962 }
 0x3a8   : > { %vm3211_vm13 = vcmp.eq.s32.totalorder %v11149_v4, 2  ;;  %v3511_v41 = vsel %vm3426_vm3, %v3510_v44, %v11120_v45  ;;  %v3375_v42 = vmul.u32 %v11154_v48, %v3359_v34  ;;  %v3632_v39 = vand.u32 2147483647, %v11157_v53  ;;  %v7965_v2 = vpop.eup %7964 }
 0x3a9   : > { %v3212_v12 = vxor.u32 2147483648, %v7963_v36  ;;  %v3497_v31 = vshll.u32 %v11137_v62, %v3495_v50  ;;  %v3498_v24 = vshrl.u32 %v3480_v49, %v3496_v33  ;;  %v3501_v60 = vadd.s32 127, %v3500_v37  ;;  %v367_v33 = vpop.permute.xlu0 %366 }
 0x3aa   : > { %v3209_v30 = vxor.u32 2147483648, %v7965_v2  ;;  %vm3377_vm14 = vc.u32 %v11173_v35, %v11177_v56  ;;  %v3378_v55 = vadd.s32 1, %v11178_v3  ;;  %v3636_v1 = vshrl.u32 %v3635_v6, 23 }
 0x3ab   : > { %v3213_v27 = vsel %vm3211_vm13, %v3212_v12, %v7965_v2  ;;  %v6618_v45 = vsel %vm6616_vm1, %v3212_v12, %v7965_v2  ;;  %v3499_v8 = vor.u32 %v3498_v24, %v3497_v31  ;;  %v3502_v26 = vshll.u32 %v3501_v60, 23 }
 0x3ac   : > { %v3210_v62 = vsel %vm3208_vm12, %v7963_v36, %v3209_v30  ;;  %v6615_v25 = vsel %vm6613_vm7, %v7963_v36, %v3209_v30  ;;  %v3379_v0 = vsel %vm3377_vm14, %v3378_v55, %v11178_v3  ;;  %v7519_v18 = vadd.s32 4294967169, %v3636_v1 }
 0x3ad   : > { %v3214_v32 = vsel %vm3207_vm5, %v3210_v62, %v3213_v27  ;;  %v6619_v58 = vsel %vm6612_vm8, %v6615_v25, %v6618_v45  ;;  %v3503_v38 = vor.u32 4788187, %v3502_v26  ;;  %v11206_v14 = vmul.f32 %v10804_v15, %v357_v54 }
 0x3ae   : > { %v3215_v48 = vsel %vm3204_vm9, nan, %v3214_v32  ;;  %v6620_v19 = vsel %vm3204_vm9, nan, %v6619_v58  ;;  %v3513_v61 = vsel %vm11167_vm10, 0, %v3511_v41  ;;  %v3380_v63 = vadd.s32 %v3379_v0, %v3375_v42 }
 0x3af   : > { %7265 = vst [vmem:[%s8473_s3 + $0x1a0] sm:$0xff] %v3215_v48  ;;  %7298 = vst [vmem:[%s8473_s3 + $0x1a8] sm:$0xff] %v6620_v19  ;;  %v3504_v4 = vand.u32 2147483647, %v3503_v38  ;;  %v3506_v47 = vcvt.s32.f32 %v3499_v8  ;;  %v3639_v10 = vand.u32 8388607, %v3632_v39  ;;  %v11232_v36 = vadd.s32 %v11177_v56, %v11173_v35 }
 0x3b0   : > { %v3642_v29 = vadd.s32 1, %v7519_v18  ;;  %v3381_v20 = vadd.s32 536870912, %v3380_v63  ;;  %v3517_v40 = vadd.s32 3, %v3513_v61  ;;  %v3528_v21 = vand.u32 2147483647, %v11206_v14 }
 0x3b1   : > { %v3507_v28 = vmul.f32 %v3506_v47, %v3504_v4  ;;  %v3640_v57 = vor.u32 8388608, %v3639_v10  ;;  %v3531_v34 = vand.u32 2139095040, %v11206_v14  ;;  %v11222_v3 = vand.u32 3, %v3513_v61 }
 0x3b2   : > { %vm3643_vm15 = vcmp.gt.s32.totalorder %v3642_v29, 0  ;;  %v3382_v51 = vshrl.u32 %v3381_v20, 30  ;;  %vm3322_vm2 = vcmp.lt.s32.totalorder %v10949_v17, 0  ;;  %v11228_v6 = vand.u32 3, %v3517_v40 }
 0x3b3   : > { %v3644_v52 = vsel %vm3643_vm15, %v3642_v29, 0  ;;  %v3508_v44 = vxor.u32 2147483648, %v3507_v28  ;;  %v11236_v42 = vshll.u32 %v3640_v57, 8  ;;  %v3532_v2 = vshrl.u32 %v3531_v34, 23 }
 0x3b4   : > { %v3646_v16 = vand.u32 31, %v3644_v52  ;;  %v3383_v43 = vshll.u32 %v3382_v51, 30  ;;  %v11240_v12 = vand.u32 8388607, %v3528_v21  ;;  %v11245_v24 = vmul.f32 %v10804_v15, %v367_v33 }
 0x3b5   : > { %v3509_v50 = vsel %vm3426_vm3, %v3508_v44, %v3507_v28  ;;  %v3406_v35 = vsub.s32 4, %v3382_v51  ;;  %v11251_v1 = vshrl.u32 %v3644_v52, 5  ;;  %vm3523_vm3 = vcmp.eq.s32.totalorder %v11228_v6, 2 }
 0x3b6   : > { %v3647_v49 = vsub.s32 32, %v3646_v16  ;;  %v3512_v37 = vsel %vm11167_vm10, %v10919_v59, %v3509_v50  ;;  %v11234_v41 = vsub.s32 %v3380_v63, %v3383_v43  ;;  %v3655_v60 = vshll.u32 %v8058_v9, %v3646_v16 }
 0x3b7   : > { %7966 = vcosq.f32 %v3512_v37  ;;  %v3649_v54 = vshll.u32 %v8056_v5, %v3646_v16  ;;  %v3652_v27 = vshll.u32 %v8057_v7, %v3646_v16  ;;  %vm6925_vm4 = vcmp.eq.s32.totalorder %v11222_v3, 2 }
 0x3b8   : > { %7968 = vsinq.f32 %v3512_v37  ;;  %v3386_v23 = vsub.s32 0, %v11234_v41  ;;  %v3650_v31 = vshrl.u32 %v8057_v7, %v3647_v49  ;;  %v3653_v56 = vshrl.u32 %v8058_v9, %v3647_v49 }
 0x3b9   : > { %v3656_v30 = vshrl.u32 %v8059_v11, %v3647_v49  ;;  %v3658_v45 = vshll.u32 %v8059_v11, %v3646_v16  ;;  %v3659_v8 = vshrl.u32 %v8060_v13, %v3647_v49  ;;  %v3536_v26 = vor.u32 8388608, %v11240_v12 }
 0x3ba   : > { %v7508_v55 = vmin.u32 %v3386_v23, %v11234_v41  ;;  %vm3520_vm6 = vcmp.eq.s32.totalorder %v11228_v6, 0  ;;  %vm6922_vm1 = vcmp.eq.s32.totalorder %v11222_v3, 0  ;;  %v3651_v25 = vor.u32 %v3650_v31, %v3649_v54 }
 0x3bb   : > { %v3657_v15 = vor.u32 %v3656_v30, %v3655_v60  ;;  %v3654_v0 = vor.u32 %v3653_v56, %v3652_v27  ;;  %v7515_v18 = vadd.s32 4294967169, %v3532_v2  ;;  %vm3519_vm7 = vcmp.lt.s32.totalorder %v11228_v6, 2 }
 0x3bc   : > { %v3388_v62 = vclz %v7508_v55  ;;  %vm6921_vm0 = vcmp.lt.s32.totalorder %v11222_v3, 2  ;;  %v3407_v32 = vsel %vm3322_vm2, %v3406_v35, %v3382_v51  ;;  %v3660_v58 = vor.u32 %v3659_v8, %v3658_v45 }
 0x3bd   : > { %v3661_v38 = vshll.u32 %v8060_v13, %v3646_v16  ;;  %v3662_v48 = vshrl.u32 %v8061_v22, %v3647_v49  ;;  %vm3516_vm5 = vweird.f32 %v10919_v59  ;;  %v3648_v61 = vshrl.u32 %v8056_v5, %v3647_v49 }
 0x3be   : > { %v7509_v19 = vadd.s32 4294967294, %v3388_v62  ;;  %vm3664_vm8 = vcmp.lt.s32.totalorder %v11251_v1, 1  ;;  %vm3667_vm9 = vcmp.lt.s32.totalorder %v11251_v1, 4  ;;  %vm11274_vm10 = vcmp.le.f32.partialorder %v3320_v46, 0.7853982 }
 0x3bf   : > { %v3663_v4 = vor.u32 %v3662_v48, %v3661_v38  ;;  %vm3665_vm11 = vcmp.lt.s32.totalorder %v11251_v1, 2  ;;  %vm3666_vm12 = vcmp.lt.s32.totalorder %v11251_v1, 3  ;;  %v3669_v47 = vsel %vm3667_vm9, %v3657_v15, 2102212464 }
 0x3c0   : > { %vm7510_vm13 = vcmp.lt.s32.totalorder %v7509_v19, 0  ;;  %v3668_v10 = vsel %vm3664_vm8, %v3648_v61, %v3651_v25  ;;  %v3672_v29 = vsel %vm3664_vm8, %v3651_v25, %v3654_v0  ;;  %v3673_v20 = vsel %vm3667_vm9, %v3660_v58, 920167782 }
 0x3c1   : > { %v7967_v28 = vpop.eup %7966  ;;  %v3391_v40 = vsel %vm7510_vm13, 0, %v7509_v19  ;;  %v3670_v46 = vsel %vm3666_vm12, %v3654_v0, %v3669_v47  ;;  %v3674_v51 = vsel %vm3666_vm12, %v3657_v15, %v3673_v20  ;;  %v3677_v52 = vsel %vm3667_vm9, %v3663_v4, 1326507024 }
 0x3c2   : > { %v7969_v44 = vpop.eup %7968  ;;  %v3524_v57 = vxor.u32 2147483648, %v7967_v28  ;;  %v3392_v16 = vsub.s32 32, %v3391_v40  ;;  %v3396_v34 = vsub.s32 4294967266, %v3391_v40  ;;  %v3676_v43 = vsel %vm3664_vm8, %v3654_v0, %v3657_v15 }
 0x3c3   : > { %v3521_v50 = vxor.u32 2147483648, %v7969_v44  ;;  %v3393_v49 = vshll.u32 %v11234_v41, %v3391_v40  ;;  %v3675_v33 = vsel %vm3665_vm11, %v3672_v29, %v3674_v51  ;;  %v3678_v37 = vsel %vm3666_vm12, %v3660_v58, %v3677_v52 }
 0x3c4   : > { %v3525_v2 = vsel %vm3523_vm3, %v3524_v57, %v7969_v44  ;;  %v6927_v23 = vsel %vm6925_vm4, %v3524_v57, %v7969_v44  ;;  %v3394_v31 = vshrl.u32 %v11232_v36, %v3392_v16  ;;  %v3397_v35 = vadd.s32 127, %v3396_v34 }
 0x3c5   : > { %v3522_v41 = vsel %vm3520_vm6, %v7967_v28, %v3521_v50  ;;  %v6924_v56 = vsel %vm6922_vm1, %v7967_v28, %v3521_v50  ;;  %v3679_v60 = vsel %vm3665_vm11, %v3676_v43, %v3678_v37  ;;  %v3538_v30 = vadd.s32 1, %v7515_v18 }
 0x3c6   : > { %v3526_v55 = vsel %vm3519_vm7, %v3522_v41, %v3525_v2  ;;  %v6928_v54 = vsel %vm6921_vm0, %v6924_v56, %v6927_v23  ;;  %v3395_v27 = vor.u32 %v3394_v31, %v3393_v49  ;;  %v3398_v15 = vshll.u32 %v3397_v35, 23 }
 0x3c7   : > { %v3527_v36 = vsel %vm3516_vm5, nan, %v3526_v55  ;;  %v6929_v45 = vsel %vm3516_vm5, nan, %v6928_v54  ;;  %v11315_v8 = vmul.u32.u64.low %v11236_v42, %v3679_v60  ;;  %v11316_v62 = vmul.u32.u64.high %v11236_v42, %v3679_v60, %v11315_v8 }
 0x3c8   : > { %7268 = vst [vmem:[%s8473_s3 + $0x1d0] sm:$0xff] %v3527_v36  ;;  %7301 = vst [vmem:[%s8473_s3 + $0x1d8] sm:$0xff] %v6929_v45  ;;  %v3399_v25 = vor.u32 4788187, %v3398_v15  ;;  %v3409_v6 = vsel %vm11274_vm10, 0, %v3407_v32  ;;  %v11323_v3 = vmul.u32.u64.low %v11236_v42, %v3675_v33  ;;  %v11324_v0 = vmul.u32.u64.high %v11236_v42, %v3675_v33, %v11323_v3 }
 0x3c9   : > { %v3671_v18 = vsel %vm3665_vm11, %v3668_v10, %v3670_v46  ;;  %vm3539_vm14 = vcmp.gt.s32.totalorder %v3538_v30, 0  ;;  %v3402_v58 = vcvt.s32.f32 %v3395_v27  ;;  %v3413_v48 = vadd.s32 3, %v3409_v6 }
 0x3ca   : > { %v3400_v59 = vand.u32 2147483647, %v3399_v25  ;;  %v3540_v38 = vsel %vm3539_vm14, %v3538_v30, 0  ;;  %vm3689_vm15 = vc.u32 %v11316_v62, %v11323_v3  ;;  %v11333_v32 = vshll.u32 %v3536_v26, 8 }
 0x3cb   : > { %v3542_v19 = vand.u32 31, %v3540_v38  ;;  %v3687_v4 = vmul.u32 %v11236_v42, %v3671_v18  ;;  %v3690_v47 = vadd.s32 1, %v11324_v0  ;;  %v3739_v1 = vand.u32 2139095040, %v11245_v24 }
 0x3cc   : > { %v3403_v61 = vmul.f32 %v3402_v58, %v3400_v59  ;;  %v3541_v10 = vshrl.u32 %v3540_v38, 5  ;;  %v6817_v35 = vand.u32 3, %v3409_v6  ;;  %v3414_v45 = vand.u32 3, %v3413_v48 }
 0x3cd   : > { %v3543_v29 = vsub.s32 32, %v3542_v19  ;;  %v3545_v20 = vshll.u32 %v8056_v5, %v3542_v19  ;;  %v3548_v28 = vshll.u32 %v8057_v7, %v3542_v19  ;;  %v3691_v46 = vsel %vm3689_vm15, %v3690_v47, %v11324_v0 }
 0x3ce   : > { %v3404_v40 = vxor.u32 2147483648, %v3403_v61  ;;  %v3551_v12 = vshll.u32 %v8058_v9, %v3542_v19  ;;  %v3554_v26 = vshll.u32 %v8059_v11, %v3542_v19  ;;  %v3692_v51 = vadd.s32 %v3691_v46, %v3687_v4 }
 0x3cf   : > { %v3546_v42 = vshrl.u32 %v8057_v7, %v3543_v29  ;;  %v3549_v52 = vshrl.u32 %v8058_v9, %v3543_v29  ;;  %v3557_v44 = vshll.u32 %v8060_v13, %v3542_v19  ;;  %v3552_v16 = vshrl.u32 %v8059_v11, %v3543_v29 }
 0x3d0   : > { %v3405_v57 = vsel %vm3322_vm2, %v3404_v40, %v3403_v61  ;;  %v3555_v34 = vshrl.u32 %v8060_v13, %v3543_v29  ;;  %v3558_v43 = vshrl.u32 %v8061_v22, %v3543_v29  ;;  %v3693_v49 = vadd.s32 536870912, %v3692_v51 }
 0x3d1   : > { %v3408_v50 = vsel %vm11274_vm10, %v10949_v17, %v3405_v57  ;;  %v3547_v33 = vor.u32 %v3546_v42, %v3545_v20  ;;  %v3550_v37 = vor.u32 %v3549_v52, %v3548_v28  ;;  %v3553_v2 = vor.u32 %v3552_v16, %v3551_v12 }
 0x3d2   : > { %7970 = vcosq.f32 %v3408_v50  ;;  %v3556_v23 = vor.u32 %v3555_v34, %v3554_v26  ;;  %v3559_v31 = vor.u32 %v3558_v43, %v3557_v44  ;;  %v11354_v41 = vshrl.u32 %v3693_v49, 30 }
 0x3d3   : > { %7972 = vsinq.f32 %v3408_v50  ;;  %vm3560_vm2 = vcmp.lt.s32.totalorder %v3541_v10, 1  ;;  %v3544_v56 = vshrl.u32 %v8056_v5, %v3543_v29  ;;  %vm3563_vm3 = vcmp.lt.s32.totalorder %v3541_v10, 4 }
 0x3d4   : > { %v3568_v60 = vsel %vm3560_vm2, %v3547_v33, %v3550_v37  ;;  %v3740_v30 = vshrl.u32 %v3739_v1, 23  ;;  %v3695_v63 = vshll.u32 %v11354_v41, 30  ;;  %vm3562_vm4 = vcmp.lt.s32.totalorder %v3541_v10, 3 }
 0x3d5   : > { %v3565_v55 = vsel %vm3563_vm3, %v3553_v2, 2102212464  ;;  %v3569_v54 = vsel %vm3563_vm3, %v3556_v23, 920167782  ;;  %vm3561_vm6 = vcmp.lt.s32.totalorder %v3541_v10, 2  ;;  %v3572_v15 = vsel %vm3560_vm2, %v3550_v37, %v3553_v2 }
 0x3d6   : > { %v3570_v27 = vsel %vm3562_vm4, %v3553_v2, %v3569_v54  ;;  %v3573_v36 = vsel %vm3563_vm3, %v3559_v31, 1326507024  ;;  %v11358_v8 = vsub.s32 %v3692_v51, %v3695_v63  ;;  %v3564_v25 = vsel %vm3560_vm2, %v3544_v56, %v3547_v33 }
 0x3d7   : > { %v3571_v6 = vsel %vm3561_vm6, %v3568_v60, %v3570_v27  ;;  %v3566_v0 = vsel %vm3562_vm4, %v3550_v37, %v3565_v55  ;;  %v3574_v18 = vsel %vm3562_vm4, %v3556_v23, %v3573_v36  ;;  %vm3412_vm1 = vweird.f32 %v10949_v17 }
 0x3d8   : > { %v11362_v59 = vmul.u32.u64.low %v11333_v32, %v3571_v6  ;;  %v11363_v58 = vmul.u32.u64.high %v11333_v32, %v3571_v6, %v11362_v59  ;;  %v3698_v38 = vsub.s32 0, %v11358_v8  ;;  %v3575_v19 = vsel %vm3561_vm6, %v3572_v15, %v3574_v18 }
 0x3d9   : > { %v3736_v48 = vand.u32 2147483647, %v11245_v24  ;;  %vm6818_vm7 = vcmp.lt.s32.totalorder %v6817_v35, 2  ;;  %v11371_v61 = vmul.u32.u64.low %v11333_v32, %v3575_v19  ;;  %v11372_v4 = vmul.u32.u64.high %v11333_v32, %v3575_v19, %v11371_v61 }
 0x3da   : > { %v7523_v47 = vadd.s32 4294967169, %v3740_v30  ;;  %vm6819_vm0 = vcmp.eq.s32.totalorder %v6817_v35, 0  ;;  %vm6822_vm5 = vcmp.eq.s32.totalorder %v6817_v35, 2  ;;  %v7520_v1 = vmin.u32 %v3698_v38, %v11358_v8 }
 0x3db   : > { %v3567_v29 = vsel %vm3561_vm6, %v3564_v25, %v3566_v0  ;;  %vm3415_vm8 = vcmp.lt.s32.totalorder %v3414_v45, 2  ;;  %vm3416_vm9 = vcmp.eq.s32.totalorder %v3414_v45, 0  ;;  %v3586_v28 = vadd.s32 1, %v11363_v58 }
 0x3dc   : > { %v7971_v20 = vpop.eup %7970  ;;  %v3746_v40 = vadd.s32 1, %v7523_v47  ;;  %vm3419_vm10 = vcmp.eq.s32.totalorder %v3414_v45, 2  ;;  %v3700_v26 = vclz %v7520_v1  ;;  %v3743_v51 = vand.u32 8388607, %v3736_v48 }
 0x3dd   : > { %v7973_v46 = vpop.eup %7972  ;;  %v3420_v12 = vxor.u32 2147483648, %v7971_v20  ;;  %v3718_v52 = vsub.s32 4, %v11354_v41  ;;  %v3583_v44 = vmul.u32 %v11333_v32, %v3567_v29  ;;  %vm3585_vm11 = vc.u32 %v11372_v4, %v11362_v59 }
 0x3de   : > { %v3417_v42 = vxor.u32 2147483648, %v7973_v46  ;;  %v7521_v16 = vadd.s32 4294967294, %v3700_v26  ;;  %v3587_v34 = vsel %vm3585_vm11, %v3586_v28, %v11363_v58  ;;  %vm3747_vm12 = vcmp.gt.s32.totalorder %v3746_v40, 0 }
 0x3df   : > { %v3421_v10 = vsel %vm3419_vm10, %v3420_v12, %v7973_v46  ;;  %v6824_v57 = vsel %vm6822_vm5, %v3420_v12, %v7973_v46  ;;  %v3588_v49 = vadd.s32 %v3587_v34, %v3583_v44  ;;  %v3748_v37 = vsel %vm3747_vm12, %v3746_v40, 0 }
 0x3e0   : > { %v3418_v43 = vsel %vm3416_vm9, %v7971_v20, %v3417_v42  ;;  %v6821_v50 = vsel %vm6819_vm0, %v7971_v20, %v3417_v42  ;;  %vm7522_vm13 = vcmp.lt.s32.totalorder %v7521_v16, 0  ;;  %v3688_v60 = vadd.s32 %v11323_v3, %v11316_v62 }
 0x3e1   : > { %v3422_v33 = vsel %vm3415_vm8, %v3418_v43, %v3421_v10  ;;  %v6825_v32 = vsel %vm6818_vm7, %v6821_v50, %v6824_v57  ;;  %v3703_v31 = vsel %vm7522_vm13, 0, %v7521_v16  ;;  %v3589_v56 = vadd.s32 536870912, %v3588_v49 }
 0x3e2   : > { %v3423_v2 = vsel %vm3412_vm1, nan, %v3422_v33  ;;  %v6826_v23 = vsel %vm3412_vm1, nan, %v6825_v32  ;;  %v3704_v30 = vsub.s32 32, %v3703_v31  ;;  %v3708_v63 = vsub.s32 4294967266, %v3703_v31 }
 0x3e3   : > { %7267 = vst [vmem:[%s8473_s3 + $0x1c0] sm:$0xff] %v3423_v2  ;;  %7300 = vst [vmem:[%s8473_s3 + $0x1c8] sm:$0xff] %v6826_v23  ;;  %v11397_v55 = vshrl.u32 %v3589_v56, 30  ;;  %v3750_v35 = vand.u32 31, %v3748_v37  ;;  %vm3634_vm14 = vcmp.lt.s32.totalorder %v11157_v53, 0  ;;  %v3705_v54 = vshll.u32 %v11358_v8, %v3703_v31 }
 0x3e4   : > { %v3706_v27 = vshrl.u32 %v3688_v60, %v3704_v30  ;;  %v3709_v15 = vadd.s32 127, %v3708_v63  ;;  %v3719_v17 = vsel %vm3634_vm14, %v3718_v52, %v11354_v41  ;;  %v3744_v45 = vor.u32 8388608, %v3743_v51 }
 0x3e5   : > { %v3591_v36 = vshll.u32 %v11397_v55, 30  ;;  %v3751_v25 = vsub.s32 32, %v3750_v35  ;;  %vm11407_vm15 = vcmp.le.f32.partialorder %v3632_v39, 0.7853982  ;;  %v3759_v1 = vshll.u32 %v8058_v9, %v3750_v35 }
 0x3e6   : > { %v3707_v62 = vor.u32 %v3706_v27, %v3705_v54  ;;  %v3710_v3 = vshll.u32 %v3709_v15, 23  ;;  %v3721_v18 = vsel %vm11407_vm15, 0, %v3719_v17  ;;  %v11415_v19 = vshll.u32 %v3744_v45, 8 }
 0x3e7   : > { %v3592_v0 = vsub.s32 %v3588_v49, %v3591_v36  ;;  %v3754_v41 = vshrl.u32 %v8057_v7, %v3751_v25  ;;  %v3757_v38 = vshrl.u32 %v8058_v9, %v3751_v25  ;;  %v3760_v39 = vshrl.u32 %v8059_v11, %v3751_v25 }
 0x3e8   : > { %v3711_v8 = vor.u32 4788187, %v3710_v3  ;;  %v3714_v47 = vcvt.s32.f32 %v3707_v62  ;;  %v3749_v20 = vshrl.u32 %v3748_v37, 5  ;;  %v3753_v28 = vshll.u32 %v8056_v5, %v3750_v35 }
 0x3e9   : > { %v3594_v58 = vsub.s32 0, %v3592_v0  ;;  %v3756_v40 = vshll.u32 %v8057_v7, %v3750_v35  ;;  %v3761_v12 = vor.u32 %v3760_v39, %v3759_v1  ;;  %v3762_v26 = vshll.u32 %v8059_v11, %v3750_v35 }
 0x3ea   : > { %v3712_v61 = vand.u32 2147483647, %v3711_v8  ;;  %v3763_v51 = vshrl.u32 %v8060_v13, %v3751_v25  ;;  %v3584_v42 = vadd.s32 %v11362_v59, %v11372_v4  ;;  %v3755_v44 = vor.u32 %v3754_v41, %v3753_v28 }
 0x3eb   : > { %v7516_v29 = vmin.u32 %v3594_v58, %v3592_v0  ;;  %v3758_v9 = vor.u32 %v3757_v38, %v3756_v40  ;;  %v3765_v16 = vshll.u32 %v8060_v13, %v3750_v35  ;;  %v3766_v34 = vshrl.u32 %v8061_v22, %v3751_v25 }
 0x3ec   : > { %v3715_v46 = vmul.f32 %v3714_v47, %v3712_v61  ;;  %v3764_v57 = vor.u32 %v3763_v51, %v3762_v26  ;;  %v3752_v7 = vshrl.u32 %v8056_v5, %v3751_v25  ;;  %vm3768_vm2 = vcmp.lt.s32.totalorder %v3749_v20, 1 }
 0x3ed   : > { %v3596_v52 = vclz %v7516_v29  ;;  %vm3771_vm3 = vcmp.lt.s32.totalorder %v3749_v20, 4  ;;  %v3767_v50 = vor.u32 %v3766_v34, %v3765_v16  ;;  %vm3770_vm4 = vcmp.lt.s32.totalorder %v3749_v20, 3 }
 0x3ee   : > { %v3716_v10 = vxor.u32 2147483648, %v3715_v46  ;;  %v3773_v59 = vsel %vm3771_vm3, %v3761_v12, 2102212464  ;;  %v3776_v13 = vsel %vm3768_vm2, %v3755_v44, %v3758_v9  ;;  %v3777_v22 = vsel %vm3771_vm3, %v3764_v57, 920167782 }
 0x3ef   : > { %v7517_v43 = vadd.s32 4294967294, %v3596_v52  ;;  %vm3769_vm1 = vcmp.lt.s32.totalorder %v3749_v20, 2  ;;  %v3778_v49 = vsel %vm3770_vm4, %v3761_v12, %v3777_v22  ;;  %v3772_v37 = vsel %vm3768_vm2, %v3752_v7, %v3755_v44 }
 0x3f0   : > { %v3717_v11 = vsel %vm3634_vm14, %v3716_v10, %v3715_v46  ;;  %v3774_v2 = vsel %vm3770_vm4, %v3758_v9, %v3773_v59  ;;  %v3779_v23 = vsel %vm3769_vm1, %v3776_v13, %v3778_v49  ;;  %v3780_v31 = vsel %vm3768_vm2, %v3758_v9, %v3761_v12 }
 0x3f1   : > { %v3720_v4 = vsel %vm11407_vm15, %v11157_v53, %v3717_v11  ;;  %vm7518_vm6 = vcmp.lt.s32.totalorder %v7517_v43, 0  ;;  %v3781_v56 = vsel %vm3771_vm3, %v3767_v50, 1326507024  ;;  %v3725_v54 = vadd.s32 3, %v3721_v18 }
 0x3f2   : > { %7974 = vcosq.f32 %v3720_v4  ;;  %v3599_v5 = vsel %vm7518_vm6, 0, %v7517_v43  ;;  %v3782_v35 = vsel %vm3770_vm4, %v3764_v57, %v3781_v56  ;;  %v7126_v3 = vand.u32 3, %v3721_v18 }
 0x3f3   : > { %7976 = vsinq.f32 %v3720_v4  ;;  %v3600_v33 = vsub.s32 32, %v3599_v5  ;;  %v3604_v32 = vsub.s32 4294967266, %v3599_v5  ;;  %v3601_v60 = vshll.u32 %v3592_v0, %v3599_v5 }
 0x3f4   : > { %v3783_v27 = vsel %vm3769_vm1, %v3780_v31, %v3782_v35  ;;  %v11445_v15 = vmul.u32.u64.low %v11415_v19, %v3779_v23  ;;  %v11446_v17 = vmul.u32.u64.high %v11415_v19, %v3779_v23, %v11445_v15  ;;  %v3775_v6 = vsel %vm3769_vm1, %v3772_v37, %v3774_v2 }
 0x3f5   : > { %v3602_v30 = vshrl.u32 %v3584_v42, %v3600_v33  ;;  %v3605_v63 = vadd.s32 127, %v3604_v32  ;;  %v11450_v25 = vmul.u32.u64.low %v11415_v19, %v3783_v27  ;;  %v11451_v62 = vmul.u32.u64.high %v11415_v19, %v3783_v27, %v11450_v25 }
 0x3f6   : > { %vm3724_vm7 = vweird.f32 %v11157_v53  ;;  %v3726_v8 = vand.u32 3, %v3725_v54  ;;  %vm3530_vm0 = vcmp.lt.s32.totalorder %v11206_v14, 0  ;;  %v3794_v58 = vadd.s32 1, %v11446_v17 }
 0x3f7   : > { %v3603_v36 = vor.u32 %v3602_v30, %v3601_v60  ;;  %v3606_v45 = vshll.u32 %v3605_v63, 23  ;;  %v3791_v61 = vmul.u32 %v11415_v19, %v3775_v6  ;;  %vm3793_vm5 = vc.u32 %v11451_v62, %v11445_v15 }
 0x3f8   : > { %vm7127_vm8 = vcmp.lt.s32.totalorder %v7126_v3, 2  ;;  %vm11462_vm9 = vcmp.le.f32.partialorder %v3528_v21, 0.7853982  ;;  %v3614_v1 = vsub.s32 4, %v11397_v55  ;;  %v3795_v39 = vsel %vm3793_vm5, %v3794_v58, %v11446_v17 }
 0x3f9   : > { %v3607_v0 = vor.u32 4788187, %v3606_v45  ;;  %v3610_v38 = vcvt.s32.f32 %v3603_v36  ;;  %vm7128_vm10 = vcmp.eq.s32.totalorder %v7126_v3, 0  ;;  %v3796_v19 = vadd.s32 %v3795_v39, %v3791_v61 }
 0x3fa   : > { %vm3728_vm11 = vcmp.eq.s32.totalorder %v3726_v8, 0  ;;  %vm3731_vm12 = vcmp.eq.s32.totalorder %v3726_v8, 2  ;;  %vm7131_vm13 = vcmp.eq.s32.totalorder %v7126_v3, 2  ;;  %vm3727_vm14 = vcmp.lt.s32.totalorder %v3726_v8, 2 }
 0x3fb   : > { %v3608_v41 = vand.u32 2147483647, %v3607_v0  ;;  %v3797_v26 = vadd.s32 536870912, %v3796_v19  ;;  %v3615_v52 = vsel %vm3530_vm0, %v3614_v1, %v11397_v55  ;;  %v3792_v30 = vadd.s32 %v11445_v15, %v11451_v62 }
 0x3fc   : > { %v7975_v47 = vpop.eup %7974  ;;  %v3617_v7 = vsel %vm11462_vm9, 0, %v3615_v52  ;;  %vm3738_vm5 = vcmp.lt.s32.totalorder %v11245_v24, 0 }
 0x3fd   : > { %v7977_v29 = vpop.eup %7976  ;;  %v3732_v20 = vxor.u32 2147483648, %v7975_v47  ;;  %v3611_v28 = vmul.f32 %v3610_v38, %v3608_v41  ;;  %v3798_v57 = vshrl.u32 %v3797_v26, 30  ;;  %v3621_v50 = vadd.s32 3, %v3617_v7 }
 0x3fe   : > { %v3729_v40 = vxor.u32 2147483648, %v7977_v29  ;;  %v7023_v13 = vand.u32 3, %v3617_v7 }
 0x3ff   : > { %v3733_v46 = vsel %vm3731_vm12, %v3732_v20, %v7977_v29  ;;  %v7133_v21 = vsel %vm7131_vm13, %v3732_v20, %v7977_v29  ;;  %v3612_v12 = vxor.u32 2147483648, %v3611_v28  ;;  %v3799_v55 = vshll.u32 %v3798_v57, 30 }
 0x400   : > { %v3730_v51 = vsel %vm3728_vm11, %v7975_v47, %v3729_v40  ;;  %v7130_v42 = vsel %vm7128_vm10, %v7975_v47, %v3729_v40  ;;  %v3622_v22 = vand.u32 3, %v3621_v50  ;;  %vm7024_vm15 = vcmp.lt.s32.totalorder %v7023_v13, 2 }
 0x401   : > { %v3734_v44 = vsel %vm3727_vm14, %v3730_v51, %v3733_v46  ;;  %v7134_v9 = vsel %vm7127_vm8, %v7130_v42, %v7133_v21  ;;  %v3613_v10 = vsel %vm3530_vm0, %v3612_v12, %v3611_v28  ;;  %v3800_v11 = vsub.s32 %v3796_v19, %v3799_v55 }
 0x402   : > { %v3735_v16 = vsel %vm3724_vm7, nan, %v3734_v44  ;;  %v7135_v34 = vsel %vm3724_vm7, nan, %v7134_v9  ;;  %v3616_v43 = vsel %vm11462_vm9, %v11206_v14, %v3613_v10  ;;  %vm7025_vm2 = vcmp.eq.s32.totalorder %v7023_v13, 0 }
 0x403   : > { %7270 = vst [vmem:[%s8473_s3 + $0x1f0] sm:$0xff] %v3735_v16  ;;  %7303 = vst [vmem:[%s8473_s3 + $0x1f8] sm:$0xff] %v7135_v34  ;;  %7978 = vcosq.f32 %v3616_v43  ;;  %v3802_v59 = vsub.s32 0, %v3800_v11  ;;  %vm7028_vm3 = vcmp.eq.s32.totalorder %v7023_v13, 2  ;;  %vm3623_vm4 = vcmp.lt.s32.totalorder %v3622_v22, 2 }
 0x404   : > { %7980 = vsinq.f32 %v3616_v43  ;;  %vm3627_vm6 = vcmp.eq.s32.totalorder %v3622_v22, 2  ;;  %vm3624_vm7 = vcmp.eq.s32.totalorder %v3622_v22, 0  ;;  %vm3620_vm0 = vweird.f32 %v11206_v14 }
 0x405   : > { %v7524_v4 = vmin.u32 %v3802_v59, %v3800_v11  ;;  %v3822_v62 = vsub.s32 4, %v3798_v57  ;;  %vm3737_vm8 = vcmp.le.f32.partialorder %v3736_v48, 0.7853982 }
 0x407   : > { %v3804_v53 = vclz %v7524_v4  ;;  %v3823_v61 = vsel %vm3738_vm5, %v3822_v62, %v3798_v57 }
 0x408   : > { %v3825_v18 = vsel %vm3737_vm8, 0, %v3823_v61 }
 0x409   : > { %v7525_v49 = vadd.s32 4294967294, %v3804_v53  ;;  %v3829_v1 = vadd.s32 3, %v3825_v18  ;;  %v7229_v29 = vand.u32 3, %v3825_v18 }
 0x40b   : > { %vm7526_vm1 = vcmp.lt.s32.totalorder %v7525_v49, 0  ;;  %v3830_v39 = vand.u32 3, %v3829_v1  ;;  %vm7234_vm10 = vcmp.eq.s32.totalorder %v7229_v29, 2  ;;  %vm7231_vm12 = vcmp.eq.s32.totalorder %v7229_v29, 0 }
 0x40c   : > { %v3807_v31 = vsel %vm7526_vm1, 0, %v7525_v49  ;;  %vm7230_vm14 = vcmp.lt.s32.totalorder %v7229_v29, 2 }
 0x40d   : > { %v7979_v5 = vpop.eup %7978  ;;  %v3808_v63 = vsub.s32 32, %v3807_v31  ;;  %v3812_v27 = vsub.s32 4294967266, %v3807_v31  ;;  %v3809_v25 = vshll.u32 %v3800_v11, %v3807_v31  ;;  %vm3835_vm9 = vcmp.eq.s32.totalorder %v3830_v39, 2 }
 0x40e   : > { %v7981_v33 = vpop.eup %7980  ;;  %v3628_v32 = vxor.u32 2147483648, %v7979_v5  ;;  %vm3832_vm11 = vcmp.eq.s32.totalorder %v3830_v39, 0  ;;  %vm3831_vm13 = vcmp.lt.s32.totalorder %v3830_v39, 2 }
 0x40f   : > { %v3625_v37 = vxor.u32 2147483648, %v7981_v33  ;;  %v3810_v45 = vshrl.u32 %v3792_v30, %v3808_v63  ;;  %v3813_v3 = vadd.s32 127, %v3812_v27 }
 0x410   : > { %v3629_v2 = vsel %vm3627_vm6, %v3628_v32, %v7981_v33  ;;  %v7030_v23 = vsel %vm7028_vm3, %v3628_v32, %v7981_v33 }
 0x411   : > { %v3626_v56 = vsel %vm3624_vm7, %v7979_v5, %v3625_v37  ;;  %v7027_v60 = vsel %vm7025_vm2, %v7979_v5, %v3625_v37  ;;  %v3811_v6 = vor.u32 %v3810_v45, %v3809_v25  ;;  %v3814_v0 = vshll.u32 %v3813_v3, 23 }
 0x412   : > { %v3630_v35 = vsel %vm3623_vm4, %v3626_v56, %v3629_v2  ;;  %v7031_v54 = vsel %vm7024_vm15, %v7027_v60, %v7030_v23  ;;  %vm3828_vm15 = vweird.f32 %v11245_v24 }
 0x413   : > { %v3631_v17 = vsel %vm3620_vm0, nan, %v3630_v35  ;;  %v7032_v36 = vsel %vm3620_vm0, nan, %v7031_v54  ;;  %v3815_v8 = vor.u32 4788187, %v3814_v0  ;;  %v3818_v41 = vcvt.s32.f32 %v3811_v6 }
 0x414   : > { %7269 = vst [vmem:[%s8473_s3 + $0x1e0] sm:$0xff] %v3631_v17  ;;  %7302 = vst [vmem:[%s8473_s3 + $0x1e8] sm:$0xff] %v7032_v36 }
 0x415   : > { %v3816_v58 = vand.u32 2147483647, %v3815_v8 }
 0x417   : > { %v3819_v15 = vmul.f32 %v3818_v41, %v3816_v58 }
 0x419   : > { %v3820_v38 = vxor.u32 2147483648, %v3819_v15 }
 0x41b   : > { %v3821_v14 = vsel %vm3738_vm5, %v3820_v38, %v3819_v15 }
 0x41c   : > { %v3824_v47 = vsel %vm3737_vm8, %v11245_v24, %v3821_v14 }
 0x41d   : > { %7982 = vcosq.f32 %v3824_v47 }
 0x41e   : > { %7984 = vsinq.f32 %v3824_v47 }
 0x427   : > { %v7983_v20 = vpop.eup %7982 }
 0x428   : > { %v7985_v28 = vpop.eup %7984  ;;  %v3836_v19 = vxor.u32 2147483648, %v7983_v20  ;;  %7312 = sbr.rel (!%p8118_p5) target bundleno = 1099 (0x44b), region = 32 }
 0x429   : > { %v3833_v40 = vxor.u32 2147483648, %v7985_v28 }
 0x42a   : > { %v3837_v48 = vsel %vm3835_vm9, %v3836_v19, %v7985_v28  ;;  %v7236_v46 = vsel %vm7234_vm10, %v3836_v19, %v7985_v28 }
 0x42b   : > { %v3834_v21 = vsel %vm3832_vm11, %v7983_v20, %v3833_v40  ;;  %v7233_v12 = vsel %vm7231_vm12, %v7983_v20, %v3833_v40 }
 0x42c   : > { %v3838_v26 = vsel %vm3831_vm13, %v3834_v21, %v3837_v48  ;;  %v7237_v51 = vsel %vm7230_vm14, %v7233_v12, %v7236_v46 }
 0x42d   : > { %v3839_v42 = vsel %vm3828_vm15, nan, %v3838_v26  ;;  %v7238_v52 = vsel %vm3828_vm15, nan, %v7237_v51 }
 0x42e   : > { %7271 = vst [vmem:[%s8473_s3 + $0x200] sm:$0xff] %v3839_v42  ;;  %7304 = vst [vmem:[%s8473_s3 + $0x208] sm:$0xff] %v7238_v52 }
 0x42f   : > { %s11635_s25 = smov (!%p7315_p11, %s7314_s25), 33 }
 0x430   : > { %s11505_s26 = sshll.u32 %s11635_s25, 8 }
 0x431   : > { %s7320_s28 = ssub.s32 8448, %s11505_s26 }
 0x432   : > { %7321 = vsyncadd %s11500_s24, %s7320_s28  ;;  %p7661_p12 = scmp.ne.s32.totalorder %s11505_s26, 0  ;;  %s7671_s27 = smul.u32 8448, %s8101_s13 }
 0x433   : > { %s7327_s29 = sshll.u32 %s8473_s3, 4  ;;  %s8062_s5 = smov [#allocation2]   ;;  %s11517_s29 = int_to_ptr.vmem [resolvable:$true] %s7327_s29 }
 0x434   : > { %s11515_s4 = scalar_lea.hbm %s11563_s2, %s7671_s27  ;;  %s7991_s21 = scalar_lea.vmem %s11517_s29, %s11505_s26 }
 0x435   : > { %p7992_p13 = scmp.ne.s32.totalorder %s11517_s29, %s7991_s21  ;;  %s7995_s6 = sshll.u32 %s8062_s5, 4  ;;  %s7996_s6 = int_to_ptr.vmem [resolvable:$false] %s7995_s6 }
 0x436   : > { %s7997_s13 = scalar_lea.vmem %s7996_s6, 16896  ;;  %p7998_p2 = scmp.lt.s32.totalorder %s11517_s29, %s7996_s6 }
 0x437   : > { %p7993_p0 = pnand %p7992_p13, %p7661_p12  ;;  %p7999_p3 = scmp.lt.s32.totalorder %s7997_s13, %s7991_s21 }
 0x439   : > { %p7994_p1 = pneg %p7993_p0  ;;  %p8000_p4 = por %p7999_p3, %p7998_p2 }
 0x43b   : > { %p8001_p5 = pnand %p8000_p4, %p7994_p1 }
 0x43d   : > { %8004 = shalt.err (!%p8001_p5)
}
 0x43e   : > { %s8005_s3 = scalar_lea.hbm %s11515_s4, %s11505_s26  ;;  %s8009_s14 = scalar_lea.hbm %s11563_s2, 16640 }
 0x43f   : > { %p8006_p7 = scmp.ne.s32.totalorder %s11515_s4, %s8005_s3  ;;  %p8010_p10 = scmp.lt.u32.totalorder %s11515_s4, %s11563_s2 }
 0x440   : > { %p8011_p11 = scmp.lt.u32.totalorder %s8009_s14, %s8005_s3  ;;  %p8013_p0 = scmp.lt.u32.totalorder %s8005_s3, %s11515_s4 }
 0x441   : > { %p8007_p8 = pnand %p8006_p7, %p7661_p12 }
 0x442   : > { %p8012_p13 = por %p8011_p11, %p8010_p10 }
 0x443   : > { %p8008_p9 = pneg %p8007_p8 }
 0x444   : > { %p8014_p1 = por %p8013_p0, %p8012_p13 }
 0x446   : > { %p8015_p2 = pnand %p8014_p1, %p8008_p9 }
 0x448   : > { %8018 = shalt.err (!%p8015_p2)
}
 0x449   : > { %s8063_s22 = smov 256   ;;  %s8064_s23 = smov 16  }
 0x44a   : > { %7333 = dma.vmem_to_hbm [thread:$0]  (%p7661_p12), %s11517_s29, %s11505_s26, %s11515_s4, %s11500_s24, %s8063_s22, %s8063_s22, %s8064_s23  }
 0x44b PF: > { %p7810_p3 = scmp.ge.s32.totalorder %s8053_s12, 2  ;;  %s7342_s25 = sand.u32 1, %s8041_s9  }
 0x44c   : > { %s7343_s28 = scalar_lea.sflag [#allocation3], %s7342_s25 }
 0x44d   : > { %p7807_p4 = pnand %p7810_p3, %p8122_p6 }
 0x44f   : > { %8036 = dma.done.wait (!%p7807_p4), %s7343_s28, 8448  }
 0x450   : > { %8038 = vsyncadd (!%p7807_p4), %s7343_s28, 4294958848  ;;  %p12_p5 = scmp.ge.s32.totalorder %s8105_s15, 4   ;;  %s11630_s9 = smov %s8045_s10 }
 0x451   : > { %s11631_s10 = smov %s8049_s11  ;;  %s11632_s11 = smov %s8116_s18 }
 0x452   : > { %s11633_s12 = smov %s8105_s15  ;;  %14 = sbr.rel (!%p12_p5) target bundleno = 3 (0x3), region = 63 }
 0x459   :  { %7348 = vsyncpa [#allocation3], 1 }
 0x45a   :  { %7350 = vsyncpa [#allocation3 + $0x1], 1 }

</bundles_post_ra>
